<compile_context>
chip_gen: v6e
topology: v6e:2x2x1
jax: 0.10.0
libtpu: 0.0.40
codegen_flags: <defaults>
</compile_context>

<pallas_src>
import jax
import jax.numpy as jnp
from jax.experimental import pallas as pl
from jax.experimental.pallas import tpu as pltpu

OUT_PIX = 784   # 28 * 28
OUT_PAD = 896   # 7 * 128 -> lane-dense padded output width


def _round_up(x, m):
    return ((x + m - 1) // m) * m


# ----------------------------------------------------------------------------
# Pallas kernel: subtract, 3 matmuls (bf16 in / f32 acc), ReLU x2, sigmoid
# ----------------------------------------------------------------------------
def _decoder_mlp_kernel(x_ref, u_ref,
                        w1_ref, b1_ref,
                        w2_ref, b2_ref,
                        w3_ref, b3_ref,
                        out_ref):
    # x/u: (TB, de_in) f32.  (x already has one-hot cols appended, u has zeros
    # there, so x - u == concat([x - u, one_hot]).)
    z = (x_ref[...] - u_ref[...]).astype(jnp.bfloat16)

    # Linear(de_in, 512) + ReLU   (bf16 operands, f32 accumulate, f32 bias/relu)
    h1 = jnp.dot(z, w1_ref[...], preferred_element_type=jnp.float32) + b1_ref[...]
    h1 = jnp.maximum(h1, 0.0).astype(jnp.bfloat16)

    # Linear(512, 1024) + ReLU
    h2 = jnp.dot(h1, w2_ref[...], preferred_element_type=jnp.float32) + b2_ref[...]
    h2 = jnp.maximum(h2, 0.0).astype(jnp.bfloat16)

    # Linear(1024, 896-padded 784) + Sigmoid (f32 logits, EUP sigmoid)
    logits = jnp.dot(h2, w3_ref[...], preferred_element_type=jnp.float32) + b3_ref[...]
    out_ref[...] = jax.nn.sigmoid(logits)


def decoder_mlp_pallas(x_in, u_in, params):
    """3-layer MLP decoder fused in one Pallas kernel.

    x_in, u_in : (B, de_in) float32
    params     : w1 (de_in,512) bf16, b1 (1,512) f32,
                 w2 (512,1024) bf16, b2 (1,1024) f32,
                 w3 (1024,896) bf16 (zero-padded), b3 (1,896) f32 (zero-padded)
    returns    : (B, 784) float32
    """
    B, de_in = x_in.shape

    # Batch tiling: pad B to a sublane-aligned multiple of the tile.
    padded_B = _round_up(B, 8)
    tb = min(padded_B, 256)
    padded_B = _round_up(padded_B, tb)
    if padded_B != B:
        pad = padded_B - B
        x_in = jnp.pad(x_in, ((0, pad), (0, 0)))
        u_in = jnp.pad(u_in, ((0, pad), (0, 0)))

    w1, b1 = params["w1"], params["b1"]
    w2, b2 = params["w2"], params["b2"]
    w3, b3 = params["w3"], params["b3"]

    act_spec = pl.BlockSpec((tb, de_in), lambda i: (i, 0))
    out_spec = pl.BlockSpec((tb, OUT_PAD), lambda i: (i, 0))

    def resident(shape):
        # Same block index for every grid step -> weights stay in VMEM.
        return pl.BlockSpec(shape, lambda i: (0, 0))

    flops = 2 * padded_B * (de_in * 512 + 512 * 1024 + 1024 * OUT_PAD)
    bytes_accessed = (
        (w1.size + w2.size + w3.size) * 2           # bf16 weights
        + (b1.size + b2.size + b3.size) * 4         # f32 biases
        + 2 * padded_B * de_in * 4                  # x, u
        + padded_B * OUT_PAD * 4)                   # output
    cost = pl.CostEstimate(flops=flops,
                           transcendentals=padded_B * OUT_PAD,
                           bytes_accessed=bytes_accessed)

    out = pl.pallas_call(
        _decoder_mlp_kernel,
        out_shape=jax.ShapeDtypeStruct((padded_B, OUT_PAD), jnp.float32),
        grid=(padded_B // tb,),
        in_specs=[
            act_spec, act_spec,
            resident(w1.shape), resident(b1.shape),
            resident(w2.shape), resident(b2.shape),
            resident(w3.shape), resident(b3.shape),
        ],
        out_specs=out_spec,
        compiler_params=pltpu.CompilerParams(
            dimension_semantics=("parallel",)),
        cost_estimate=cost,
    )(x_in, u_in, w1, b1, w2, b2, w3, b3)

    return out[:B, :OUT_PIX]


# ----------------------------------------------------------------------------
# Plain-JAX glue reproducing DecoderMNIST.forward semantics
# ----------------------------------------------------------------------------
def decoder_mnist_forward(x, u, y, params, *, use_si, n_class):
    """x: (B, latent_dim), u: (B, latent_dim), y: (B,) int labels.
    Returns (B, 1, 28, 28) float32, matching the PyTorch module."""
    x = x.astype(jnp.float32)
    u = u.astype(jnp.float32)
    if use_si:
        # forward: x = x - u; x = concat([x, one_hot(y)])
        # Implemented in-kernel as concat([x, oh]) - concat([u, 0]).
        oh = jax.nn.one_hot(y, n_class, dtype=jnp.float32)
        x_full = jnp.concatenate([x, oh], axis=1)
        u_full = jnp.concatenate([u, jnp.zeros_like(oh)], axis=1)
    else:
        x_full = x
        u_full = u
    flat = decoder_mlp_pallas(x_full, u_full, params)
    B = flat.shape[0]
    return flat.reshape(B, 1, 28, 28)


# ----------------------------------------------------------------------------
# Deterministic parameter init (shapes from nn.Linear layers in __init__)
# ----------------------------------------------------------------------------
def init_params(key, de_in_size):
    dims = [(de_in_size, 512), (512, 1024), (1024, OUT_PIX)]
    params = {}
    for i, (fan_in, fan_out) in enumerate(dims, start=1):
        key, kw, kb = jax.random.split(key, 3)
        bound = 1.0 / jnp.sqrt(fan_in)  # PyTorch nn.Linear default init range
        w = jax.random.uniform(kw, (fan_in, fan_out), jnp.float32, -bound, bound)
        b = jax.random.uniform(kb, (1, fan_out), jnp.float32, -bound, bound)
        if fan_out == OUT_PIX:
            # Pad last layer to a lane-dense 896 (7*128); zeros are sliced off
            # in the wrapper before the image reshape.
            w = jnp.pad(w, ((0, 0), (0, OUT_PAD - OUT_PIX)))
            b = jnp.pad(b, ((0, 0), (0, OUT_PAD - OUT_PIX)))
        params[f"w{i}"] = w.astype(jnp.bfloat16)  # halve HBM weight traffic
        params[f"b{i}"] = b                       # biases stay f32
    return params


# ----------------------------------------------------------------------------
# Pure-JAX reference (same bf16-weight / f32-accumulate recipe)
# ----------------------------------------------------------------------------
def decoder_ref(x, u, y, params, *, use_si, n_class):
    x = x.astype(jnp.float32)
    u = u.astype(jnp.float32)
    z = x - u
    if use_si:
        z = jnp.concatenate(
            [z, jax.nn.one_hot(y, n_class, dtype=jnp.float32)], axis=1)
    h = z.astype(jnp.bfloat16)
    h = jnp.maximum(
        jnp.dot(h, params["w1"], preferred_element_type=jnp.float32)
        + params["b1"], 0.0).astype(jnp.bfloat16)
    h = jnp.maximum(
        jnp.dot(h, params["w2"], preferred_element_type=jnp.float32)
        + params["b2"], 0.0).astype(jnp.bfloat16)
    logits = (jnp.dot(h, params["w3"], preferred_element_type=jnp.float32)
              + params["b3"])
    out = jax.nn.sigmoid(logits)[:, :OUT_PIX]
    return out.reshape(x.shape[0], 1, 28, 28)


if __name__ == "__main__":
    # Small, shape-consistent config (mirrors args.*):
    latent_dim = 20
    n_class = 10
    use_si = True
    batch = 8
    de_in_size = latent_dim + n_class if use_si else latent_dim

    key = jax.random.PRNGKey(0)
    k_params, k_x, k_u, k_y = jax.random.split(key, 4)

    params = init_params(k_params, de_in_size)
    x = jax.random.normal(k_x, (batch, latent_dim), jnp.float32)
    u = jax.random.normal(k_u, (batch, latent_dim), jnp.float32)
    y = jax.random.randint(k_y, (batch,), 0, n_class)

    out = decoder_mnist_forward(x, u, y, params, use_si=use_si, n_class=n_class)
    out = jax.block_until_ready(out)

    assert out.shape == (batch, 1, 28, 28), out.shape
    assert out.dtype == jnp.float32
    # Sigmoid output is in [0, 1] (may saturate exactly in f32 for big logits).
    assert bool(jnp.all(jnp.isfinite(out)))
    assert bool(jnp.all((out >= 0.0) & (out <= 1.0)))

    ref = jax.block_until_ready(
        decoder_ref(x, u, y, params, use_si=use_si, n_class=n_class))
    max_err = float(jnp.max(jnp.abs(out - ref)))
    assert max_err < 1e-2, f"mismatch vs reference: {max_err}"

    print("KERNEL_OK")
</pallas_src>

<mosaic_0001>
module attributes {stable_mosaic.version = 11 : i64} {
  func.func @_decoder_mlp_kernel(%arg0: i32, %arg1: memref<8x30xf32, #tpu.memory_space<vmem>>, %arg2: memref<8x30xf32, #tpu.memory_space<vmem>>, %arg3: memref<30x512xbf16, #tpu.memory_space<vmem>>, %arg4: memref<1x512xf32, #tpu.memory_space<vmem>>, %arg5: memref<512x1024xbf16, #tpu.memory_space<vmem>>, %arg6: memref<1x1024xf32, #tpu.memory_space<vmem>>, %arg7: memref<1024x896xbf16, #tpu.memory_space<vmem>>, %arg8: memref<1x896xf32, #tpu.memory_space<vmem>>, %arg9: memref<8x896xf32, #tpu.memory_space<vmem>>) attributes {dimension_semantics = [#tpu.dimension_semantics<parallel>], iteration_bounds = array<i64: 1>, scalar_prefetch = 0 : i64, scratch_operands = 0 : i64, tpu.core_type = #tpu.core_type<tc>, window_params = [{transform_indices = @transform_0, window_bounds = array<i64: 8, 30>}, {transform_indices = @transform_1, window_bounds = array<i64: 8, 30>}, {pipeline_mode = #tpu.pipeline_mode<synchronous>, transform_indices = @transform_2, window_bounds = array<i64: 30, 512>}, {pipeline_mode = #tpu.pipeline_mode<synchronous>, transform_indices = @transform_3, window_bounds = array<i64: 1, 512>}, {pipeline_mode = #tpu.pipeline_mode<synchronous>, transform_indices = @transform_4, window_bounds = array<i64: 512, 1024>}, {pipeline_mode = #tpu.pipeline_mode<synchronous>, transform_indices = @transform_5, window_bounds = array<i64: 1, 1024>}, {pipeline_mode = #tpu.pipeline_mode<synchronous>, transform_indices = @transform_6, window_bounds = array<i64: 1024, 896>}, {pipeline_mode = #tpu.pipeline_mode<synchronous>, transform_indices = @transform_7, window_bounds = array<i64: 1, 896>}, {transform_indices = @transform_8, window_bounds = array<i64: 8, 896>}]} {
    %c0 = arith.constant 0 : index
    %c0_0 = arith.constant 0 : index
    %0 = vector.load %arg1[%c0, %c0_0] : memref<8x30xf32, #tpu.memory_space<vmem>>, vector<8x30xf32>
    %c0_1 = arith.constant 0 : index
    %c0_2 = arith.constant 0 : index
    %1 = vector.load %arg2[%c0_1, %c0_2] : memref<8x30xf32, #tpu.memory_space<vmem>>, vector<8x30xf32>
    %2 = arith.subf %0, %1 : vector<8x30xf32>
    %3 = arith.truncf %2 : vector<8x30xf32> to vector<8x30xbf16>
    %c0_3 = arith.constant 0 : index
    %c0_4 = arith.constant 0 : index
    %4 = vector.load %arg3[%c0_3, %c0_4] : memref<30x512xbf16, #tpu.memory_space<vmem>>, vector<30x512xbf16>
    %cst = arith.constant dense<0.000000e+00> : vector<8x512xf32>
    %5 = tpu.matmul %3, %4, %cst {dimension_numbers = #tpu.dot_dimension_numbers<[1], [0], [0], [1], [0, 0, 1, 1], [], []>} : vector<8x30xbf16>, vector<30x512xbf16>, vector<8x512xf32> -> vector<8x512xf32>
    %c0_5 = arith.constant 0 : index
    %c0_6 = arith.constant 0 : index
    %6 = vector.load %arg4[%c0_5, %c0_6] : memref<1x512xf32, #tpu.memory_space<vmem>>, vector<1x512xf32>
    %7 = vector.broadcast %6 : vector<1x512xf32> to vector<8x512xf32>
    %8 = arith.addf %5, %7 : vector<8x512xf32>
    %cst_7 = arith.constant 0.000000e+00 : f32
    %9 = vector.broadcast %cst_7 : f32 to vector<8x512xf32>
    %10 = arith.maximumf %8, %9 : vector<8x512xf32>
    %11 = arith.truncf %10 : vector<8x512xf32> to vector<8x512xbf16>
    %c0_8 = arith.constant 0 : index
    %c0_9 = arith.constant 0 : index
    %12 = vector.load %arg5[%c0_8, %c0_9] : memref<512x1024xbf16, #tpu.memory_space<vmem>>, vector<512x1024xbf16>
    %cst_10 = arith.constant dense<0.000000e+00> : vector<8x1024xf32>
    %13 = tpu.matmul %11, %12, %cst_10 {dimension_numbers = #tpu.dot_dimension_numbers<[1], [0], [0], [1], [0, 0, 1, 1], [], []>} : vector<8x512xbf16>, vector<512x1024xbf16>, vector<8x1024xf32> -> vector<8x1024xf32>
    %c0_11 = arith.constant 0 : index
    %c0_12 = arith.constant 0 : index
    %14 = vector.load %arg6[%c0_11, %c0_12] : memref<1x1024xf32, #tpu.memory_space<vmem>>, vector<1x1024xf32>
    %15 = vector.broadcast %14 : vector<1x1024xf32> to vector<8x1024xf32>
    %16 = arith.addf %13, %15 : vector<8x1024xf32>
    %cst_13 = arith.constant 0.000000e+00 : f32
    %17 = vector.broadcast %cst_13 : f32 to vector<8x1024xf32>
    %18 = arith.maximumf %16, %17 : vector<8x1024xf32>
    %19 = arith.truncf %18 : vector<8x1024xf32> to vector<8x1024xbf16>
    %c0_14 = arith.constant 0 : index
    %c0_15 = arith.constant 0 : index
    %20 = vector.load %arg7[%c0_14, %c0_15] : memref<1024x896xbf16, #tpu.memory_space<vmem>>, vector<1024x896xbf16>
    %cst_16 = arith.constant dense<0.000000e+00> : vector<8x896xf32>
    %21 = tpu.matmul %19, %20, %cst_16 {dimension_numbers = #tpu.dot_dimension_numbers<[1], [0], [0], [1], [0, 0, 1, 1], [], []>} : vector<8x1024xbf16>, vector<1024x896xbf16>, vector<8x896xf32> -> vector<8x896xf32>
    %c0_17 = arith.constant 0 : index
    %c0_18 = arith.constant 0 : index
    %22 = vector.load %arg8[%c0_17, %c0_18] : memref<1x896xf32, #tpu.memory_space<vmem>>, vector<1x896xf32>
    %23 = vector.broadcast %22 : vector<1x896xf32> to vector<8x896xf32>
    %24 = arith.addf %21, %23 : vector<8x896xf32>
    %25 = arith.negf %24 : vector<8x896xf32>
    %26 = math.exp %25 : vector<8x896xf32>
    %cst_19 = arith.constant 1.000000e+00 : f32
    %27 = vector.broadcast %cst_19 : f32 to vector<8x896xf32>
    %28 = arith.addf %27, %26 : vector<8x896xf32>
    %29 = arith.divf %27, %28 : vector<8x896xf32>
    %c0_20 = arith.constant 0 : index
    %c0_21 = arith.constant 0 : index
    %30 = vector.load %arg9[%c0_20, %c0_21] : memref<8x896xf32, #tpu.memory_space<vmem>>, vector<8x896xf32>
    tpu.vector_store %arg9[%c0_20, %c0_21], %29 {strides = array<i32>} : memref<8x896xf32, #tpu.memory_space<vmem>>, vector<8x896xf32>,
    return
  }
  func.func @transform_0(%arg0: i32) -> (i32, i32) {
    %c0_i32 = arith.constant 0 : i32
    %c0_i32_0 = arith.constant 0 : i32
    return %arg0, %c0_i32 : i32, i32
  }
  func.func @transform_1(%arg0: i32) -> (i32, i32) {
    %c0_i32 = arith.constant 0 : i32
    %c0_i32_0 = arith.constant 0 : i32
    return %arg0, %c0_i32 : i32, i32
  }
  func.func @transform_2(%arg0: i32) -> (i32, i32) {
    %c0_i32 = arith.constant 0 : i32
    %c0_i32_0 = arith.constant 0 : i32
    %c0_i32_1 = arith.constant 0 : i32
    return %c0_i32, %c0_i32_0 : i32, i32
  }
  func.func @transform_3(%arg0: i32) -> (i32, i32) {
    %c0_i32 = arith.constant 0 : i32
    %c0_i32_0 = arith.constant 0 : i32
    %c0_i32_1 = arith.constant 0 : i32
    return %c0_i32, %c0_i32_0 : i32, i32
  }
  func.func @transform_4(%arg0: i32) -> (i32, i32) {
    %c0_i32 = arith.constant 0 : i32
    %c0_i32_0 = arith.constant 0 : i32
    %c0_i32_1 = arith.constant 0 : i32
    return %c0_i32, %c0_i32_0 : i32, i32
  }
  func.func @transform_5(%arg0: i32) -> (i32, i32) {
    %c0_i32 = arith.constant 0 : i32
    %c0_i32_0 = arith.constant 0 : i32
    %c0_i32_1 = arith.constant 0 : i32
    return %c0_i32, %c0_i32_0 : i32, i32
  }
  func.func @transform_6(%arg0: i32) -> (i32, i32) {
    %c0_i32 = arith.constant 0 : i32
    %c0_i32_0 = arith.constant 0 : i32
    %c0_i32_1 = arith.constant 0 : i32
    return %c0_i32, %c0_i32_0 : i32, i32
  }
  func.func @transform_7(%arg0: i32) -> (i32, i32) {
    %c0_i32 = arith.constant 0 : i32
    %c0_i32_0 = arith.constant 0 : i32
    %c0_i32_1 = arith.constant 0 : i32
    return %c0_i32, %c0_i32_0 : i32, i32
  }
  func.func @transform_8(%arg0: i32) -> (i32, i32) {
    %c0_i32 = arith.constant 0 : i32
    %c0_i32_0 = arith.constant 0 : i32
    return %arg0, %c0_i32 : i32, i32
  }
}

</mosaic_0001>

<bundles_post_ra>
// kernel: tpu_custom_call.1
= control target key start
LH: loop header
LB: loop body
LE: loop exit
PB: predicated region body
PF: predicated region fallthrough
CT: control target
= control target key end

     0   :  { %13 = vsyncpa [#allocation3], 0  ;;  %s7757_s0 = inlined_call_operand.hbm [shape: f32[8,30], index: 0, kind: input, shape index: {}]   ;;  %s7758_s1 = inlined_call_operand.hbm [shape: f32[8,30], index: 1, kind: input, shape index: {}]   ;;  %s7759_s2 = inlined_call_operand.hbm [shape: bf16[30,512], index: 2, kind: input, shape index: {}]   ;;  %s7760_s3 = inlined_call_operand.hbm [shape: f32[1,512], index: 3, kind: input, shape index: {}]   ;;  %s7761_s4 = inlined_call_operand.hbm [shape: bf16[512,1024], index: 4, kind: input, shape index: {}]   ;;  %s7762_s5 = inlined_call_operand.hbm [shape: f32[1,1024], index: 5, kind: input, shape index: {}]   ;;  %s7763_s6 = inlined_call_operand.hbm [shape: bf16[1024,896], index: 6, kind: input, shape index: {}]   ;;  %s7764_s7 = inlined_call_operand.hbm [shape: f32[1,896], index: 7, kind: input, shape index: {}]   ;;  %s7765_s8 = inlined_call_operand.hbm [shape: f32[8,896], index: 8, kind: output, shape index: {}]  }
   0x1   :  { %14 = vsyncpa [#allocation6], 0 }
   0x2   :  { %15 = vsyncpa [#allocation9], 0 }
   0x3   :  { %16 = vsyncpa [#allocation12], 0 }
   0x4   :  { %17 = vsyncpa [#allocation15], 0 }
   0x5   :  { %18 = vsyncpa [#allocation4], 0  ;;  %s7502_s27 = smov [#allocation5]   ;;  %s7503_s29 = smov [#allocation8]  }
   0x6   :  { %s35_s28 = sshll.u32 %s7502_s27, 4  ;;  %s57_s30 = sshll.u32 %s7503_s29, 4  ;;  %s36_s28 = int_to_ptr.vmem [resolvable:$true] %s35_s28  ;;  %s58_s30 = int_to_ptr.vmem [resolvable:$true] %s57_s30 }
   0x7   :  { %s7318_s9 = scalar_lea.vmem %s36_s28, 128  ;;  %p7323_p1 = scmp.lt.s32.totalorder %s36_s28, %s36_s28 }
   0x8   :  { %p7319_p0 = scmp.ne.s32.totalorder %s36_s28, %s7318_s9  ;;  %p7324_p2 = scmp.lt.s32.totalorder %s7318_s9, %s7318_s9 }
   0xa   :  { %p7325_p3 = por %p7324_p2, %p7323_p1 }
   0xc   :  { %p7326_p4 = pnand %p7325_p3, %p7319_p0 }
   0xe   :  { %7329 = shalt.err (!%p7326_p4)
}
   0xf   :  { %38 = dma.hbm_to_vmem [thread:$0]  %s7758_s1, 128, %s36_s28, [#allocation6]  }
  0x10   :  { %s7338_s12 = scalar_lea.vmem %s58_s30, 64  ;;  %p7343_p6 = scmp.lt.s32.totalorder %s58_s30, %s58_s30 }
  0x11   :  { %p7339_p5 = scmp.ne.s32.totalorder %s58_s30, %s7338_s12  ;;  %p7344_p7 = scmp.lt.s32.totalorder %s7338_s12, %s7338_s12 }
  0x13   :  { %p7345_p8 = por %p7344_p7, %p7343_p6 }
  0x15   :  { %p7346_p9 = pnand %p7345_p8, %p7339_p5 }
  0x17   :  { %7349 = shalt.err (!%p7346_p9)
}
  0x18   :  { %60 = dma.hbm_to_vmem [thread:$0]  %s7760_s3, 64, %s58_s30, [#allocation9]  }
  0x19   :  { %s7504_s15 = smov [#allocation11]   ;;  %s7505_s17 = smov [#allocation2]  }
  0x1a   :  { %s79_s16 = sshll.u32 %s7504_s15, 4  ;;  %s25_s18 = sshll.u32 %s7505_s17, 4  ;;  %s80_s16 = int_to_ptr.vmem [resolvable:$true] %s79_s16  ;;  %s26_s18 = int_to_ptr.vmem [resolvable:$true] %s25_s18 }
  0x1b   :  { %s7358_s19 = scalar_lea.vmem %s80_s16, 128  ;;  %p7363_p11 = scmp.lt.s32.totalorder %s80_s16, %s80_s16 }
  0x1c   :  { %p7359_p10 = scmp.ne.s32.totalorder %s80_s16, %s7358_s19  ;;  %p7364_p12 = scmp.lt.s32.totalorder %s7358_s19, %s7358_s19 }
  0x1e   :  { %p7365_p13 = por %p7364_p12, %p7363_p11 }
  0x20   :  { %p7366_p0 = pnand %p7365_p13, %p7359_p10 }
  0x22   :  { %7369 = shalt.err (!%p7366_p0)
}
  0x23   :  { %82 = dma.hbm_to_vmem [thread:$0]  %s7762_s5, 128, %s80_s16, [#allocation12]  }
  0x24   :  { %s7378_s21 = scalar_lea.vmem %s26_s18, 128  ;;  %p7383_p2 = scmp.lt.s32.totalorder %s26_s18, %s26_s18 }
  0x25   :  { %p7379_p1 = scmp.ne.s32.totalorder %s26_s18, %s7378_s21  ;;  %p7384_p3 = scmp.lt.s32.totalorder %s7378_s21, %s7378_s21 }
  0x27   :  { %p7385_p4 = por %p7384_p3, %p7383_p2 }
  0x29   :  { %p7386_p5 = pnand %p7385_p4, %p7379_p1 }
  0x2b   :  { %7389 = shalt.err (!%p7386_p5)
}
  0x2c   :  { %28 = dma.hbm_to_vmem [thread:$0]  %s7757_s0, 128, %s26_s18, [#allocation3]  }
  0x2d   :  { %s7506_s23 = smov [#allocation7]  }
  0x2e   :  { %s44_s24 = sshll.u32 %s7506_s23, 4  ;;  %s45_s24 = int_to_ptr.vmem [resolvable:$true] %s44_s24 }
  0x2f   :  { %s7398_s25 = scalar_lea.vmem %s45_s24, 1024  ;;  %p7403_p7 = scmp.lt.s32.totalorder %s45_s24, %s45_s24 }
  0x30   :  { %p7399_p6 = scmp.ne.s32.totalorder %s45_s24, %s7398_s25  ;;  %p7404_p8 = scmp.lt.s32.totalorder %s7398_s25, %s7398_s25 }
  0x32   :  { %p7405_p9 = por %p7404_p8, %p7403_p7 }
  0x34   :  { %p7406_p10 = pnand %p7405_p9, %p7399_p6 }
  0x36   :  { %7409 = shalt.err (!%p7406_p10)
}
  0x37   :  { %s7507_s5 = smov 256   ;;  %s7508_s26 = smov 16  }
  0x38   :  { %50 = dma.hbm_to_vmem [thread:$0]  %s7759_s2, 1024, %s45_s24, [#allocation6], %s7507_s5, %s7507_s5, %s7508_s26  }
  0x39   :  { %s7509_s29 = smov [#allocation10]  }
  0x3a   :  { %s66_s30 = sshll.u32 %s7509_s29, 4  ;;  %s67_s30 = int_to_ptr.vmem [resolvable:$true] %s66_s30 }
  0x3b   :  { %s7418_s0 = scalar_lea.vmem %s67_s30, 32768  ;;  %p7423_p12 = scmp.lt.s32.totalorder %s67_s30, %s67_s30 }
  0x3c   :  { %p7419_p11 = scmp.ne.s32.totalorder %s67_s30, %s7418_s0  ;;  %p7424_p13 = scmp.lt.s32.totalorder %s7418_s0, %s7418_s0 }
  0x3e   :  { %p7425_p0 = por %p7424_p13, %p7423_p12 }
  0x40   :  { %p7426_p1 = pnand %p7425_p0, %p7419_p11 }
  0x42   :  { %7429 = shalt.err (!%p7426_p1)
}
  0x43   :  { %s7510_s9 = smov 512   ;;  %s7511_s10 = smov 32  }
  0x44   :  { %72 = dma.hbm_to_vmem [thread:$0]  %s7761_s4, 32768, %s67_s30, [#allocation9], %s7510_s9, %s7510_s9, %s7511_s10  }
  0x45   :  { %s7512_s13 = smov [#allocation13]  }
  0x46   :  { %s88_s14 = sshll.u32 %s7512_s13, 4  ;;  %s89_s14 = int_to_ptr.vmem [resolvable:$true] %s88_s14 }
  0x47   :  { %s7438_s2 = scalar_lea.vmem %s89_s14, 57344  ;;  %p7443_p3 = scmp.lt.s32.totalorder %s89_s14, %s89_s14 }
  0x48   :  { %p7439_p2 = scmp.ne.s32.totalorder %s89_s14, %s7438_s2  ;;  %p7444_p4 = scmp.lt.s32.totalorder %s7438_s2, %s7438_s2 }
  0x4a   :  { %p7445_p5 = por %p7444_p4, %p7443_p3 }
  0x4c   :  { %p7446_p6 = pnand %p7445_p5, %p7439_p2 }
  0x4e   :  { %7449 = shalt.err (!%p7446_p6)
}
  0x4f   :  { %s7513_s15 = smov 448   ;;  %s7514_s16 = smov 28  }
  0x50   :  { %94 = dma.hbm_to_vmem [thread:$0]  %s7763_s6, 57344, %s89_s14, [#allocation12], %s7513_s15, %s7513_s15, %s7514_s16  }
  0x51   :  { %s7515_s19 = smov [#allocation14]  }
  0x52   :  { %s101_s1 = sshll.u32 %s7515_s19, 4  ;;  %s102_s1 = int_to_ptr.vmem [resolvable:$true] %s101_s1 }
  0x53   :  { %s7458_s4 = scalar_lea.vmem %s102_s1, 112  ;;  %s7462_s20 = scalar_lea.vmem %s102_s1, 128 }
  0x54   :  { %p7459_p7 = scmp.ne.s32.totalorder %s102_s1, %s7458_s4  ;;  %p7463_p8 = scmp.lt.s32.totalorder %s102_s1, %s102_s1 }
  0x55   :  { %p7464_p9 = scmp.lt.s32.totalorder %s7462_s20, %s7458_s4 }
  0x57   :  { %p7465_p10 = por %p7464_p9, %p7463_p8 }
  0x59   :  { %p7466_p11 = pnand %p7465_p10, %p7459_p7 }
  0x5b   :  { %7469 = shalt.err (!%p7466_p11)
}
  0x5c   :  { %104 = dma.hbm_to_vmem [thread:$0]  %s7764_s7, 112, %s102_s1, [#allocation15]  }
  0x5d   :  { %7490 = dma.done.wait [#allocation3], 128  }
  0x5e   :  { %7491 = vsyncadd [#allocation3], 4294967168 }
  0x5f   :  { %7492 = dma.done.wait [#allocation6], 1152  }
  0x60   :  { %7493 = vsyncadd [#allocation6], 4294966144 }
  0x61   :  { %7494 = dma.done.wait [#allocation9], 32832  }
  0x62   :  { %7495 = vsyncadd [#allocation9], 4294934464 }
  0x63   :  { %7496 = dma.done.wait [#allocation12], 57472  }
  0x64   :  { %7497 = vsyncadd [#allocation12], 4294909824 }
  0x65   :  { %7498 = dma.done.wait [#allocation15], 112  }
  0x66   :  { %7499 = vsyncadd [#allocation15], 4294967184  ;;  %v7516_v0 = vmov 0   ;;  %vm204_vm0 = vcmask 1046528   ;;  %v6635_v5 = vld [vmem:[#allocation7 + $0x4] ss:$16 sps:$4 sm:$0xff]  }
  0x67   :  { %249 = vmatprep.mubr.bf16.mxu0 %v7516_v0  ;;  %290 = vmatprep.mubr.bf16.mxu1 %v7516_v0  ;;  %v6629_v1 = vld [vmem:[#allocation7 + $0x24] ss:$16 sps:$4 sm:$0x7f]   ;;  %v6631_v2 = vld [vmem:[#allocation7 + $0x2c] ss:$16 sps:$4 sm:$0x7f]  }
  0x68   :  { %5810 = vmatprep.subr.msk.bf16.mxu0 %vm204_vm0, %v6629_v1  ;;  %v6633_v3 = vld [vmem:[#allocation7 + $0x20] ss:$16 sps:$4 sm:$0x7f]   ;;  %v6634_v4 = vld [vmem:[#allocation7 + $0x28] ss:$16 sps:$4 sm:$0x7f]   ;;  %5812 = vmatprep.subr.msk.bf16.mxu1 %vm204_vm0, %v6631_v2 }
  0x69   :  { %v206_v6 = vsel %vm204_vm0, %v6633_v3, 0  ;;  %v212_v7 = vsel %vm204_vm0, %v6634_v4, 0  ;;  %v6637_v8 = vld [vmem:[#allocation7 + $0xc] ss:$16 sps:$4 sm:$0xff]   ;;  %v6639_v9 = vld [vmem:[#allocation7] ss:$16 sps:$4 sm:$0xff]  }
  0x6a   :  { %230 = vmatpush1.bf16.msra.mxu0 %v206_v6  ;;  %271 = vmatpush1.bf16.msra.mxu1 %v212_v7  ;;  %v6640_v10 = vld [vmem:[#allocation7 + $0x8] ss:$16 sps:$4 sm:$0xff]   ;;  %v130_v11 = vld [vmem:[#allocation2] sm:$0xff]  ;;  %vm200_vm1 = vcmask 244736   ;;  %s7517_s6 = smov [#allocation16]  }
  0x6b   :  { %231 = vmatprep.subr.bf16.mxu0 %v6635_v5  ;;  %272 = vmatprep.subr.bf16.mxu1 %v6637_v8  ;;  %v131_v12 = vld [vmem:[#allocation5] sm:$0xff]  ;;  %v363_v13 = vld [vmem:[#allocation10 + $0x1c0] sm:$0xff]  ;;  %s5789_s7 = sshll.u32 %s7517_s6, 4  ;;  %s5790_s7 = int_to_ptr.vmem [resolvable:$true] %s5789_s7 }
  0x6c   :  { %v367_v14 = vld [vmem:[#allocation10 + $0x1e0] sm:$0xff]  ;;  %v132_v15 = vsub.f32 %v130_v11, %v131_v12  ;;  %s7470_s22 = scalar_lea.vmem %s5790_s7, 896  ;;  %p7475_p13 = scmp.lt.s32.totalorder %s5790_s7, %s5790_s7 }
  0x6d   :  { %v5871_v16 = vcombine.high %v363_v13, %v367_v14  ;;  %v491_v17 = vld [vmem:[#allocation10 + $0x5c0] sm:$0xff]  ;;  %v5870_v25 = vcombine.low %v363_v13, %v367_v14  ;;  %p7471_p12 = scmp.ne.s32.totalorder %s5790_s7, %s7470_s22  ;;  %p7476_p0 = scmp.lt.s32.totalorder %s7470_s22, %s7470_s22 }
  0x6e   :  { %v495_v18 = vld [vmem:[#allocation10 + $0x5e0] sm:$0xff]  ;;  %232 = vmatpush1.bf16.msra.mxu0 %v6639_v9  ;;  %273 = vmatpush1.bf16.msra.mxu1 %v6640_v10  ;;  %v133_v24 = vpack.c.bf16 %v132_v15, %v132_v15 }
  0x6f   :  { %v355_v19 = vld [vmem:[#allocation10 + $0x180] sm:$0xff]  ;;  %v5999_v20 = vcombine.high %v491_v17, %v495_v18  ;;  %v5998_v26 = vcombine.low %v491_v17, %v495_v18  ;;  %1885 = vmatprep.subr.bf16.mxu0 %v5871_v16  ;;  %p7477_p1 = por %p7476_p0, %p7475_p13 }
  0x70   :  { %v359_v21 = vld [vmem:[#allocation10 + $0x1a0] sm:$0xff] }
  0x71   :  { %v483_v22 = vld [vmem:[#allocation10 + $0x580] sm:$0xff]  ;;  %1926 = vmatprep.subr.bf16.mxu1 %v5999_v20  ;;  %v5863_v27 = vcombine.high %v355_v19, %v359_v21  ;;  %5811 = vmatmul.mubr.msk.bf16.vlgmr.msra.gmra.mxu0 %vm200_vm1, %v133_v24  ;;  %v5862_v33 = vcombine.low %v355_v19, %v359_v21  ;;  %p7478_p2 = pnand %p7477_p1, %p7471_p12 }
  0x72   :  { %v487_v23 = vld [vmem:[#allocation10 + $0x5a0] sm:$0xff]  ;;  %5813 = vmatmul.mubr.msk.bf16.vlgmr.msra.gmra.mxu1 %vm200_vm1, %v133_v24  ;;  %1886 = vmatpush1.bf16.msra.mxu0 %v5870_v25 }
  0x73   :  { %v5991_v28 = vcombine.high %v483_v22, %v487_v23  ;;  %v347_v29 = vld [vmem:[#allocation10 + $0x140] sm:$0xff]  ;;  %1927 = vmatpush1.bf16.msra.mxu1 %v5998_v26  ;;  %v5990_v34 = vcombine.low %v483_v22, %v487_v23  ;;  %1887 = vmatprep.subr.bf16.mxu0 %v5863_v27 }
  0x74   :  { %v351_v30 = vld [vmem:[#allocation10 + $0x160] sm:$0xff] }
  0x75   :  { %v475_v31 = vld [vmem:[#allocation10 + $0x540] sm:$0xff]  ;;  %1928 = vmatprep.subr.bf16.mxu1 %v5991_v28  ;;  %v5855_v35 = vcombine.high %v347_v29, %v351_v30  ;;  %v5854_v41 = vcombine.low %v347_v29, %v351_v30 }
  0x76   :  { %v479_v32 = vld [vmem:[#allocation10 + $0x560] sm:$0xff]  ;;  %1888 = vmatpush1.bf16.msra.mxu0 %v5862_v33 }
  0x77   :  { %v5983_v36 = vcombine.high %v475_v31, %v479_v32  ;;  %v339_v37 = vld [vmem:[#allocation10 + $0x100] sm:$0xff]  ;;  %1929 = vmatpush1.bf16.msra.mxu1 %v5990_v34  ;;  %v5982_v42 = vcombine.low %v475_v31, %v479_v32  ;;  %1889 = vmatprep.subr.bf16.mxu0 %v5855_v35 }
  0x78   :  { %v343_v38 = vld [vmem:[#allocation10 + $0x120] sm:$0xff] }
  0x79   :  { %v467_v39 = vld [vmem:[#allocation10 + $0x500] sm:$0xff]  ;;  %1930 = vmatprep.subr.bf16.mxu1 %v5983_v36  ;;  %v5847_v43 = vcombine.high %v339_v37, %v343_v38  ;;  %v5846_v49 = vcombine.low %v339_v37, %v343_v38 }
  0x7a   :  { %v471_v40 = vld [vmem:[#allocation10 + $0x520] sm:$0xff]  ;;  %1890 = vmatpush1.bf16.msra.mxu0 %v5854_v41 }
  0x7b   :  { %v5975_v44 = vcombine.high %v467_v39, %v471_v40  ;;  %v331_v45 = vld [vmem:[#allocation10 + $0xc0] sm:$0xff]  ;;  %1931 = vmatpush1.bf16.msra.mxu1 %v5982_v42  ;;  %v5974_v50 = vcombine.low %v467_v39, %v471_v40  ;;  %1891 = vmatprep.subr.bf16.mxu0 %v5847_v43 }
  0x7c   :  { %v335_v46 = vld [vmem:[#allocation10 + $0xe0] sm:$0xff] }
  0x7d   :  { %v459_v47 = vld [vmem:[#allocation10 + $0x4c0] sm:$0xff]  ;;  %1932 = vmatprep.subr.bf16.mxu1 %v5975_v44  ;;  %v5839_v51 = vcombine.high %v331_v45, %v335_v46  ;;  %v5838_v57 = vcombine.low %v331_v45, %v335_v46 }
  0x7e   :  { %v463_v48 = vld [vmem:[#allocation10 + $0x4e0] sm:$0xff]  ;;  %1892 = vmatpush1.bf16.msra.mxu0 %v5846_v49 }
  0x7f   :  { %v5967_v52 = vcombine.high %v459_v47, %v463_v48  ;;  %v323_v53 = vld [vmem:[#allocation10 + $0x80] sm:$0xff]  ;;  %1933 = vmatpush1.bf16.msra.mxu1 %v5974_v50  ;;  %v5966_v58 = vcombine.low %v459_v47, %v463_v48  ;;  %1893 = vmatprep.subr.bf16.mxu0 %v5839_v51 }
  0x80   :  { %v327_v54 = vld [vmem:[#allocation10 + $0xa0] sm:$0xff] }
  0x81   :  { %v451_v55 = vld [vmem:[#allocation10 + $0x480] sm:$0xff]  ;;  %1934 = vmatprep.subr.bf16.mxu1 %v5967_v52  ;;  %v5831_v63 = vcombine.high %v323_v53, %v327_v54  ;;  %v5830_v1 = vcombine.low %v323_v53, %v327_v54 }
  0x82   :  { %v455_v56 = vld [vmem:[#allocation10 + $0x4a0] sm:$0xff]  ;;  %1894 = vmatpush1.bf16.msra.mxu0 %v5838_v57 }
  0x83   :  { %v315_v59 = vld [vmem:[#allocation10 + $0x40] sm:$0xff]  ;;  %v5959_v0 = vcombine.high %v451_v55, %v455_v56  ;;  %1935 = vmatpush1.bf16.msra.mxu1 %v5966_v58  ;;  %v5958_v2 = vcombine.low %v451_v55, %v455_v56  ;;  %1895 = vmatprep.subr.bf16.mxu0 %v5831_v63 }
  0x84   :  { %v319_v60 = vld [vmem:[#allocation10 + $0x60] sm:$0xff] }
  0x85   :  { %v443_v61 = vld [vmem:[#allocation10 + $0x440] sm:$0xff]  ;;  %1936 = vmatprep.subr.bf16.mxu1 %v5959_v0  ;;  %v5823_v7 = vcombine.high %v315_v59, %v319_v60  ;;  %v5822_v9 = vcombine.low %v315_v59, %v319_v60 }
  0x86   :  { %v447_v62 = vld [vmem:[#allocation10 + $0x460] sm:$0xff]  ;;  %1896 = vmatpush1.bf16.msra.mxu0 %v5830_v1 }
  0x87   :  { %v307_v3 = vld [vmem:[#allocation10] sm:$0xff]  ;;  %v5951_v8 = vcombine.high %v443_v61, %v447_v62  ;;  %1937 = vmatpush1.bf16.msra.mxu1 %v5958_v2  ;;  %v5950_v10 = vcombine.low %v443_v61, %v447_v62  ;;  %1897 = vmatprep.subr.bf16.mxu0 %v5823_v7 }
  0x88   :  { %v311_v4 = vld [vmem:[#allocation10 + $0x20] sm:$0xff] }
  0x89   :  { %v435_v5 = vld [vmem:[#allocation10 + $0x400] sm:$0xff]  ;;  %1938 = vmatprep.subr.bf16.mxu1 %v5951_v8  ;;  %v5815_v15 = vcombine.high %v307_v3, %v311_v4  ;;  %v5814_v17 = vcombine.low %v307_v3, %v311_v4 }
  0x8a   :  { %v439_v6 = vld [vmem:[#allocation10 + $0x420] sm:$0xff]  ;;  %1898 = vmatpush1.bf16.msra.mxu0 %v5822_v9 }
  0x8b   :  { %v427_v11 = vld [vmem:[#allocation10 + $0x3c0] sm:$0xff]  ;;  %v5943_v16 = vcombine.high %v435_v5, %v439_v6  ;;  %1939 = vmatpush1.bf16.msra.mxu1 %v5950_v10  ;;  %v5942_v18 = vcombine.low %v435_v5, %v439_v6  ;;  %1899 = vmatprep.subr.bf16.mxu0 %v5815_v15  ;;  %v364_v15 = vld [vmem:[#allocation10 + $0x1c8] sm:$0xff] }
  0x8c   :  { %v431_v12 = vld [vmem:[#allocation10 + $0x3e0] sm:$0xff] }
  0x8d   :  { %v555_v13 = vld [vmem:[#allocation10 + $0x7c0] sm:$0xff]  ;;  %1940 = vmatprep.subr.bf16.mxu1 %v5943_v16  ;;  %v5935_v23 = vcombine.high %v427_v11, %v431_v12  ;;  %v5934_v25 = vcombine.low %v427_v11, %v431_v12  ;;  %v368_v16 = vld [vmem:[#allocation10 + $0x1e8] sm:$0xff] }
  0x8e   :  { %v559_v14 = vld [vmem:[#allocation10 + $0x7e0] sm:$0xff]  ;;  %1900 = vmatpush1.bf16.msra.mxu0 %v5814_v17  ;;  %v492_v17 = vld [vmem:[#allocation10 + $0x5c8] sm:$0xff] }
  0x8f   :  { %v419_v19 = vld [vmem:[#allocation10 + $0x380] sm:$0xff]  ;;  %v6063_v24 = vcombine.high %v555_v13, %v559_v14  ;;  %1941 = vmatpush1.bf16.msra.mxu1 %v5942_v18  ;;  %v6062_v26 = vcombine.low %v555_v13, %v559_v14  ;;  %1901 = vmatprep.subr.bf16.mxu0 %v5935_v23  ;;  %v5873_v18 = vcombine.high %v364_v15, %v368_v16  ;;  %v144_v23 = vlaneseq }
  0x90   :  { %v423_v20 = vld [vmem:[#allocation10 + $0x3a0] sm:$0xff] }
  0x91   :  { %v547_v21 = vld [vmem:[#allocation10 + $0x780] sm:$0xff]  ;;  %1942 = vmatprep.subr.bf16.mxu1 %v6063_v24  ;;  %v5927_v31 = vcombine.high %v419_v19, %v423_v20  ;;  %v5926_v33 = vcombine.low %v419_v19, %v423_v20  ;;  %v496_v19 = vld [vmem:[#allocation10 + $0x5e8] sm:$0xff]  ;;  %v5872_v20 = vcombine.low %v364_v15, %v368_v16  ;;  %v7587_v24 = vshrl.u32 %v144_v23, 7 }
  0x92   :  { %v551_v22 = vld [vmem:[#allocation10 + $0x7a0] sm:$0xff]  ;;  %1902 = vmatpush2.bf16.msra.mxu0 %v5934_v25  ;;  %v142_v25 = vld [vmem:[#allocation8] sm:$0xf]  ;;  %v464_v15 = vld [vmem:[#allocation10 + $0x4e8] sm:$0xff] }
  0x93   :  { %v411_v27 = vld [vmem:[#allocation10 + $0x340] sm:$0xff]  ;;  %v6055_v32 = vcombine.high %v547_v21, %v551_v22  ;;  %1943 = vmatpush2.bf16.msra.mxu1 %v6062_v26  ;;  %v6054_v34 = vcombine.low %v547_v21, %v551_v22  ;;  %1903 = vmatprep.subr.bf16.mxu0 %v5927_v31  ;;  %v6000_v21 = vcombine.low %v492_v17, %v496_v19  ;;  %v7590_v26 = vsub.s32 0, %v7587_v24  ;;  %v456_v23 = vld [vmem:[#allocation10 + $0x4a8] sm:$0xff] }
  0x94   :  { %v415_v28 = vld [vmem:[#allocation10 + $0x360] sm:$0xff]  ;;  %v6001_v22 = vcombine.high %v492_v17, %v496_v19 }
  0x95   :  { %v539_v29 = vld [vmem:[#allocation10 + $0x740] sm:$0xff]  ;;  %1944 = vmatprep.subr.bf16.mxu1 %v6055_v32  ;;  %v5919_v39 = vcombine.high %v411_v27, %v415_v28  ;;  %v5918_v41 = vcombine.low %v411_v27, %v415_v28  ;;  %v7593_v27 = vsub.s32 2, %v7587_v24  ;;  %v7596_v28 = vsub.s32 1, %v7587_v24 }
  0x96   :  { %v543_v30 = vld [vmem:[#allocation10 + $0x760] sm:$0xff]  ;;  %1904 = vmatpush2.bf16.msra.mxu0 %v5926_v33 }
  0x97   :  { %v403_v35 = vld [vmem:[#allocation10 + $0x300] sm:$0xff]  ;;  %v6047_v40 = vcombine.high %v539_v29, %v543_v30  ;;  %1945 = vmatpush2.bf16.msra.mxu1 %v6054_v34  ;;  %v6046_v42 = vcombine.low %v539_v29, %v543_v30  ;;  %1905 = vmatprep.subr.bf16.mxu0 %v5919_v39  ;;  %v7599_v29 = vsub.s32 3, %v7587_v24  ;;  %v147_v30 = vrot.slane %v142_v25, %v7590_v26 }
  0x98   :  { %v407_v36 = vld [vmem:[#allocation10 + $0x320] sm:$0xff]  ;;  %v155_v31 = vrot.slane %v142_v25, %v7593_v27  ;;  %v151_v32 = vrot.slane %v142_v25, %v7596_v28 }
  0x99   :  { %v531_v37 = vld [vmem:[#allocation10 + $0x700] sm:$0xff]  ;;  %1946 = vmatprep.subr.bf16.mxu1 %v6047_v40  ;;  %v5911_v47 = vcombine.high %v403_v35, %v407_v36  ;;  %v5910_v49 = vcombine.low %v403_v35, %v407_v36  ;;  %v159_v33 = vrot.slane %v142_v25, %v7599_v29 }
  0x9a   :  { %v535_v38 = vld [vmem:[#allocation10 + $0x720] sm:$0xff]  ;;  %1906 = vmatpush2.bf16.msra.mxu0 %v5918_v41 }
  0x9b   :  { %v395_v43 = vld [vmem:[#allocation10 + $0x2c0] sm:$0xff]  ;;  %v6039_v48 = vcombine.high %v531_v37, %v535_v38  ;;  %1947 = vmatpush2.bf16.msra.mxu1 %v6046_v42  ;;  %v6038_v50 = vcombine.low %v531_v37, %v535_v38  ;;  %1907 = vmatprep.subr.bf16.mxu0 %v5911_v47  ;;  %v360_v47 = vld [vmem:[#allocation10 + $0x1a8] sm:$0xff] }
  0x9c   :  { %v399_v44 = vld [vmem:[#allocation10 + $0x2e0] sm:$0xff] }
  0x9d   :  { %v523_v45 = vld [vmem:[#allocation10 + $0x6c0] sm:$0xff]  ;;  %1948 = vmatprep.subr.bf16.mxu1 %v6039_v48  ;;  %v5903_v55 = vcombine.high %v395_v43, %v399_v44  ;;  %v5902_v57 = vcombine.low %v395_v43, %v399_v44  ;;  %v484_v48 = vld [vmem:[#allocation10 + $0x588] sm:$0xff] }
  0x9e   :  { %v527_v46 = vld [vmem:[#allocation10 + $0x6e0] sm:$0xff]  ;;  %1908 = vmatpush2.bf16.msra.mxu0 %v5910_v49 }
  0x9f   :  { %v387_v51 = vld [vmem:[#allocation10 + $0x280] sm:$0xff]  ;;  %v6031_v56 = vcombine.high %v523_v45, %v527_v46  ;;  %1949 = vmatpush2.bf16.msra.mxu1 %v6038_v50  ;;  %v6030_v58 = vcombine.low %v523_v45, %v527_v46  ;;  %1909 = vmatprep.subr.bf16.mxu0 %v5903_v55  ;;  %v356_v46 = vld [vmem:[#allocation10 + $0x188] sm:$0xff] }
  0xa0   :  { %v391_v52 = vld [vmem:[#allocation10 + $0x2a0] sm:$0xff] }
  0xa1   :  { %v515_v53 = vld [vmem:[#allocation10 + $0x680] sm:$0xff]  ;;  %1950 = vmatprep.subr.bf16.mxu1 %v6031_v56  ;;  %v5895_v59 = vcombine.high %v387_v51, %v391_v52  ;;  %v5894_v61 = vcombine.low %v387_v51, %v391_v52  ;;  %v488_v51 = vld [vmem:[#allocation10 + $0x5a8] sm:$0xff] }
  0xa2   :  { %v519_v54 = vld [vmem:[#allocation10 + $0x6a0] sm:$0xff]  ;;  %1910 = vmatpush2.bf16.msra.mxu0 %v5902_v57 }
  0xa3   :  { %v6023_v60 = vcombine.high %v515_v53, %v519_v54  ;;  %1951 = vmatpush2.bf16.msra.mxu1 %v6030_v58  ;;  %v6022_v62 = vcombine.low %v515_v53, %v519_v54  ;;  %1911 = vmatprep.subr.bf16.mxu0 %v5895_v59  ;;  %v379_v63 = vld [vmem:[#allocation10 + $0x240] sm:$0xff]  ;;  %v348_v58 = vld [vmem:[#allocation10 + $0x148] sm:$0xff] }
  0xa4   :  { %v383_v0 = vld [vmem:[#allocation10 + $0x260] sm:$0xff]  ;;  %v352_v59 = vld [vmem:[#allocation10 + $0x168] sm:$0xff] }
  0xa5   :  { %1952 = vmatprep.subr.bf16.mxu1 %v6023_v60  ;;  %v507_v1 = vld [vmem:[#allocation10 + $0x640] sm:$0xff]  ;;  %v5887_v2 = vcombine.high %v379_v63, %v383_v0  ;;  %v5886_v4 = vcombine.low %v379_v63, %v383_v0  ;;  %v476_v60 = vld [vmem:[#allocation10 + $0x548] sm:$0xff]  ;;  %v5864_v0 = vcombine.low %v356_v46, %v360_v47 }
  0xa6   :  { %1912 = vmatpush2.bf16.msra.mxu0 %v5894_v61  ;;  %v511_v3 = vld [vmem:[#allocation10 + $0x660] sm:$0xff]  ;;  %v5865_v61 = vcombine.high %v356_v46, %v360_v47  ;;  %v480_v63 = vld [vmem:[#allocation10 + $0x568] sm:$0xff] }
  0xa7   :  { %1953 = vmatpush2.bf16.msra.mxu1 %v6022_v62  ;;  %v6014_v5 = vcombine.low %v507_v1, %v511_v3  ;;  %v6015_v6 = vcombine.high %v507_v1, %v511_v3  ;;  %1913 = vmatprep.subr.bf16.mxu0 %v5887_v2  ;;  %v371_v7 = vld [vmem:[#allocation10 + $0x200] sm:$0xff]  ;;  %v5993_v62 = vcombine.high %v484_v48, %v488_v51  ;;  %v340_v2 = vld [vmem:[#allocation10 + $0x108] sm:$0xff] }
  0xa8   :  { %v375_v8 = vld [vmem:[#allocation10 + $0x220] sm:$0xff]  ;;  %v5992_v1 = vcombine.low %v484_v48, %v488_v51  ;;  %v5857_v3 = vcombine.high %v348_v58, %v352_v59  ;;  %v556_v51 = vld [vmem:[#allocation10 + $0x7c8] sm:$0xff] }
  0xa9   :  { %1954 = vmatprep.subr.bf16.mxu1 %v6015_v6  ;;  %v499_v9 = vld [vmem:[#allocation10 + $0x600] sm:$0xff]  ;;  %v5879_v10 = vcombine.high %v371_v7, %v375_v8  ;;  %v5878_v12 = vcombine.low %v371_v7, %v375_v8  ;;  %v468_v6 = vld [vmem:[#allocation10 + $0x508] sm:$0xff]  ;;  %v5856_v8 = vcombine.low %v348_v58, %v352_v59 }
  0xaa   :  { %1914 = vmatpush2.bf16.msra.mxu0 %v5886_v4  ;;  %v503_v11 = vld [vmem:[#allocation10 + $0x620] sm:$0xff]  ;;  %v5985_v4 = vcombine.high %v476_v60, %v480_v63  ;;  %v472_v7 = vld [vmem:[#allocation10 + $0x528] sm:$0xff] }
  0xab   :  { %1955 = vmatpush2.bf16.msra.mxu1 %v6014_v5  ;;  %v6006_v13 = vcombine.low %v499_v9, %v503_v11  ;;  %v6007_v14 = vcombine.high %v499_v9, %v503_v11  ;;  %1915 = vmatprep.subr.bf16.mxu0 %v5879_v10  ;;  %v344_v5 = vld [vmem:[#allocation10 + $0x128] sm:$0xff]  ;;  %v5984_v9 = vcombine.low %v476_v60, %v480_v63 }
  0xac   :  { %v5849_v10 = vcombine.high %v340_v2, %v344_v5  ;;  %v5977_v11 = vcombine.high %v468_v6, %v472_v7  ;;  %v5848_v16 = vcombine.low %v340_v2, %v344_v5  ;;  %v5976_v17 = vcombine.low %v468_v6, %v472_v7  ;;  %v548_v63 = vld [vmem:[#allocation10 + $0x788] sm:$0xff] }
  0xad   :  { %1956 = vmatprep.subr.bf16.mxu1 %v6007_v14  ;;  %v460_v14 = vld [vmem:[#allocation10 + $0x4c8] sm:$0xff] }
  0xae   :  { %1916 = vmatpush2.bf16.msra.mxu0 %v5878_v12  ;;  %v332_v12 = vld [vmem:[#allocation10 + $0xc8] sm:$0xff]  ;;  %v5969_v19 = vcombine.high %v460_v14, %v464_v15 }
  0xaf   :  { %1957 = vmatpush2.bf16.msra.mxu1 %v6006_v13  ;;  %1967 = vmatprep.subr.bf16.mxu0 %v5873_v18  ;;  %v336_v13 = vld [vmem:[#allocation10 + $0xe8] sm:$0xff] }
  0xb0   :  { %2008 = vmatprep.subr.bf16.mxu1 %v6001_v22  ;;  %v5841_v18 = vcombine.high %v332_v12, %v336_v13  ;;  %v452_v22 = vld [vmem:[#allocation10 + $0x488] sm:$0xff]  ;;  %v5840_v25 = vcombine.low %v332_v12, %v336_v13 }
  0xb1   :  { %v412_v5 = vld [vmem:[#allocation10 + $0x348] sm:$0xff] }
  0xb2   :  { %v416_v6 = vld [vmem:[#allocation10 + $0x368] sm:$0xff] }
  0xb3   :  { %v540_v7 = vld [vmem:[#allocation10 + $0x748] sm:$0xff] }
  0xb4   :  { %v404_v13 = vld [vmem:[#allocation10 + $0x308] sm:$0xff] }
 0x131   :  { %v251_v34 = vpop.f32.mrf.mxu0 }
 0x132   :  { %v292_v35 = vpop.f32.mrf.mxu1  ;;  %v252_v36 = vadd.f32 %v251_v34, %v147_v30  ;;  %v5968_v30 = vcombine.low %v460_v14, %v464_v15  ;;  %v320_v34 = vld [vmem:[#allocation10 + $0x68] sm:$0xff] }
 0x133   :  { %v293_v37 = vadd.f32 %v292_v35, %v155_v31  ;;  %v253_v38 = vpop.f32.mrf.mxu0  ;;  %v444_v35 = vld [vmem:[#allocation10 + $0x448] sm:$0xff] }
 0x134   :  { %v294_v39 = vpop.f32.mrf.mxu1  ;;  %v254_v41 = vadd.f32 %v253_v38, %v151_v32  ;;  %v299_v43 = vmax.f32 %v252_v36, 0.0  ;;  %v5961_v32 = vcombine.high %v452_v22, %v456_v23  ;;  %v448_v36 = vld [vmem:[#allocation10 + $0x468] sm:$0xff]  ;;  %v5960_v38 = vcombine.low %v452_v22, %v456_v23 }
 0x135   :  { %v301_v40 = vmax.f32 %v293_v37, 0.0  ;;  %v295_v42 = vadd.f32 %v294_v39, %v159_v33  ;;  %v255_v44 = vpop.f32.mrf.mxu0  ;;  %v316_v33 = vld [vmem:[#allocation10 + $0x48] sm:$0xff]  ;;  %v5952_v46 = vcombine.low %v444_v35, %v448_v36 }
 0x136   :  { %v296_v45 = vpop.f32.mrf.mxu1  ;;  %v300_v49 = vmax.f32 %v254_v41, 0.0  ;;  %v7611_v57 = vpack.c.bf16 %v299_v43, %v299_v43  ;;  %v5825_v39 = vcombine.high %v316_v33, %v320_v34  ;;  %v308_v41 = vld [vmem:[#allocation10 + $0x8] sm:$0xff] }
 0x137   :  { %v302_v50 = vmax.f32 %v295_v42, 0.0  ;;  %v7605_v52 = vpack.c.bf16 %v301_v40, %v301_v40  ;;  %v256_v53 = vpop.f32.mrf.mxu0  ;;  %v5953_v40 = vcombine.high %v444_v35, %v448_v36  ;;  %v312_v42 = vld [vmem:[#allocation10 + $0x28] sm:$0xff]  ;;  %v5824_v45 = vcombine.low %v316_v33, %v320_v34 }
 0x138   :  { %v297_v54 = vpop.f32.mrf.mxu1  ;;  %v7607_v55 = vpack.c.bf16 %v300_v49, %v300_v49  ;;  %v436_v43 = vld [vmem:[#allocation10 + $0x408] sm:$0xff]  ;;  %v5817_v47 = vcombine.high %v308_v41, %v312_v42 }
 0x139   :  { %v7609_v56 = vpack.c.bf16 %v302_v50, %v302_v50  ;;  %v440_v44 = vld [vmem:[#allocation10 + $0x428] sm:$0xff]  ;;  %v5816_v54 = vcombine.low %v308_v41, %v312_v42 }
 0x13a   :  { %1917 = vmatprep.mubr.bf16.mxu0 %v7607_v55  ;;  %v5945_v48 = vcombine.high %v436_v43, %v440_v44  ;;  %v428_v49 = vld [vmem:[#allocation10 + $0x3c8] sm:$0xff]  ;;  %v5944_v58 = vcombine.low %v436_v43, %v440_v44 }
 0x13b   :  { %1958 = vmatprep.mubr.bf16.mxu1 %v7609_v56  ;;  %1918 = vmatmul.mubr.bf16.vlgmr.msra.gmra.mxu0 %v7611_v57  ;;  %v432_v50 = vld [vmem:[#allocation10 + $0x3e8] sm:$0xff] }
 0x13c   :  { %1959 = vmatmul.mubr.bf16.vlgmr.msra.gmra.mxu1 %v7605_v52  ;;  %1968 = vmatpush1.bf16.msra.mxu0 %v5872_v20  ;;  %v324_v20 = vld [vmem:[#allocation10 + $0x88] sm:$0xff]  ;;  %v5937_v59 = vcombine.high %v428_v49, %v432_v50 }
 0x13d   :  { %2009 = vmatpush1.bf16.msra.mxu1 %v6000_v21  ;;  %1999 = vmatprep.mubr.bf16.mxu0 %v7607_v55  ;;  %v328_v21 = vld [vmem:[#allocation10 + $0xa8] sm:$0xff] }
 0x13e   :  { %2040 = vmatprep.mubr.bf16.mxu1 %v7609_v56  ;;  %1969 = vmatprep.subr.bf16.mxu0 %v5865_v61  ;;  %v5833_v31 = vcombine.high %v324_v20, %v328_v21  ;;  %v5832_v37 = vcombine.low %v324_v20, %v328_v21  ;;  %v560_v53 = vld [vmem:[#allocation10 + $0x7e8] sm:$0xff] }
 0x13f   :  { %2010 = vmatprep.subr.bf16.mxu1 %v5993_v62  ;;  %v6065_v60 = vcombine.high %v556_v51, %v560_v53  ;;  %v420_v61 = vld [vmem:[#allocation10 + $0x388] sm:$0xff]  ;;  %v6064_v2 = vcombine.low %v556_v51, %v560_v53 }
 0x140   :  { %1970 = vmatpush1.bf16.msra.mxu0 %v5864_v0  ;;  %v424_v62 = vld [vmem:[#allocation10 + $0x3a8] sm:$0xff] }
 0x141   :  { %2011 = vmatpush1.bf16.msra.mxu1 %v5992_v1  ;;  %1971 = vmatprep.subr.bf16.mxu0 %v5857_v3  ;;  %v552_v0 = vld [vmem:[#allocation10 + $0x7a8] sm:$0xff]  ;;  %v5936_v1 = vcombine.low %v428_v49, %v432_v50  ;;  %v5929_v3 = vcombine.high %v420_v61, %v424_v62 }
 0x142   :  { %2012 = vmatprep.subr.bf16.mxu1 %v5985_v4  ;;  %v6057_v4 = vcombine.high %v548_v63, %v552_v0  ;;  %v408_v14 = vld [vmem:[#allocation10 + $0x328] sm:$0xff] }
 0x143   :  { %v532_v15 = vld [vmem:[#allocation10 + $0x708] sm:$0xff] }
 0x144   :  { %1972 = vmatpush1.bf16.msra.mxu0 %v5856_v8  ;;  %v544_v8 = vld [vmem:[#allocation10 + $0x768] sm:$0xff] }
 0x145   :  { %2013 = vmatpush1.bf16.msra.mxu1 %v5984_v9  ;;  %1973 = vmatprep.subr.bf16.mxu0 %v5849_v10  ;;  %v5928_v9 = vcombine.low %v420_v61, %v424_v62  ;;  %v6056_v10 = vcombine.low %v548_v63, %v552_v0  ;;  %v6049_v12 = vcombine.high %v540_v7, %v544_v8  ;;  %v396_v21 = vld [vmem:[#allocation10 + $0x2c8] sm:$0xff]  ;;  %v365_v62 = vld [vmem:[#allocation10 + $0x1d0] sm:$0xff] }
 0x146   :  { %2014 = vmatprep.subr.bf16.mxu1 %v5977_v11  ;;  %v5921_v11 = vcombine.high %v412_v5, %v416_v6  ;;  %v400_v22 = vld [vmem:[#allocation10 + $0x2e8] sm:$0xff]  ;;  %v369_v63 = vld [vmem:[#allocation10 + $0x1f0] sm:$0xff] }
 0x147   :  { %v524_v23 = vld [vmem:[#allocation10 + $0x6c8] sm:$0xff]  ;;  %v493_v0 = vld [vmem:[#allocation10 + $0x5d0] sm:$0xff] }
 0x148   :  { %1974 = vmatpush1.bf16.msra.mxu0 %v5848_v16  ;;  %v536_v16 = vld [vmem:[#allocation10 + $0x728] sm:$0xff] }
 0x149   :  { %2015 = vmatpush1.bf16.msra.mxu1 %v5976_v17  ;;  %1975 = vmatprep.subr.bf16.mxu0 %v5841_v18  ;;  %v5920_v17 = vcombine.low %v412_v5, %v416_v6  ;;  %v6048_v18 = vcombine.low %v540_v7, %v544_v8  ;;  %v6041_v20 = vcombine.high %v532_v15, %v536_v16  ;;  %v388_v34 = vld [vmem:[#allocation10 + $0x288] sm:$0xff]  ;;  %v357_v6 = vld [vmem:[#allocation10 + $0x190] sm:$0xff] }
 0x14a   :  { %2016 = vmatprep.subr.bf16.mxu1 %v5969_v19  ;;  %v5913_v19 = vcombine.high %v404_v13, %v408_v14  ;;  %v392_v35 = vld [vmem:[#allocation10 + $0x2a8] sm:$0xff]  ;;  %v361_v7 = vld [vmem:[#allocation10 + $0x1b0] sm:$0xff] }
 0x14b   :  { %v516_v36 = vld [vmem:[#allocation10 + $0x688] sm:$0xff]  ;;  %v485_v8 = vld [vmem:[#allocation10 + $0x590] sm:$0xff] }
 0x14c   :  { %1976 = vmatpush1.bf16.msra.mxu0 %v5840_v25  ;;  %v528_v25 = vld [vmem:[#allocation10 + $0x6e8] sm:$0xff] }
 0x14d   :  { %2017 = vmatpush1.bf16.msra.mxu1 %v5968_v30  ;;  %1977 = vmatprep.subr.bf16.mxu0 %v5833_v31  ;;  %v5912_v30 = vcombine.low %v404_v13, %v408_v14  ;;  %v6040_v31 = vcombine.low %v532_v15, %v536_v16  ;;  %v6033_v33 = vcombine.high %v524_v23, %v528_v25  ;;  %v380_v42 = vld [vmem:[#allocation10 + $0x248] sm:$0xff]  ;;  %v349_v14 = vld [vmem:[#allocation10 + $0x150] sm:$0xff] }
 0x14e   :  { %2018 = vmatprep.subr.bf16.mxu1 %v5961_v32  ;;  %v5905_v32 = vcombine.high %v396_v21, %v400_v22  ;;  %v384_v43 = vld [vmem:[#allocation10 + $0x268] sm:$0xff]  ;;  %v353_v15 = vld [vmem:[#allocation10 + $0x170] sm:$0xff] }
 0x14f   :  { %v508_v44 = vld [vmem:[#allocation10 + $0x648] sm:$0xff]  ;;  %v477_v16 = vld [vmem:[#allocation10 + $0x550] sm:$0xff] }
 0x150   :  { %1978 = vmatpush1.bf16.msra.mxu0 %v5832_v37  ;;  %v520_v37 = vld [vmem:[#allocation10 + $0x6a8] sm:$0xff] }
 0x151   :  { %2019 = vmatpush1.bf16.msra.mxu1 %v5960_v38  ;;  %1979 = vmatprep.subr.bf16.mxu0 %v5825_v39  ;;  %v5904_v38 = vcombine.low %v396_v21, %v400_v22  ;;  %v6032_v39 = vcombine.low %v524_v23, %v528_v25  ;;  %v6025_v41 = vcombine.high %v516_v36, %v520_v37  ;;  %v372_v50 = vld [vmem:[#allocation10 + $0x208] sm:$0xff]  ;;  %v341_v22 = vld [vmem:[#allocation10 + $0x110] sm:$0xff] }
 0x152   :  { %2020 = vmatprep.subr.bf16.mxu1 %v5953_v40  ;;  %v5897_v40 = vcombine.high %v388_v34, %v392_v35  ;;  %v376_v51 = vld [vmem:[#allocation10 + $0x228] sm:$0xff]  ;;  %v345_v23 = vld [vmem:[#allocation10 + $0x130] sm:$0xff] }
 0x153   :  { %v500_v53 = vld [vmem:[#allocation10 + $0x608] sm:$0xff]  ;;  %v469_v25 = vld [vmem:[#allocation10 + $0x510] sm:$0xff] }
 0x154   :  { %1980 = vmatpush1.bf16.msra.mxu0 %v5824_v45  ;;  %v512_v45 = vld [vmem:[#allocation10 + $0x668] sm:$0xff] }
 0x155   :  { %2021 = vmatpush1.bf16.msra.mxu1 %v5952_v46  ;;  %1981 = vmatprep.subr.bf16.mxu0 %v5817_v47  ;;  %v5896_v46 = vcombine.low %v388_v34, %v392_v35  ;;  %v6024_v47 = vcombine.low %v516_v36, %v520_v37  ;;  %v6017_v49 = vcombine.high %v508_v44, %v512_v45  ;;  %v333_v35 = vld [vmem:[#allocation10 + $0xd0] sm:$0xff] }
 0x156   :  { %2022 = vmatprep.subr.bf16.mxu1 %v5945_v48  ;;  %v5889_v48 = vcombine.high %v380_v42, %v384_v43  ;;  %v337_v36 = vld [vmem:[#allocation10 + $0xf0] sm:$0xff] }
 0x157   :  { %v461_v37 = vld [vmem:[#allocation10 + $0x4d0] sm:$0xff] }
 0x158   :  { %1982 = vmatpush1.bf16.msra.mxu0 %v5816_v54  ;;  %v504_v54 = vld [vmem:[#allocation10 + $0x628] sm:$0xff] }
 0x159   :  { %2023 = vmatpush1.bf16.msra.mxu1 %v5944_v58  ;;  %1983 = vmatprep.subr.bf16.mxu0 %v5937_v59  ;;  %v5888_v58 = vcombine.low %v380_v42, %v384_v43  ;;  %v6016_v59 = vcombine.low %v508_v44, %v512_v45  ;;  %v6009_v61 = vcombine.high %v500_v53, %v504_v54  ;;  %v325_v43 = vld [vmem:[#allocation10 + $0x90] sm:$0xff] }
 0x15a   :  { %2024 = vmatprep.subr.bf16.mxu1 %v6065_v60  ;;  %v5881_v60 = vcombine.high %v372_v50, %v376_v51  ;;  %v329_v44 = vld [vmem:[#allocation10 + $0xb0] sm:$0xff] }
 0x15b   :  { %v453_v45 = vld [vmem:[#allocation10 + $0x490] sm:$0xff] }
 0x15c   :  { %1984 = vmatpush2.bf16.msra.mxu0 %v5936_v1  ;;  %v497_v1 = vld [vmem:[#allocation10 + $0x5f0] sm:$0xff] }
 0x15d   :  { %2025 = vmatpush2.bf16.msra.mxu1 %v6064_v2  ;;  %1985 = vmatprep.subr.bf16.mxu0 %v5929_v3  ;;  %v5880_v2 = vcombine.low %v372_v50, %v376_v51  ;;  %v6008_v3 = vcombine.low %v500_v53, %v504_v54  ;;  %v6003_v5 = vcombine.high %v493_v0, %v497_v1  ;;  %v317_v51 = vld [vmem:[#allocation10 + $0x50] sm:$0xff] }
 0x15e   :  { %2026 = vmatprep.subr.bf16.mxu1 %v6057_v4  ;;  %v5875_v4 = vcombine.high %v365_v62, %v369_v63  ;;  %v321_v53 = vld [vmem:[#allocation10 + $0x70] sm:$0xff] }
 0x15f   :  { %v445_v54 = vld [vmem:[#allocation10 + $0x450] sm:$0xff] }
 0x160   :  { %1986 = vmatpush2.bf16.msra.mxu0 %v5928_v9  ;;  %v489_v9 = vld [vmem:[#allocation10 + $0x5b0] sm:$0xff] }
 0x161   :  { %2027 = vmatpush2.bf16.msra.mxu1 %v6056_v10  ;;  %1987 = vmatprep.subr.bf16.mxu0 %v5921_v11  ;;  %v5874_v10 = vcombine.low %v365_v62, %v369_v63  ;;  %v6002_v11 = vcombine.low %v493_v0, %v497_v1  ;;  %v5995_v13 = vcombine.high %v485_v8, %v489_v9  ;;  %v309_v63 = vld [vmem:[#allocation10 + $0x10] sm:$0xff] }
 0x162   :  { %2028 = vmatprep.subr.bf16.mxu1 %v6049_v12  ;;  %v5867_v12 = vcombine.high %v357_v6, %v361_v7  ;;  %v313_v0 = vld [vmem:[#allocation10 + $0x30] sm:$0xff] }
 0x163   :  { %v437_v1 = vld [vmem:[#allocation10 + $0x410] sm:$0xff] }
 0x164   :  { %1988 = vmatpush2.bf16.msra.mxu0 %v5920_v17  ;;  %v481_v17 = vld [vmem:[#allocation10 + $0x570] sm:$0xff] }
 0x165   :  { %2029 = vmatpush2.bf16.msra.mxu1 %v6048_v18  ;;  %1989 = vmatprep.subr.bf16.mxu0 %v5913_v19  ;;  %v5866_v18 = vcombine.low %v357_v6, %v361_v7  ;;  %v5994_v19 = vcombine.low %v485_v8, %v489_v9  ;;  %v5987_v21 = vcombine.high %v477_v16, %v481_v17  ;;  %v429_v7 = vld [vmem:[#allocation10 + $0x3d0] sm:$0xff] }
 0x166   :  { %2030 = vmatprep.subr.bf16.mxu1 %v6041_v20  ;;  %v5859_v20 = vcombine.high %v349_v14, %v353_v15  ;;  %v433_v8 = vld [vmem:[#allocation10 + $0x3f0] sm:$0xff] }
 0x167   :  { %v557_v9 = vld [vmem:[#allocation10 + $0x7d0] sm:$0xff] }
 0x168   :  { %1990 = vmatpush2.bf16.msra.mxu0 %v5912_v30  ;;  %v473_v30 = vld [vmem:[#allocation10 + $0x530] sm:$0xff] }
 0x169   :  { %2031 = vmatpush2.bf16.msra.mxu1 %v6040_v31  ;;  %1991 = vmatprep.subr.bf16.mxu0 %v5905_v32  ;;  %v5858_v31 = vcombine.low %v349_v14, %v353_v15  ;;  %v5986_v32 = vcombine.low %v477_v16, %v481_v17  ;;  %v5979_v34 = vcombine.high %v469_v25, %v473_v30  ;;  %v421_v15 = vld [vmem:[#allocation10 + $0x390] sm:$0xff] }
 0x16a   :  { %2032 = vmatprep.subr.bf16.mxu1 %v6033_v33  ;;  %v5851_v33 = vcombine.high %v341_v22, %v345_v23  ;;  %v425_v16 = vld [vmem:[#allocation10 + $0x3b0] sm:$0xff] }
 0x16b   :  { %v549_v17 = vld [vmem:[#allocation10 + $0x790] sm:$0xff] }
 0x16c   :  { %1992 = vmatpush2.bf16.msra.mxu0 %v5904_v38  ;;  %v465_v38 = vld [vmem:[#allocation10 + $0x4f0] sm:$0xff] }
 0x16d   :  { %2033 = vmatpush2.bf16.msra.mxu1 %v6032_v39  ;;  %1993 = vmatprep.subr.bf16.mxu0 %v5897_v40  ;;  %v5850_v39 = vcombine.low %v341_v22, %v345_v23  ;;  %v5978_v40 = vcombine.low %v469_v25, %v473_v30  ;;  %v5971_v42 = vcombine.high %v461_v37, %v465_v38  ;;  %v413_v23 = vld [vmem:[#allocation10 + $0x350] sm:$0xff] }
 0x16e   :  { %2034 = vmatprep.subr.bf16.mxu1 %v6025_v41  ;;  %v5843_v41 = vcombine.high %v333_v35, %v337_v36  ;;  %v417_v25 = vld [vmem:[#allocation10 + $0x370] sm:$0xff] }
 0x16f   :  { %v541_v30 = vld [vmem:[#allocation10 + $0x750] sm:$0xff] }
 0x170   :  { %1994 = vmatpush2.bf16.msra.mxu0 %v5896_v46  ;;  %v457_v46 = vld [vmem:[#allocation10 + $0x4b0] sm:$0xff] }
 0x171   :  { %2035 = vmatpush2.bf16.msra.mxu1 %v6024_v47  ;;  %1995 = vmatprep.subr.bf16.mxu0 %v5889_v48  ;;  %v5842_v47 = vcombine.low %v333_v35, %v337_v36  ;;  %v5970_v48 = vcombine.low %v461_v37, %v465_v38  ;;  %v5963_v50 = vcombine.high %v453_v45, %v457_v46  ;;  %v405_v36 = vld [vmem:[#allocation10 + $0x310] sm:$0xff] }
 0x172   :  { %2036 = vmatprep.subr.bf16.mxu1 %v6017_v49  ;;  %v5835_v49 = vcombine.high %v325_v43, %v329_v44  ;;  %v409_v37 = vld [vmem:[#allocation10 + $0x330] sm:$0xff] }
 0x173   :  { %v533_v38 = vld [vmem:[#allocation10 + $0x710] sm:$0xff] }
 0x174   :  { %1996 = vmatpush2.bf16.msra.mxu0 %v5888_v58  ;;  %v449_v58 = vld [vmem:[#allocation10 + $0x470] sm:$0xff] }
 0x175   :  { %2037 = vmatpush2.bf16.msra.mxu1 %v6016_v59  ;;  %1997 = vmatprep.subr.bf16.mxu0 %v5881_v60  ;;  %v5834_v59 = vcombine.low %v325_v43, %v329_v44  ;;  %v5962_v60 = vcombine.low %v453_v45, %v457_v46  ;;  %v5955_v62 = vcombine.high %v445_v54, %v449_v58  ;;  %v397_v44 = vld [vmem:[#allocation10 + $0x2d0] sm:$0xff] }
 0x176   :  { %2038 = vmatprep.subr.bf16.mxu1 %v6009_v61  ;;  %v5827_v61 = vcombine.high %v317_v51, %v321_v53  ;;  %v401_v45 = vld [vmem:[#allocation10 + $0x2f0] sm:$0xff] }
 0x177   :  { %v525_v46 = vld [vmem:[#allocation10 + $0x6d0] sm:$0xff] }
 0x178   :  { %1998 = vmatpush2.bf16.msra.mxu0 %v5880_v2  ;;  %v441_v2 = vld [vmem:[#allocation10 + $0x430] sm:$0xff] }
 0x179   :  { %2039 = vmatpush2.bf16.msra.mxu1 %v6008_v3  ;;  %2049 = vmatprep.subr.bf16.mxu0 %v5875_v4  ;;  %v5826_v3 = vcombine.low %v317_v51, %v321_v53  ;;  %v5954_v4 = vcombine.low %v445_v54, %v449_v58  ;;  %v5947_v6 = vcombine.high %v437_v1, %v441_v2  ;;  %v389_v53 = vld [vmem:[#allocation10 + $0x290] sm:$0xff] }
 0x17a   :  { %2090 = vmatprep.subr.bf16.mxu1 %v6003_v5  ;;  %v5819_v5 = vcombine.high %v309_v63, %v313_v0  ;;  %v393_v54 = vld [vmem:[#allocation10 + $0x2b0] sm:$0xff] }
 0x17b   :  { %2000 = vmatmul.mubr.bf16.vlgmr.msra.gmra.mxu0 %v7611_v57  ;;  %v517_v58 = vld [vmem:[#allocation10 + $0x690] sm:$0xff] }
 0x17c   :  { %2041 = vmatmul.mubr.bf16.vlgmr.msra.gmra.mxu1 %v7605_v52  ;;  %2050 = vmatpush1.bf16.msra.mxu0 %v5874_v10  ;;  %v561_v10 = vld [vmem:[#allocation10 + $0x7f0] sm:$0xff] }
 0x17d   :  { %2081 = vmatprep.mubr.bf16.mxu0 %v7607_v55  ;;  %2091 = vmatpush1.bf16.msra.mxu1 %v6002_v11  ;;  %v5818_v11 = vcombine.low %v309_v63, %v313_v0  ;;  %v6067_v14 = vcombine.high %v557_v9, %v561_v10  ;;  %v381_v0 = vld [vmem:[#allocation10 + $0x250] sm:$0xff] }
 0x17e   :  { %2122 = vmatprep.mubr.bf16.mxu1 %v7609_v56  ;;  %2051 = vmatprep.subr.bf16.mxu0 %v5867_v12  ;;  %v5946_v12 = vcombine.low %v437_v1, %v441_v2  ;;  %v385_v1 = vld [vmem:[#allocation10 + $0x270] sm:$0xff] }
 0x17f   :  { %2092 = vmatprep.subr.bf16.mxu1 %v5995_v13  ;;  %v5939_v13 = vcombine.high %v429_v7, %v433_v8  ;;  %v509_v2 = vld [vmem:[#allocation10 + $0x650] sm:$0xff] }
 0x180   :  { %2052 = vmatpush1.bf16.msra.mxu0 %v5866_v18  ;;  %v553_v18 = vld [vmem:[#allocation10 + $0x7b0] sm:$0xff] }
 0x181   :  { %2093 = vmatpush1.bf16.msra.mxu1 %v5994_v19  ;;  %2053 = vmatprep.subr.bf16.mxu0 %v5859_v20  ;;  %v5938_v19 = vcombine.low %v429_v7, %v433_v8  ;;  %v6066_v20 = vcombine.low %v557_v9, %v561_v10  ;;  %v6059_v22 = vcombine.high %v549_v17, %v553_v18  ;;  %v373_v8 = vld [vmem:[#allocation10 + $0x210] sm:$0xff] }
 0x182   :  { %2094 = vmatprep.subr.bf16.mxu1 %v5987_v21  ;;  %v5931_v21 = vcombine.high %v421_v15, %v425_v16  ;;  %v377_v9 = vld [vmem:[#allocation10 + $0x230] sm:$0xff] }
 0x183   :  { %v501_v10 = vld [vmem:[#allocation10 + $0x610] sm:$0xff] }
 0x184   :  { %2054 = vmatpush1.bf16.msra.mxu0 %v5858_v31  ;;  %v545_v31 = vld [vmem:[#allocation10 + $0x770] sm:$0xff] }
 0x185   :  { %2095 = vmatpush1.bf16.msra.mxu1 %v5986_v32  ;;  %2055 = vmatprep.subr.bf16.mxu0 %v5851_v33  ;;  %v5930_v32 = vcombine.low %v421_v15, %v425_v16  ;;  %v6058_v33 = vcombine.low %v549_v17, %v553_v18  ;;  %v6051_v35 = vcombine.high %v541_v30, %v545_v31  ;;  %v366_v16 = vld [vmem:[#allocation10 + $0x1d8] sm:$0xff] }
 0x186   :  { %2096 = vmatprep.subr.bf16.mxu1 %v5979_v34  ;;  %v5923_v34 = vcombine.high %v413_v23, %v417_v25  ;;  %v370_v17 = vld [vmem:[#allocation10 + $0x1f8] sm:$0xff] }
 0x187   :  { %v494_v18 = vld [vmem:[#allocation10 + $0x5d8] sm:$0xff] }
 0x188   :  { %2056 = vmatpush1.bf16.msra.mxu0 %v5850_v39  ;;  %v537_v39 = vld [vmem:[#allocation10 + $0x730] sm:$0xff] }
 0x189   :  { %2097 = vmatpush1.bf16.msra.mxu1 %v5978_v40  ;;  %2057 = vmatprep.subr.bf16.mxu0 %v5843_v41  ;;  %v5922_v40 = vcombine.low %v413_v23, %v417_v25  ;;  %v6050_v41 = vcombine.low %v541_v30, %v545_v31  ;;  %v6043_v43 = vcombine.high %v533_v38, %v537_v39  ;;  %v358_v25 = vld [vmem:[#allocation10 + $0x198] sm:$0xff] }
 0x18a   :  { %2098 = vmatprep.subr.bf16.mxu1 %v5971_v42  ;;  %v5915_v42 = vcombine.high %v405_v36, %v409_v37  ;;  %v362_v30 = vld [vmem:[#allocation10 + $0x1b8] sm:$0xff]  ;;  %v5876_v31 = vcombine.low %v366_v16, %v370_v17 }
 0x18c   :  { %2058 = vmatpush1.bf16.msra.mxu0 %v5842_v47  ;;  %v529_v47 = vld [vmem:[#allocation10 + $0x6f0] sm:$0xff] }
 0x18d   :  { %2099 = vmatpush1.bf16.msra.mxu1 %v5970_v48  ;;  %2059 = vmatprep.subr.bf16.mxu0 %v5835_v49  ;;  %v5914_v48 = vcombine.low %v405_v36, %v409_v37  ;;  %v6042_v49 = vcombine.low %v533_v38, %v537_v39  ;;  %v6035_v51 = vcombine.high %v525_v46, %v529_v47  ;;  %v350_v36 = vld [vmem:[#allocation10 + $0x158] sm:$0xff] }
 0x18e   :  { %2100 = vmatprep.subr.bf16.mxu1 %v5963_v50  ;;  %v5907_v50 = vcombine.high %v397_v44, %v401_v45  ;;  %v354_v37 = vld [vmem:[#allocation10 + $0x178] sm:$0xff] }
 0x18f   :  { %v478_v39 = vld [vmem:[#allocation10 + $0x558] sm:$0xff] }
 0x190   :  { %2060 = vmatpush1.bf16.msra.mxu0 %v5834_v59  ;;  %v521_v59 = vld [vmem:[#allocation10 + $0x6b0] sm:$0xff] }
 0x191   :  { %2101 = vmatpush1.bf16.msra.mxu1 %v5962_v60  ;;  %2061 = vmatprep.subr.bf16.mxu0 %v5827_v61  ;;  %v5906_v60 = vcombine.low %v397_v44, %v401_v45  ;;  %v6034_v61 = vcombine.low %v525_v46, %v529_v47  ;;  %v6027_v63 = vcombine.high %v517_v58, %v521_v59  ;;  %v342_v45 = vld [vmem:[#allocation10 + $0x118] sm:$0xff] }
 0x192   :  { %2102 = vmatprep.subr.bf16.mxu1 %v5955_v62  ;;  %v5899_v62 = vcombine.high %v389_v53, %v393_v54  ;;  %v346_v46 = vld [vmem:[#allocation10 + $0x138] sm:$0xff] }
 0x193   :  { %v470_v47 = vld [vmem:[#allocation10 + $0x518] sm:$0xff] }
 0x194   :  { %2062 = vmatpush1.bf16.msra.mxu0 %v5826_v3  ;;  %v513_v3 = vld [vmem:[#allocation10 + $0x670] sm:$0xff] }
 0x195   :  { %2103 = vmatpush1.bf16.msra.mxu1 %v5954_v4  ;;  %2063 = vmatprep.subr.bf16.mxu0 %v5819_v5  ;;  %v5898_v4 = vcombine.low %v389_v53, %v393_v54  ;;  %v6026_v5 = vcombine.low %v517_v58, %v521_v59  ;;  %v6019_v7 = vcombine.high %v509_v2, %v513_v3  ;;  %v334_v53 = vld [vmem:[#allocation10 + $0xd8] sm:$0xff] }
 0x196   :  { %2104 = vmatprep.subr.bf16.mxu1 %v5947_v6  ;;  %v5891_v6 = vcombine.high %v381_v0, %v385_v1  ;;  %v338_v54 = vld [vmem:[#allocation10 + $0xf8] sm:$0xff] }
 0x197   :  { %v462_v58 = vld [vmem:[#allocation10 + $0x4d8] sm:$0xff] }
 0x198   :  { %2064 = vmatpush1.bf16.msra.mxu0 %v5818_v11  ;;  %v505_v11 = vld [vmem:[#allocation10 + $0x630] sm:$0xff]  ;;  %v466_v59 = vld [vmem:[#allocation10 + $0x4f8] sm:$0xff] }
 0x199   :  { %2105 = vmatpush1.bf16.msra.mxu1 %v5946_v12  ;;  %2065 = vmatprep.subr.bf16.mxu0 %v5939_v13  ;;  %v5890_v12 = vcombine.low %v381_v0, %v385_v1  ;;  %v6018_v13 = vcombine.low %v509_v2, %v513_v3  ;;  %v6011_v15 = vcombine.high %v501_v10, %v505_v11  ;;  %v330_v0 = vld [vmem:[#allocation10 + $0xb8] sm:$0xff] }
 0x19a   :  { %2106 = vmatprep.subr.bf16.mxu1 %v6067_v14  ;;  %v5883_v14 = vcombine.high %v373_v8, %v377_v9  ;;  %v454_v1 = vld [vmem:[#allocation10 + $0x498] sm:$0xff]  ;;  %v5844_v3 = vcombine.low %v334_v53, %v338_v54 }
 0x19b   :  { %v458_v2 = vld [vmem:[#allocation10 + $0x4b8] sm:$0xff] }
 0x19c   :  { %2066 = vmatpush2.bf16.msra.mxu0 %v5938_v19  ;;  %v498_v19 = vld [vmem:[#allocation10 + $0x5f8] sm:$0xff] }
 0x19d   :  { %2107 = vmatpush2.bf16.msra.mxu1 %v6066_v20  ;;  %2067 = vmatprep.subr.bf16.mxu0 %v5931_v21  ;;  %v5882_v20 = vcombine.low %v373_v8, %v377_v9  ;;  %v6010_v21 = vcombine.low %v501_v10, %v505_v11  ;;  %v6005_v23 = vcombine.high %v494_v18, %v498_v19  ;;  %v322_v8 = vld [vmem:[#allocation10 + $0x78] sm:$0xff] }
 0x19e   :  { %2108 = vmatprep.subr.bf16.mxu1 %v6059_v22  ;;  %v5877_v22 = vcombine.high %v366_v16, %v370_v17  ;;  %v446_v9 = vld [vmem:[#allocation10 + $0x458] sm:$0xff] }
 0x19f   :  { %v450_v10 = vld [vmem:[#allocation10 + $0x478] sm:$0xff] }
 0x1a0   :  { %2068 = vmatpush2.bf16.msra.mxu0 %v5930_v32  ;;  %v486_v32 = vld [vmem:[#allocation10 + $0x598] sm:$0xff] }
 0x1a1   :  { %2109 = vmatpush2.bf16.msra.mxu1 %v6058_v33  ;;  %2069 = vmatprep.subr.bf16.mxu0 %v5923_v34  ;;  %v490_v33 = vld [vmem:[#allocation10 + $0x5b8] sm:$0xff]  ;;  %v6004_v34 = vcombine.low %v494_v18, %v498_v19 }
 0x1a2   :  { %2110 = vmatprep.subr.bf16.mxu1 %v6051_v35  ;;  %v5869_v35 = vcombine.high %v358_v25, %v362_v30  ;;  %v5997_v38 = vcombine.high %v486_v32, %v490_v33  ;;  %v314_v16 = vld [vmem:[#allocation10 + $0x38] sm:$0xff] }
 0x1a3   :  { %v438_v17 = vld [vmem:[#allocation10 + $0x418] sm:$0xff] }
 0x1a4   :  { %2070 = vmatpush2.bf16.msra.mxu0 %v5922_v40  ;;  %v482_v40 = vld [vmem:[#allocation10 + $0x578] sm:$0xff] }
 0x1a5   :  { %2111 = vmatpush2.bf16.msra.mxu1 %v6050_v41  ;;  %2071 = vmatprep.subr.bf16.mxu0 %v5915_v42  ;;  %v5868_v41 = vcombine.low %v358_v25, %v362_v30  ;;  %v5996_v42 = vcombine.low %v486_v32, %v490_v33  ;;  %v5989_v44 = vcombine.high %v478_v39, %v482_v40  ;;  %v442_v18 = vld [vmem:[#allocation10 + $0x438] sm:$0xff] }
 0x1a6   :  { %2112 = vmatprep.subr.bf16.mxu1 %v6043_v43  ;;  %v5861_v43 = vcombine.high %v350_v36, %v354_v37  ;;  %v434_v25 = vld [vmem:[#allocation10 + $0x3f8] sm:$0xff]  ;;  %v5948_v33 = vcombine.low %v438_v17, %v442_v18 }
 0x1a7   :  { %v558_v30 = vld [vmem:[#allocation10 + $0x7d8] sm:$0xff] }
 0x1a8   :  { %2072 = vmatpush2.bf16.msra.mxu0 %v5914_v48  ;;  %v474_v48 = vld [vmem:[#allocation10 + $0x538] sm:$0xff] }
 0x1a9   :  { %2113 = vmatpush2.bf16.msra.mxu1 %v6042_v49  ;;  %2073 = vmatprep.subr.bf16.mxu0 %v5907_v50  ;;  %v5860_v49 = vcombine.low %v350_v36, %v354_v37  ;;  %v5988_v50 = vcombine.low %v478_v39, %v482_v40  ;;  %v422_v36 = vld [vmem:[#allocation10 + $0x398] sm:$0xff] }
 0x1aa   :  { %2114 = vmatprep.subr.bf16.mxu1 %v6035_v51  ;;  %v5853_v51 = vcombine.high %v342_v45, %v346_v46  ;;  %v426_v37 = vld [vmem:[#allocation10 + $0x3b8] sm:$0xff] }
 0x1ab   :  { %v554_v39 = vld [vmem:[#allocation10 + $0x7b8] sm:$0xff] }
 0x1ac   :  { %2074 = vmatpush2.bf16.msra.mxu0 %v5906_v60  ;;  %v5980_v60 = vcombine.low %v470_v47, %v474_v48 }
 0x1ad   :  { %2115 = vmatpush2.bf16.msra.mxu1 %v6034_v61  ;;  %2075 = vmatprep.subr.bf16.mxu0 %v5899_v62  ;;  %v5845_v61 = vcombine.high %v334_v53, %v338_v54  ;;  %v5973_v62 = vcombine.high %v462_v58, %v466_v59  ;;  %v410_v53 = vld [vmem:[#allocation10 + $0x338] sm:$0xff] }
 0x1ae   :  { %2116 = vmatprep.subr.bf16.mxu1 %v6027_v63  ;;  %v326_v63 = vld [vmem:[#allocation10 + $0x98] sm:$0xff] }
 0x1af   :  { %v5836_v11 = vcombine.low %v326_v63, %v330_v0  ;;  %v534_v54 = vld [vmem:[#allocation10 + $0x718] sm:$0xff] }
 0x1b0   :  { %2076 = vmatpush2.bf16.msra.mxu0 %v5898_v4  ;;  %v5972_v4 = vcombine.low %v462_v58, %v466_v59  ;;  %v538_v58 = vld [vmem:[#allocation10 + $0x738] sm:$0xff] }
 0x1b1   :  { %2117 = vmatpush2.bf16.msra.mxu1 %v6026_v5  ;;  %2077 = vmatprep.subr.bf16.mxu0 %v5891_v6  ;;  %v5837_v5 = vcombine.high %v326_v63, %v330_v0  ;;  %v5965_v6 = vcombine.high %v454_v1, %v458_v2  ;;  %v402_v63 = vld [vmem:[#allocation10 + $0x2f8] sm:$0xff] }
 0x1b2   :  { %2118 = vmatprep.subr.bf16.mxu1 %v6019_v7  ;;  %v318_v7 = vld [vmem:[#allocation10 + $0x58] sm:$0xff] }
 0x1b3   :  { %v5828_v19 = vcombine.low %v318_v7, %v322_v8  ;;  %v526_v0 = vld [vmem:[#allocation10 + $0x6d8] sm:$0xff] }
 0x1b4   :  { %2078 = vmatpush2.bf16.msra.mxu0 %v5890_v12  ;;  %v5964_v12 = vcombine.low %v454_v1, %v458_v2  ;;  %v530_v1 = vld [vmem:[#allocation10 + $0x6f8] sm:$0xff] }
 0x1b5   :  { %2119 = vmatpush2.bf16.msra.mxu1 %v6018_v13  ;;  %2079 = vmatprep.subr.bf16.mxu0 %v5883_v14  ;;  %v5829_v13 = vcombine.high %v318_v7, %v322_v8  ;;  %v5957_v14 = vcombine.high %v446_v9, %v450_v10  ;;  %v394_v7 = vld [vmem:[#allocation10 + $0x2b8] sm:$0xff] }
 0x1b6   :  { %2120 = vmatprep.subr.bf16.mxu1 %v6011_v15  ;;  %v310_v15 = vld [vmem:[#allocation10 + $0x18] sm:$0xff] }
 0x1b7   :  { %v5820_v32 = vcombine.low %v310_v15, %v314_v16  ;;  %v518_v8 = vld [vmem:[#allocation10 + $0x698] sm:$0xff] }
 0x1b8   :  { %2080 = vmatpush2.bf16.msra.mxu0 %v5882_v20  ;;  %v5956_v20 = vcombine.low %v446_v9, %v450_v10  ;;  %v522_v9 = vld [vmem:[#allocation10 + $0x6b8] sm:$0xff] }
 0x1b9   :  { %2121 = vmatpush2.bf16.msra.mxu1 %v6010_v21  ;;  %2131 = vmatprep.subr.bf16.mxu0 %v5877_v22  ;;  %v5821_v21 = vcombine.high %v310_v15, %v314_v16  ;;  %v5949_v22 = vcombine.high %v438_v17, %v442_v18  ;;  %v386_v15 = vld [vmem:[#allocation10 + $0x278] sm:$0xff] }
 0x1ba   :  { %2172 = vmatprep.subr.bf16.mxu1 %v6005_v23  ;;  %v430_v23 = vld [vmem:[#allocation10 + $0x3d8] sm:$0xff] }
 0x1bb   :  { %2082 = vmatmul.mubr.bf16.vlgmr.msra.gmra.mxu0 %v7611_v57  ;;  %v5940_v40 = vcombine.low %v430_v23, %v434_v25  ;;  %v510_v16 = vld [vmem:[#allocation10 + $0x658] sm:$0xff] }
 0x1bc   :  { %2123 = vmatmul.mubr.bf16.vlgmr.msra.gmra.mxu1 %v7605_v52  ;;  %2132 = vmatpush1.bf16.msra.mxu0 %v5876_v31  ;;  %v562_v31 = vld [vmem:[#allocation10 + $0x7f8] sm:$0xff] }
 0x1bd   :  { %2163 = vmatprep.mubr.bf16.mxu0 %v7607_v55  ;;  %2173 = vmatpush1.bf16.msra.mxu1 %v6004_v34  ;;  %v5981_v55 = vcombine.high %v470_v47, %v474_v48  ;;  %v5941_v34 = vcombine.high %v430_v23, %v434_v25  ;;  %v546_v47 = vld [vmem:[#allocation10 + $0x778] sm:$0xff]  ;;  %v5932_v48 = vcombine.low %v422_v36, %v426_v37 }
 0x1be   :  { %2204 = vmatprep.mubr.bf16.mxu1 %v7609_v56  ;;  %2133 = vmatprep.subr.bf16.mxu0 %v5869_v35  ;;  %v5852_v56 = vcombine.low %v342_v45, %v346_v46  ;;  %v6069_v35 = vcombine.high %v558_v30, %v562_v31  ;;  %v418_v45 = vld [vmem:[#allocation10 + $0x378] sm:$0xff] }
 0x1bf   :  { %2174 = vmatprep.subr.bf16.mxu1 %v5997_v38  ;;  %v550_v38 = vld [vmem:[#allocation10 + $0x798] sm:$0xff] }
 0x1c0   :  { %2134 = vmatpush1.bf16.msra.mxu0 %v5868_v41  ;;  %v6068_v41 = vcombine.low %v558_v30, %v562_v31  ;;  %v542_v46 = vld [vmem:[#allocation10 + $0x758] sm:$0xff] }
 0x1c1   :  { %2175 = vmatpush1.bf16.msra.mxu1 %v5996_v42  ;;  %2135 = vmatprep.subr.bf16.mxu0 %v5861_v43  ;;  %v5933_v42 = vcombine.high %v422_v36, %v426_v37  ;;  %v6061_v43 = vcombine.high %v550_v38, %v554_v39  ;;  %v514_v17 = vld [vmem:[#allocation10 + $0x678] sm:$0xff]  ;;  %v6643_v37 = vld [vmem:[#allocation13 + $0x18c] ss:$28 sps:$4 sm:$0xff]  }
 0x1c2   :  { %2176 = vmatprep.subr.bf16.mxu1 %v5989_v44  ;;  %v414_v44 = vld [vmem:[#allocation10 + $0x358] sm:$0xff] }
 0x1c3   :  { %v5924_v59 = vcombine.low %v414_v44, %v418_v45  ;;  %v378_v23 = vld [vmem:[#allocation10 + $0x238] sm:$0xff] }
 0x1c4   :  { %2136 = vmatpush1.bf16.msra.mxu0 %v5860_v49  ;;  %v6060_v49 = vcombine.low %v550_v38, %v554_v39  ;;  %v502_v25 = vld [vmem:[#allocation10 + $0x618] sm:$0xff]  ;;  %v6655_v38 = vld [vmem:[#allocation13 + $0x50c] ss:$28 sps:$4 sm:$0xff]  }
 0x1c5   :  { %2177 = vmatpush1.bf16.msra.mxu1 %v5988_v50  ;;  %2137 = vmatprep.subr.bf16.mxu0 %v5853_v51  ;;  %v5925_v50 = vcombine.high %v414_v44, %v418_v45  ;;  %v6053_v51 = vcombine.high %v542_v46, %v546_v47  ;;  %v506_v30 = vld [vmem:[#allocation10 + $0x638] sm:$0xff]  ;;  %v6641_v39 = vld [vmem:[#allocation13 + $0x188] ss:$28 sps:$4 sm:$0xff]  }
 0x1c6   :  { %2178 = vmatprep.subr.bf16.mxu1 %v5981_v55  ;;  %v406_v55 = vld [vmem:[#allocation10 + $0x318] sm:$0xff]  ;;  %v6012_v36 = vcombine.low %v502_v25, %v506_v30 }
 0x1c7   :  { %v5916_v2 = vcombine.low %v406_v55, %v410_v53  ;;  %v6661_v44 = vld [vmem:[#allocation13 + $0x4d4] ss:$28 sps:$4 sm:$0xff]  }
 0x1c8   :  { %2138 = vmatpush1.bf16.msra.mxu0 %v5852_v56  ;;  %v6052_v56 = vcombine.low %v542_v46, %v546_v47  ;;  %v6644_v47 = vld [vmem:[#allocation13 + $0x150] ss:$28 sps:$4 sm:$0xff]  }
 0x1c9   :  { %2179 = vmatpush1.bf16.msra.mxu1 %v5980_v60  ;;  %2139 = vmatprep.subr.bf16.mxu0 %v5845_v61  ;;  %v5917_v60 = vcombine.high %v406_v55, %v410_v53  ;;  %v6045_v61 = vcombine.high %v534_v54, %v538_v58  ;;  %v6667_v53 = vld [vmem:[#allocation13 + $0x49c] ss:$28 sps:$4 sm:$0xff]  }
 0x1ca   :  { %2180 = vmatprep.subr.bf16.mxu1 %v5973_v62  ;;  %v398_v62 = vld [vmem:[#allocation10 + $0x2d8] sm:$0xff] }
 0x1cb   :  { %v5908_v10 = vcombine.low %v398_v62, %v402_v63 }
 0x1cc   :  { %2140 = vmatpush1.bf16.msra.mxu0 %v5844_v3  ;;  %v6044_v3 = vcombine.low %v534_v54, %v538_v58 }
 0x1cd   :  { %2181 = vmatpush1.bf16.msra.mxu1 %v5972_v4  ;;  %2141 = vmatprep.subr.bf16.mxu0 %v5837_v5  ;;  %v5909_v4 = vcombine.high %v398_v62, %v402_v63  ;;  %v6037_v5 = vcombine.high %v526_v0, %v530_v1  ;;  %v6673_v63 = vld [vmem:[#allocation13 + $0x464] ss:$28 sps:$4 sm:$0xff]  }
 0x1ce   :  { %2182 = vmatprep.subr.bf16.mxu1 %v5965_v6  ;;  %v390_v6 = vld [vmem:[#allocation10 + $0x298] sm:$0xff] }
 0x1cf   :  { %v5900_v18 = vcombine.low %v390_v6, %v394_v7 }
 0x1d0   :  { %2142 = vmatpush1.bf16.msra.mxu0 %v5836_v11  ;;  %v6036_v11 = vcombine.low %v526_v0, %v530_v1  ;;  %v6650_v1 = vld [vmem:[#allocation13 + $0xe0] ss:$28 sps:$4 sm:$0xff]  }
 0x1d1   :  { %2183 = vmatpush1.bf16.msra.mxu1 %v5964_v12  ;;  %2143 = vmatprep.subr.bf16.mxu0 %v5829_v13  ;;  %v5901_v12 = vcombine.high %v390_v6, %v394_v7  ;;  %v6029_v13 = vcombine.high %v518_v8, %v522_v9  ;;  %v6664_v6 = vld [vmem:[#allocation13 + $0x74] ss:$28 sps:$4 sm:$0xff]   ;;  %v6677_v7 = vld [vmem:[#allocation13 + $0x428] ss:$28 sps:$4 sm:$0xff]  }
 0x1d2   :  { %2184 = vmatprep.subr.bf16.mxu1 %v5957_v14  ;;  %v382_v14 = vld [vmem:[#allocation10 + $0x258] sm:$0xff] }
 0x1d3   :  { %v5892_v31 = vcombine.low %v382_v14, %v386_v15 }
 0x1d4   :  { %2144 = vmatpush1.bf16.msra.mxu0 %v5828_v19  ;;  %v6028_v19 = vcombine.low %v518_v8, %v522_v9  ;;  %v6685_v8 = vld [vmem:[#allocation13 + $0x3f4] ss:$28 sps:$4 sm:$0xff]  }
 0x1d5   :  { %2185 = vmatpush1.bf16.msra.mxu1 %v5956_v20  ;;  %2145 = vmatprep.subr.bf16.mxu0 %v5821_v21  ;;  %v5893_v20 = vcombine.high %v382_v14, %v386_v15  ;;  %v6021_v21 = vcombine.high %v510_v16, %v514_v17  ;;  %v6662_v9 = vld [vmem:[#allocation13 + $0x70] ss:$28 sps:$4 sm:$0xff]   ;;  %v6676_v14 = vld [vmem:[#allocation13 + $0x4] ss:$28 sps:$4 sm:$0xff]   ;;  %v6689_v15 = vld [vmem:[#allocation13 + $0x3b8] ss:$28 sps:$4 sm:$0xff]  }
 0x1d6   :  { %2186 = vmatprep.subr.bf16.mxu1 %v5949_v22  ;;  %v374_v22 = vld [vmem:[#allocation10 + $0x218] sm:$0xff] }
 0x1d8   :  { %2146 = vmatpush1.bf16.msra.mxu0 %v5820_v32  ;;  %v6020_v32 = vcombine.low %v510_v16, %v514_v17  ;;  %v6697_v16 = vld [vmem:[#allocation13 + $0x384] ss:$28 sps:$4 sm:$0xff]  }
 0x1d9   :  { %2187 = vmatpush1.bf16.msra.mxu1 %v5948_v33  ;;  %2147 = vmatprep.subr.bf16.mxu0 %v5941_v34  ;;  %v5885_v33 = vcombine.high %v374_v22, %v378_v23  ;;  %v6013_v34 = vcombine.high %v502_v25, %v506_v30  ;;  %v6674_v17 = vld [vmem:[#allocation13] ss:$28 sps:$4 sm:$0xff]   ;;  %v6709_v25 = vld [vmem:[#allocation13 + $0x694] ss:$28 sps:$4 sm:$0xff]  }
 0x1da   :  { %2188 = vmatprep.subr.bf16.mxu1 %v6069_v35  ;;  %v5884_v35 = vcombine.low %v374_v22, %v378_v23  ;;  %v6688_v22 = vld [vmem:[#allocation13 + $0x314] ss:$28 sps:$4 sm:$0xff]   ;;  %v6701_v23 = vld [vmem:[#allocation13 + $0x6c8] ss:$28 sps:$4 sm:$0xff]  }
 0x1db   :  { %v6686_v30 = vld [vmem:[#allocation13 + $0x310] ss:$28 sps:$4 sm:$0xff]  }
 0x1dc   :  { %2148 = vmatpush2.bf16.msra.mxu0 %v5940_v40  ;;  %v7627_v40 = vld [vmem:[#allocation11] sm:$0xff] }
 0x1dd   :  { %2189 = vmatpush2.bf16.msra.mxu1 %v6068_v41  ;;  %2149 = vmatprep.subr.bf16.mxu0 %v5933_v42  ;;  %v6646_v41 = vld [vmem:[#allocation13 + $0x154] ss:$28 sps:$4 sm:$0xff]   ;;  %v6653_v42 = vld [vmem:[#allocation13 + $0x508] ss:$28 sps:$4 sm:$0xff]  }
 0x1de   :  { %2190 = vmatprep.subr.bf16.mxu1 %v6061_v43  ;;  %v572_v43 = vrot.slane %v7627_v40, %v7596_v28 }
 0x1e0   :  { %2150 = vmatpush2.bf16.msra.mxu0 %v5932_v48 }
 0x1e1   :  { %2191 = vmatpush2.bf16.msra.mxu1 %v6060_v49  ;;  %2151 = vmatprep.subr.bf16.mxu0 %v5925_v50  ;;  %v6649_v50 = vld [vmem:[#allocation13 + $0x11c] ss:$28 sps:$4 sm:$0xff]  }
 0x1e2   :  { %2192 = vmatprep.subr.bf16.mxu1 %v6053_v51  ;;  %v6659_v51 = vld [vmem:[#allocation13 + $0x4d0] ss:$28 sps:$4 sm:$0xff]  }
 0x1e4   :  { %2152 = vmatpush2.bf16.msra.mxu0 %v5924_v59  ;;  %v6647_v59 = vld [vmem:[#allocation13 + $0x118] ss:$28 sps:$4 sm:$0xff]  }
 0x1e5   :  { %2193 = vmatpush2.bf16.msra.mxu1 %v6052_v56  ;;  %2153 = vmatprep.subr.bf16.mxu0 %v5917_v60 }
 0x1e6   :  { %2194 = vmatprep.subr.bf16.mxu1 %v6045_v61  ;;  %v6665_v61 = vld [vmem:[#allocation13 + $0x498] ss:$28 sps:$4 sm:$0xff]  }
 0x1e8   :  { %2154 = vmatpush2.bf16.msra.mxu0 %v5916_v2  ;;  %v6658_v2 = vld [vmem:[#allocation13 + $0xac] ss:$28 sps:$4 sm:$0xff]  }
 0x1e9   :  { %2195 = vmatpush2.bf16.msra.mxu1 %v6044_v3  ;;  %2155 = vmatprep.subr.bf16.mxu0 %v5909_v4  ;;  %v6671_v3 = vld [vmem:[#allocation13 + $0x460] ss:$28 sps:$4 sm:$0xff]   ;;  %v6679_v4 = vld [vmem:[#allocation13 + $0x42c] ss:$28 sps:$4 sm:$0xff]  }
 0x1ea   :  { %2196 = vmatprep.subr.bf16.mxu1 %v6037_v5  ;;  %v6656_v5 = vld [vmem:[#allocation13 + $0xa8] ss:$28 sps:$4 sm:$0xff]  }
 0x1ec   :  { %2156 = vmatpush2.bf16.msra.mxu0 %v5908_v10  ;;  %v6670_v10 = vld [vmem:[#allocation13 + $0x3c] ss:$28 sps:$4 sm:$0xff]  }
 0x1ed   :  { %2197 = vmatpush2.bf16.msra.mxu1 %v6036_v11  ;;  %2157 = vmatprep.subr.bf16.mxu0 %v5901_v12  ;;  %v6683_v11 = vld [vmem:[#allocation13 + $0x3f0] ss:$28 sps:$4 sm:$0xff]   ;;  %v6691_v12 = vld [vmem:[#allocation13 + $0x3bc] ss:$28 sps:$4 sm:$0xff]  }
 0x1ee   :  { %2198 = vmatprep.subr.bf16.mxu1 %v6029_v13  ;;  %v6668_v13 = vld [vmem:[#allocation13 + $0x38] ss:$28 sps:$4 sm:$0xff]  }
 0x1f0   :  { %2158 = vmatpush2.bf16.msra.mxu0 %v5900_v18  ;;  %v6682_v18 = vld [vmem:[#allocation13 + $0x34c] ss:$28 sps:$4 sm:$0xff]  }
 0x1f1   :  { %2199 = vmatpush2.bf16.msra.mxu1 %v6028_v19  ;;  %2159 = vmatprep.subr.bf16.mxu0 %v5893_v20  ;;  %v6695_v19 = vld [vmem:[#allocation13 + $0x380] ss:$28 sps:$4 sm:$0xff]   ;;  %v6703_v20 = vld [vmem:[#allocation13 + $0x6cc] ss:$28 sps:$4 sm:$0xff]  }
 0x1f2   :  { %2200 = vmatprep.subr.bf16.mxu1 %v6021_v21  ;;  %v6680_v21 = vld [vmem:[#allocation13 + $0x348] ss:$28 sps:$4 sm:$0xff]  }
 0x1f4   :  { %2160 = vmatpush2.bf16.msra.mxu0 %v5892_v31  ;;  %v6694_v31 = vld [vmem:[#allocation13 + $0x2dc] ss:$28 sps:$4 sm:$0xff]  }
 0x1f5   :  { %2201 = vmatpush2.bf16.msra.mxu1 %v6020_v32  ;;  %2161 = vmatprep.subr.bf16.mxu0 %v5885_v33  ;;  %v6707_v32 = vld [vmem:[#allocation13 + $0x690] ss:$28 sps:$4 sm:$0xff]   ;;  %v6715_v33 = vld [vmem:[#allocation13 + $0x65c] ss:$28 sps:$4 sm:$0xff]  }
 0x1f6   :  { %2202 = vmatprep.subr.bf16.mxu1 %v6013_v34  ;;  %v6692_v34 = vld [vmem:[#allocation13 + $0x2d8] ss:$28 sps:$4 sm:$0xff]  }
 0x1f8   :  { %2162 = vmatpush2.bf16.msra.mxu0 %v5884_v35  ;;  %v6700_v35 = vld [vmem:[#allocation13 + $0x2a4] ss:$28 sps:$4 sm:$0xff]  }
 0x1f9   :  { %2203 = vmatpush2.bf16.msra.mxu1 %v6012_v36  ;;  %5082 = vmatprep.subr.bf16.mxu0 %v6643_v37  ;;  %v6713_v36 = vld [vmem:[#allocation13 + $0x658] ss:$28 sps:$4 sm:$0xff]   ;;  %v6721_v37 = vld [vmem:[#allocation13 + $0x624] ss:$28 sps:$4 sm:$0xff]  }
 0x1fa   :  { %5123 = vmatprep.subr.bf16.mxu1 %v6655_v38  ;;  %v6698_v38 = vld [vmem:[#allocation13 + $0x2a0] ss:$28 sps:$4 sm:$0xff]  }
 0x1fb   :  { %2164 = vmatmul.mubr.bf16.vlgmr.msra.gmra.mxu0 %v7611_v57  ;;  %v7632_v45 = vpop.f32.mrf.mxu0 }
 0x1fc   :  { %v7634_v46 = vpop.f32.mrf.mxu1  ;;  %2205 = vmatmul.mubr.bf16.vlgmr.msra.gmra.mxu1 %v7605_v52  ;;  %5083 = vmatpush1.bf16.msra.mxu0 %v6641_v39  ;;  %v6652_v52 = vld [vmem:[#allocation13 + $0xe4] ss:$28 sps:$4 sm:$0xff]   ;;  %v6706_v39 = vld [vmem:[#allocation13 + $0x26c] ss:$28 sps:$4 sm:$0xff]  }
 0x1fd   :  { %v1921_v48 = vpop.f32.mrf.mxu0  ;;  %5084 = vmatprep.subr.bf16.mxu0 %v6646_v41  ;;  %5124 = vmatpush1.bf16.msra.mxu1 %v6653_v42  ;;  %v6719_v41 = vld [vmem:[#allocation13 + $0x620] ss:$28 sps:$4 sm:$0xff]   ;;  %v6727_v42 = vld [vmem:[#allocation13 + $0x5ec] ss:$28 sps:$4 sm:$0xff]  }
 0x1fe   :  { %v1962_v49 = vpop.f32.mrf.mxu1  ;;  %v1922_v55 = vadd.f32 %v1921_v48, %v572_v43  ;;  %5125 = vmatprep.subr.bf16.mxu1 %v6661_v44  ;;  %v6704_v43 = vld [vmem:[#allocation13 + $0x268] ss:$28 sps:$4 sm:$0xff]   ;;  %v568_v44 = vrot.slane %v7627_v40, %v7590_v26 }
 0x1ff   :  { %v1923_v54 = vpop.f32.mrf.mxu0  ;;  %v6725_v48 = vld [vmem:[#allocation13 + $0x5e8] ss:$28 sps:$4 sm:$0xff]  }
 0x200   :  { %v1964_v58 = vpop.f32.mrf.mxu1  ;;  %v1963_v57 = vadd.f32 %v1962_v49, %v1922_v55  ;;  %5085 = vmatpush1.bf16.msra.mxu0 %v6644_v47  ;;  %v6712_v47 = vld [vmem:[#allocation13 + $0x234] ss:$28 sps:$4 sm:$0xff]   ;;  %v6718_v55 = vld [vmem:[#allocation13 + $0x1fc] ss:$28 sps:$4 sm:$0xff]  }
 0x201   :  { %v1924_v56 = vpop.f32.mrf.mxu0  ;;  %5086 = vmatprep.subr.bf16.mxu0 %v6649_v50  ;;  %5126 = vmatpush1.bf16.msra.mxu1 %v6659_v51  ;;  %v6730_v49 = vld [vmem:[#allocation13 + $0x5b4] ss:$28 sps:$4 sm:$0xff]   ;;  %v1920_v51 = vadd.f32 %v7632_v45, %v568_v44  ;;  %v6733_v54 = vld [vmem:[#allocation13 + $0x57c] ss:$28 sps:$4 sm:$0xff]  }
 0x202   :  { %v1965_v60 = vpop.f32.mrf.mxu1  ;;  %v2214_v62 = vmax.f32 %v1963_v57, 0.0  ;;  %5127 = vmatprep.subr.bf16.mxu1 %v6667_v53  ;;  %v6710_v50 = vld [vmem:[#allocation13 + $0x230] ss:$28 sps:$4 sm:$0xff]   ;;  %v6716_v58 = vld [vmem:[#allocation13 + $0x1f8] ss:$28 sps:$4 sm:$0xff]  }
 0x203   :  { %v6728_v53 = vld [vmem:[#allocation13 + $0x5b0] ss:$28 sps:$4 sm:$0xff]   ;;  %v1961_v57 = vadd.f32 %v7634_v46, %v1920_v51  ;;  %v6731_v56 = vld [vmem:[#allocation13 + $0x578] ss:$28 sps:$4 sm:$0xff]   ;;  %v6736_v60 = vld [vmem:[#allocation13 + $0x544] ss:$28 sps:$4 sm:$0xff]  }
 0x204   :  { %v7637_v0 = vpack.c.bf16 %v2214_v62, %v2214_v62  ;;  %5087 = vmatpush1.bf16.msra.mxu0 %v6647_v59  ;;  %v6724_v59 = vld [vmem:[#allocation13 + $0x1c4] ss:$28 sps:$4 sm:$0xff]   ;;  %v6739_v62 = vld [vmem:[#allocation13 + $0x88c] ss:$28 sps:$4 sm:$0xff]  }
 0x205   :  { %5088 = vmatprep.subr.bf16.mxu0 %v6652_v52  ;;  %5128 = vmatpush1.bf16.msra.mxu1 %v6665_v61  ;;  %v6722_v52 = vld [vmem:[#allocation13 + $0x1c0] ss:$28 sps:$4 sm:$0xff]   ;;  %v2213_v61 = vmax.f32 %v1961_v57, 0.0  ;;  %v6737_v46 = vld [vmem:[#allocation13 + $0x888] ss:$28 sps:$4 sm:$0xff]  }
 0x206   :  { %5114 = vmatprep.mubr.bf16.mxu0 %v7637_v0  ;;  %5129 = vmatprep.subr.bf16.mxu1 %v6673_v63  ;;  %v6734_v45 = vld [vmem:[#allocation13 + $0x540] ss:$28 sps:$4 sm:$0xff]   ;;  %v6787_v63 = vld [vmem:[#allocation13 + $0xc0c] ss:$28 sps:$4 sm:$0xff]  }
 0x207   :  { %v6803_v44 = vld [vmem:[#allocation13 + $0xb60] ss:$28 sps:$4 sm:$0xff]   ;;  %v6763_v51 = vld [vmem:[#allocation13 + $0xa4c] ss:$28 sps:$4 sm:$0xff]  }
 0x208   :  { %5089 = vmatpush1.bf16.msra.mxu0 %v6650_v1  ;;  %v576_v1 = vrot.slane %v7627_v40, %v7593_v27  ;;  %v6823_v57 = vld [vmem:[#allocation13 + $0xabc] ss:$28 sps:$4 sm:$0xff]  }
 0x209   :  { %5090 = vmatprep.subr.bf16.mxu0 %v6658_v2  ;;  %5130 = vmatpush1.bf16.msra.mxu1 %v6671_v3  ;;  %v7646_v2 = vpack.c.bf16 %v2213_v61, %v2213_v61  ;;  %v6742_v3 = vld [vmem:[#allocation13 + $0x854] ss:$28 sps:$4 sm:$0xff]  }
 0x20a   :  { %5131 = vmatprep.subr.bf16.mxu1 %v6679_v4  ;;  %v580_v4 = vrot.slane %v7627_v40, %v7599_v29  ;;  %v6767_v61 = vld [vmem:[#allocation13 + $0x9d8] ss:$28 sps:$4 sm:$0xff]  }
 0x20c   :  { %5091 = vmatpush1.bf16.msra.mxu0 %v6656_v5 }
 0x20d   :  { %5092 = vmatprep.subr.bf16.mxu0 %v6664_v6  ;;  %5132 = vmatpush1.bf16.msra.mxu1 %v6677_v7 }
 0x20e   :  { %5133 = vmatprep.subr.bf16.mxu1 %v6685_v8  ;;  %v6740_v8 = vld [vmem:[#allocation13 + $0x850] ss:$28 sps:$4 sm:$0xff]  }
 0x210   :  { %5093 = vmatpush1.bf16.msra.mxu0 %v6662_v9 }
 0x211   :  { %5094 = vmatprep.subr.bf16.mxu0 %v6670_v10  ;;  %5134 = vmatpush1.bf16.msra.mxu1 %v6683_v11  ;;  %v6745_v11 = vld [vmem:[#allocation13 + $0x81c] ss:$28 sps:$4 sm:$0xff]  }
 0x212   :  { %5135 = vmatprep.subr.bf16.mxu1 %v6691_v12 }
 0x214   :  { %5095 = vmatpush1.bf16.msra.mxu0 %v6668_v13 }
 0x215   :  { %5096 = vmatprep.subr.bf16.mxu0 %v6676_v14  ;;  %5136 = vmatpush1.bf16.msra.mxu1 %v6689_v15 }
 0x216   :  { %5137 = vmatprep.subr.bf16.mxu1 %v6697_v16 }
 0x218   :  { %5097 = vmatpush1.bf16.msra.mxu0 %v6674_v17  ;;  %v6743_v17 = vld [vmem:[#allocation13 + $0x818] ss:$28 sps:$4 sm:$0xff]  }
 0x219   :  { %5098 = vmatprep.subr.bf16.mxu0 %v6682_v18  ;;  %5138 = vmatpush1.bf16.msra.mxu1 %v6695_v19 }
 0x21a   :  { %5139 = vmatprep.subr.bf16.mxu1 %v6703_v20 }
 0x21c   :  { %5099 = vmatpush2.bf16.msra.mxu0 %v6680_v21  ;;  %v6748_v21 = vld [vmem:[#allocation13 + $0x7e4] ss:$28 sps:$4 sm:$0xff]  }
 0x21d   :  { %5100 = vmatprep.subr.bf16.mxu0 %v6688_v22  ;;  %5140 = vmatpush2.bf16.msra.mxu1 %v6701_v23 }
 0x21e   :  { %5141 = vmatprep.subr.bf16.mxu1 %v6709_v25  ;;  %v6746_v25 = vld [vmem:[#allocation13 + $0x7e0] ss:$28 sps:$4 sm:$0xff]  }
 0x220   :  { %5101 = vmatpush2.bf16.msra.mxu0 %v6686_v30  ;;  %v6785_v30 = vld [vmem:[#allocation13 + $0xc08] ss:$28 sps:$4 sm:$0xff]  }
 0x221   :  { %5102 = vmatprep.subr.bf16.mxu0 %v6694_v31  ;;  %5142 = vmatpush2.bf16.msra.mxu1 %v6707_v32  ;;  %v6751_v32 = vld [vmem:[#allocation13 + $0x7ac] ss:$28 sps:$4 sm:$0xff]  }
 0x222   :  { %5143 = vmatprep.subr.bf16.mxu1 %v6715_v33  ;;  %v6793_v33 = vld [vmem:[#allocation13 + $0xbd4] ss:$28 sps:$4 sm:$0xff]  }
 0x224   :  { %5103 = vmatpush2.bf16.msra.mxu0 %v6692_v34  ;;  %v6749_v34 = vld [vmem:[#allocation13 + $0x7a8] ss:$28 sps:$4 sm:$0xff]  }
 0x225   :  { %5104 = vmatprep.subr.bf16.mxu0 %v6700_v35  ;;  %5144 = vmatpush2.bf16.msra.mxu1 %v6713_v36  ;;  %v6791_v35 = vld [vmem:[#allocation13 + $0xbd0] ss:$28 sps:$4 sm:$0xff]  }
 0x226   :  { %5145 = vmatprep.subr.bf16.mxu1 %v6721_v37  ;;  %v6754_v36 = vld [vmem:[#allocation13 + $0x774] ss:$28 sps:$4 sm:$0xff]   ;;  %v6799_v37 = vld [vmem:[#allocation13 + $0xb9c] ss:$28 sps:$4 sm:$0xff]  }
 0x228   :  { %5105 = vmatpush2.bf16.msra.mxu0 %v6698_v38  ;;  %v6752_v38 = vld [vmem:[#allocation13 + $0x770] ss:$28 sps:$4 sm:$0xff]  }
 0x229   :  { %5106 = vmatprep.subr.bf16.mxu0 %v6706_v39  ;;  %5146 = vmatpush2.bf16.msra.mxu1 %v6719_v41  ;;  %v6797_v39 = vld [vmem:[#allocation13 + $0xb98] ss:$28 sps:$4 sm:$0xff]  }
 0x22a   :  { %5147 = vmatprep.subr.bf16.mxu1 %v6727_v42  ;;  %v6757_v41 = vld [vmem:[#allocation13 + $0x73c] ss:$28 sps:$4 sm:$0xff]   ;;  %v6805_v42 = vld [vmem:[#allocation13 + $0xb64] ss:$28 sps:$4 sm:$0xff]  }
 0x22c   :  { %5107 = vmatpush2.bf16.msra.mxu0 %v6704_v43  ;;  %v6755_v43 = vld [vmem:[#allocation13 + $0x738] ss:$28 sps:$4 sm:$0xff]  }
 0x22d   :  { %5108 = vmatprep.subr.bf16.mxu0 %v6712_v47  ;;  %5148 = vmatpush2.bf16.msra.mxu1 %v6725_v48  ;;  %v6760_v47 = vld [vmem:[#allocation13 + $0x704] ss:$28 sps:$4 sm:$0xff]   ;;  %v6811_v48 = vld [vmem:[#allocation13 + $0xb2c] ss:$28 sps:$4 sm:$0xff]  }
 0x22e   :  { %5149 = vmatprep.subr.bf16.mxu1 %v6730_v49  ;;  %v6758_v49 = vld [vmem:[#allocation13 + $0x700] ss:$28 sps:$4 sm:$0xff]  }
 0x230   :  { %5109 = vmatpush2.bf16.msra.mxu0 %v6710_v50  ;;  %v6809_v50 = vld [vmem:[#allocation13 + $0xb28] ss:$28 sps:$4 sm:$0xff]  }
 0x231   :  { %5110 = vmatprep.subr.bf16.mxu0 %v6718_v55  ;;  %5150 = vmatpush2.bf16.msra.mxu1 %v6728_v53  ;;  %v6817_v55 = vld [vmem:[#allocation13 + $0xaf4] ss:$28 sps:$4 sm:$0xff]   ;;  %v6761_v53 = vld [vmem:[#allocation13 + $0xa48] ss:$28 sps:$4 sm:$0xff]  }
 0x232   :  { %5151 = vmatprep.subr.bf16.mxu1 %v6733_v54  ;;  %v6815_v54 = vld [vmem:[#allocation13 + $0xaf0] ss:$28 sps:$4 sm:$0xff]  }
 0x234   :  { %5111 = vmatpush2.bf16.msra.mxu0 %v6716_v58  ;;  %v6766_v58 = vld [vmem:[#allocation13 + $0xa14] ss:$28 sps:$4 sm:$0xff]  }
 0x235   :  { %5112 = vmatprep.subr.bf16.mxu0 %v6724_v59  ;;  %5152 = vmatpush2.bf16.msra.mxu1 %v6731_v56  ;;  %v6764_v59 = vld [vmem:[#allocation13 + $0xa10] ss:$28 sps:$4 sm:$0xff]   ;;  %v6821_v56 = vld [vmem:[#allocation13 + $0xab8] ss:$28 sps:$4 sm:$0xff]  }
 0x236   :  { %5153 = vmatprep.subr.bf16.mxu1 %v6736_v60  ;;  %v6769_v60 = vld [vmem:[#allocation13 + $0x9dc] ss:$28 sps:$4 sm:$0xff]  }
 0x238   :  { %5113 = vmatpush2.bf16.msra.mxu0 %v6722_v52  ;;  %v6829_v52 = vld [vmem:[#allocation13 + $0xa84] ss:$28 sps:$4 sm:$0xff]  }
 0x239   :  { %5154 = vmatpush2.bf16.msra.mxu1 %v6734_v45  ;;  %5164 = vmatprep.subr.bf16.mxu0 %v6739_v62  ;;  %v6827_v45 = vld [vmem:[#allocation13 + $0xa80] ss:$28 sps:$4 sm:$0xff]  }
 0x23a   :  { %5205 = vmatprep.subr.bf16.mxu1 %v6787_v63  ;;  %v6772_v62 = vld [vmem:[#allocation13 + $0x9a4] ss:$28 sps:$4 sm:$0xff]   ;;  %v6835_v63 = vld [vmem:[#allocation13 + $0xdcc] ss:$28 sps:$4 sm:$0xff]  }
 0x23b   :  { %v2001_v5 = vpop.f32.mrf.mxu0  ;;  %5115 = vmatmul.mubr.bf16.vlgmr.msra.gmra.mxu0 %v7646_v2 }
 0x23c   :  { %v2042_v6 = vpop.f32.mrf.mxu1  ;;  %v2002_v7 = vadd.f32 %v2001_v5, %v576_v1  ;;  %5165 = vmatpush1.bf16.msra.mxu0 %v6737_v46  ;;  %v6770_v1 = vld [vmem:[#allocation13 + $0x9a0] ss:$28 sps:$4 sm:$0xff]   ;;  %v6833_v46 = vld [vmem:[#allocation13 + $0xdc8] ss:$28 sps:$4 sm:$0xff]  }
 0x23d   :  { %v2003_v9 = vpop.f32.mrf.mxu0  ;;  %5166 = vmatprep.subr.bf16.mxu0 %v6742_v3  ;;  %v6775_v3 = vld [vmem:[#allocation13 + $0x96c] ss:$28 sps:$4 sm:$0xff]  }
 0x23e   :  { %v2044_v10 = vpop.f32.mrf.mxu1  ;;  %v2043_v12 = vadd.f32 %v2042_v6, %v2002_v7  ;;  %v2004_v13 = vadd.f32 %v2003_v9, %v580_v4  ;;  %v6841_v4 = vld [vmem:[#allocation13 + $0xd94] ss:$28 sps:$4 sm:$0xff]   ;;  %v6773_v5 = vld [vmem:[#allocation13 + $0x968] ss:$28 sps:$4 sm:$0xff]  }
 0x23f   :  { %v2005_v14 = vpop.f32.mrf.mxu0  ;;  %v6839_v6 = vld [vmem:[#allocation13 + $0xd90] ss:$28 sps:$4 sm:$0xff]  }
 0x240   :  { %v2046_v15 = vpop.f32.mrf.mxu1  ;;  %v2045_v16 = vadd.f32 %v2044_v10, %v2004_v13  ;;  %5167 = vmatpush1.bf16.msra.mxu0 %v6740_v8  ;;  %v2215_v18 = vmax.f32 %v2043_v12, 0.0  ;;  %v6778_v7 = vld [vmem:[#allocation13 + $0x934] ss:$28 sps:$4 sm:$0xff]   ;;  %v6847_v8 = vld [vmem:[#allocation13 + $0xd5c] ss:$28 sps:$4 sm:$0xff]  }
 0x241   :  { %v2006_v19 = vpop.f32.mrf.mxu0  ;;  %5168 = vmatprep.subr.bf16.mxu0 %v6745_v11  ;;  %v6776_v9 = vld [vmem:[#allocation13 + $0x930] ss:$28 sps:$4 sm:$0xff]   ;;  %v6845_v10 = vld [vmem:[#allocation13 + $0xd58] ss:$28 sps:$4 sm:$0xff]   ;;  %v6853_v12 = vld [vmem:[#allocation13 + $0xd24] ss:$28 sps:$4 sm:$0xff]  }
 0x242   :  { %v2047_v20 = vpop.f32.mrf.mxu1  ;;  %v2216_v22 = vmax.f32 %v2045_v16, 0.0  ;;  %v7653_v31 = vpack.c.bf16 %v2215_v18, %v2215_v18  ;;  %v6781_v11 = vld [vmem:[#allocation13 + $0x8fc] ss:$28 sps:$4 sm:$0xff]   ;;  %v6784_v15 = vld [vmem:[#allocation13 + $0x8c4] ss:$28 sps:$4 sm:$0xff]  }
 0x243   :  { %v6779_v13 = vld [vmem:[#allocation13 + $0x8f8] ss:$28 sps:$4 sm:$0xff]   ;;  %v6851_v14 = vld [vmem:[#allocation13 + $0xd20] ss:$28 sps:$4 sm:$0xff]   ;;  %v6859_v16 = vld [vmem:[#allocation13 + $0xcec] ss:$28 sps:$4 sm:$0xff]  }
 0x244   :  { %v7651_v23 = vpack.c.bf16 %v2216_v22, %v2216_v22  ;;  %5169 = vmatpush1.bf16.msra.mxu0 %v6743_v17  ;;  %v583_v17 = vsub.s32 4, %v7587_v24  ;;  %v6782_v18 = vld [vmem:[#allocation13 + $0x8c0] ss:$28 sps:$4 sm:$0xff]   ;;  %v6857_v19 = vld [vmem:[#allocation13 + $0xce8] ss:$28 sps:$4 sm:$0xff]   ;;  %v587_v22 = vsub.s32 5, %v7587_v24 }
 0x245   :  { %5170 = vmatprep.subr.bf16.mxu0 %v6748_v21  ;;  %v6790_v20 = vld [vmem:[#allocation13 + $0x194] ss:$28 sps:$4 sm:$0xff]  }
 0x246   :  { %5155 = vmatprep.mubr.bf16.mxu1 %v7651_v23  ;;  %v6865_v21 = vld [vmem:[#allocation13 + $0xcb4] ss:$28 sps:$4 sm:$0xff]  }
 0x247   :  { %5156 = vmatmul.mubr.bf16.vlgmr.msra.gmra.mxu1 %v7653_v31 }
 0x248   :  { %5171 = vmatpush1.bf16.msra.mxu0 %v6746_v25  ;;  %5206 = vmatpush1.bf16.msra.mxu1 %v6785_v30  ;;  %v584_v25 = vrot.slane %v7627_v40, %v583_v17  ;;  %v6863_v30 = vld [vmem:[#allocation13 + $0xcb0] ss:$28 sps:$4 sm:$0xff]  }
 0x249   :  { %5172 = vmatprep.subr.bf16.mxu0 %v6751_v32  ;;  %5207 = vmatprep.subr.bf16.mxu1 %v6793_v33  ;;  %v6871_v32 = vld [vmem:[#allocation13 + $0xc7c] ss:$28 sps:$4 sm:$0xff]   ;;  %v588_v33 = vrot.slane %v7627_v40, %v587_v22 }
 0x24c   :  { %5173 = vmatpush1.bf16.msra.mxu0 %v6749_v34  ;;  %5208 = vmatpush1.bf16.msra.mxu1 %v6791_v35 }
 0x24d   :  { %5174 = vmatprep.subr.bf16.mxu0 %v6754_v36  ;;  %5209 = vmatprep.subr.bf16.mxu1 %v6799_v37  ;;  %v6869_v37 = vld [vmem:[#allocation13 + $0xc78] ss:$28 sps:$4 sm:$0xff]  }
 0x250   :  { %5175 = vmatpush1.bf16.msra.mxu0 %v6752_v38  ;;  %5210 = vmatpush1.bf16.msra.mxu1 %v6797_v39  ;;  %v6877_v39 = vld [vmem:[#allocation13 + $0xc44] ss:$28 sps:$4 sm:$0xff]  }
 0x251   :  { %5176 = vmatprep.subr.bf16.mxu0 %v6757_v41  ;;  %5211 = vmatprep.subr.bf16.mxu1 %v6805_v42 }
 0x254   :  { %5177 = vmatpush1.bf16.msra.mxu0 %v6755_v43  ;;  %5212 = vmatpush1.bf16.msra.mxu1 %v6803_v44 }
 0x255   :  { %5178 = vmatprep.subr.bf16.mxu0 %v6760_v47  ;;  %5213 = vmatprep.subr.bf16.mxu1 %v6811_v48 }
 0x258   :  { %5179 = vmatpush1.bf16.msra.mxu0 %v6758_v49  ;;  %5214 = vmatpush1.bf16.msra.mxu1 %v6809_v50  ;;  %v6875_v49 = vld [vmem:[#allocation13 + $0xc40] ss:$28 sps:$4 sm:$0xff]  }
 0x259   :  { %5180 = vmatprep.subr.bf16.mxu0 %v6763_v51  ;;  %5215 = vmatprep.subr.bf16.mxu1 %v6817_v55  ;;  %v6883_v55 = vld [vmem:[#allocation13 + $0x514] ss:$28 sps:$4 sm:$0xff]  }
 0x25c   :  { %5181 = vmatpush2.bf16.msra.mxu0 %v6761_v53  ;;  %5216 = vmatpush1.bf16.msra.mxu1 %v6815_v54 }
 0x25d   :  { %5182 = vmatprep.subr.bf16.mxu0 %v6766_v58  ;;  %5217 = vmatprep.subr.bf16.mxu1 %v6823_v57  ;;  %v6788_v57 = vld [vmem:[#allocation13 + $0x190] ss:$28 sps:$4 sm:$0xff]  }
 0x260   :  { %5183 = vmatpush2.bf16.msra.mxu0 %v6764_v59  ;;  %5218 = vmatpush1.bf16.msra.mxu1 %v6821_v56  ;;  %v6796_v56 = vld [vmem:[#allocation13 + $0x15c] ss:$28 sps:$4 sm:$0xff]  }
 0x261   :  { %5184 = vmatprep.subr.bf16.mxu0 %v6769_v60  ;;  %5219 = vmatprep.subr.bf16.mxu1 %v6829_v52  ;;  %v6794_v60 = vld [vmem:[#allocation13 + $0x158] ss:$28 sps:$4 sm:$0xff]   ;;  %v6802_v52 = vld [vmem:[#allocation13 + $0x124] ss:$28 sps:$4 sm:$0xff]  }
 0x264   :  { %5185 = vmatpush2.bf16.msra.mxu0 %v6767_v61  ;;  %5220 = vmatpush1.bf16.msra.mxu1 %v6827_v45  ;;  %v6800_v61 = vld [vmem:[#allocation13 + $0x120] ss:$28 sps:$4 sm:$0xff]   ;;  %v6808_v45 = vld [vmem:[#allocation13 + $0xec] ss:$28 sps:$4 sm:$0xff]  }
 0x265   :  { %5186 = vmatprep.subr.bf16.mxu0 %v6772_v62  ;;  %5221 = vmatprep.subr.bf16.mxu1 %v6835_v63  ;;  %v6806_v62 = vld [vmem:[#allocation13 + $0xe8] ss:$28 sps:$4 sm:$0xff]   ;;  %v6814_v63 = vld [vmem:[#allocation13 + $0xb4] ss:$28 sps:$4 sm:$0xff]  }
 0x268   :  { %5187 = vmatpush2.bf16.msra.mxu0 %v6770_v1  ;;  %5222 = vmatpush2.bf16.msra.mxu1 %v6833_v46  ;;  %v6812_v1 = vld [vmem:[#allocation13 + $0xb0] ss:$28 sps:$4 sm:$0xff]   ;;  %v6820_v46 = vld [vmem:[#allocation13 + $0x7c] ss:$28 sps:$4 sm:$0xff]  }
 0x269   :  { %5188 = vmatprep.subr.bf16.mxu0 %v6775_v3  ;;  %5223 = vmatprep.subr.bf16.mxu1 %v6841_v4  ;;  %v6818_v3 = vld [vmem:[#allocation13 + $0x78] ss:$28 sps:$4 sm:$0xff]   ;;  %v6826_v4 = vld [vmem:[#allocation13 + $0x44] ss:$28 sps:$4 sm:$0xff]  }
 0x26c   :  { %5189 = vmatpush2.bf16.msra.mxu0 %v6773_v5  ;;  %5224 = vmatpush2.bf16.msra.mxu1 %v6839_v6  ;;  %v6824_v5 = vld [vmem:[#allocation13 + $0x40] ss:$28 sps:$4 sm:$0xff]   ;;  %v6832_v6 = vld [vmem:[#allocation13 + $0xc] ss:$28 sps:$4 sm:$0xff]  }
 0x26d   :  { %5190 = vmatprep.subr.bf16.mxu0 %v6778_v7  ;;  %5225 = vmatprep.subr.bf16.mxu1 %v6847_v8  ;;  %v6830_v7 = vld [vmem:[#allocation13 + $0x8] ss:$28 sps:$4 sm:$0xff]   ;;  %v6838_v8 = vld [vmem:[#allocation13 + $0x354] ss:$28 sps:$4 sm:$0xff]  }
 0x270   :  { %5191 = vmatpush2.bf16.msra.mxu0 %v6776_v9  ;;  %5226 = vmatpush2.bf16.msra.mxu1 %v6845_v10  ;;  %v6836_v9 = vld [vmem:[#allocation13 + $0x350] ss:$28 sps:$4 sm:$0xff]   ;;  %v6844_v10 = vld [vmem:[#allocation13 + $0x31c] ss:$28 sps:$4 sm:$0xff]  }
 0x271   :  { %5192 = vmatprep.subr.bf16.mxu0 %v6781_v11  ;;  %5227 = vmatprep.subr.bf16.mxu1 %v6853_v12  ;;  %v6842_v11 = vld [vmem:[#allocation13 + $0x318] ss:$28 sps:$4 sm:$0xff]   ;;  %v6850_v12 = vld [vmem:[#allocation13 + $0x2e4] ss:$28 sps:$4 sm:$0xff]  }
 0x274   :  { %5193 = vmatpush2.bf16.msra.mxu0 %v6779_v13  ;;  %5228 = vmatpush2.bf16.msra.mxu1 %v6851_v14  ;;  %v6848_v13 = vld [vmem:[#allocation13 + $0x2e0] ss:$28 sps:$4 sm:$0xff]   ;;  %v6856_v14 = vld [vmem:[#allocation13 + $0x2ac] ss:$28 sps:$4 sm:$0xff]  }
 0x275   :  { %5194 = vmatprep.subr.bf16.mxu0 %v6784_v15  ;;  %5229 = vmatprep.subr.bf16.mxu1 %v6859_v16  ;;  %v6854_v15 = vld [vmem:[#allocation13 + $0x2a8] ss:$28 sps:$4 sm:$0xff]   ;;  %v6862_v16 = vld [vmem:[#allocation13 + $0x274] ss:$28 sps:$4 sm:$0xff]  }
 0x278   :  { %5195 = vmatpush2.bf16.msra.mxu0 %v6782_v18  ;;  %5230 = vmatpush2.bf16.msra.mxu1 %v6857_v19  ;;  %v6860_v18 = vld [vmem:[#allocation13 + $0x270] ss:$28 sps:$4 sm:$0xff]   ;;  %v591_v19 = vsub.s32 6, %v7587_v24 }
 0x279   :  { %5246 = vmatprep.subr.bf16.mxu0 %v6790_v20  ;;  %5231 = vmatprep.subr.bf16.mxu1 %v6865_v21  ;;  %v6868_v20 = vld [vmem:[#allocation13 + $0x23c] ss:$28 sps:$4 sm:$0xff]   ;;  %v595_v21 = vsub.s32 7, %v7587_v24 }
 0x27b   :  { %v2083_v34 = vpop.f32.mrf.mxu0 }
 0x27c   :  { %v2084_v35 = vadd.f32 %v2083_v34, %v584_v25  ;;  %v2124_v36 = vpop.f32.mrf.mxu1  ;;  %5232 = vmatpush2.bf16.msra.mxu1 %v6863_v30  ;;  %v6866_v25 = vld [vmem:[#allocation13 + $0x238] ss:$28 sps:$4 sm:$0xff]   ;;  %v592_v30 = vrot.slane %v7627_v40, %v591_v19 }
 0x27d   :  { %v2085_v38 = vpop.f32.mrf.mxu0  ;;  %5233 = vmatprep.subr.bf16.mxu1 %v6871_v32  ;;  %v6874_v32 = vld [vmem:[#allocation13 + $0x204] ss:$28 sps:$4 sm:$0xff]  }
 0x27e   :  { %v2125_v41 = vadd.f32 %v2124_v36, %v2084_v35  ;;  %v2086_v42 = vadd.f32 %v2085_v38, %v588_v33  ;;  %v2126_v43 = vpop.f32.mrf.mxu1  ;;  %v596_v33 = vrot.slane %v7627_v40, %v595_v21  ;;  %v6886_v40 = vld [vmem:[#allocation13 + $0x894] ss:$28 sps:$4 sm:$0xff]   ;;  %v6920_v21 = vld [vmem:[#allocation13 + $0x740] ss:$28 sps:$4 sm:$0xff]  }
 0x27f   :  { %v2087_v44 = vpop.f32.mrf.mxu0 }
 0x280   :  { %v2127_v47 = vadd.f32 %v2126_v43, %v2086_v42  ;;  %v2128_v48 = vpop.f32.mrf.mxu1  ;;  %5234 = vmatpush2.bf16.msra.mxu1 %v6869_v37  ;;  %v2217_v50 = vmax.f32 %v2125_v41, 0.0  ;;  %v6872_v37 = vld [vmem:[#allocation13 + $0x200] ss:$28 sps:$4 sm:$0xff]  }
 0x281   :  { %v2088_v51 = vpop.f32.mrf.mxu0  ;;  %5235 = vmatprep.subr.bf16.mxu1 %v6877_v39  ;;  %v6880_v39 = vld [vmem:[#allocation13 + $0x1cc] ss:$28 sps:$4 sm:$0xff]  }
 0x282   :  { %v2218_v53 = vmax.f32 %v2127_v47, 0.0  ;;  %v2129_v54 = vpop.f32.mrf.mxu1  ;;  %v7667_v59 = vpack.c.bf16 %v2217_v50, %v2217_v50 }
 0x284   :  { %v7665_v58 = vpack.c.bf16 %v2218_v53, %v2218_v53  ;;  %5236 = vmatpush2.bf16.msra.mxu1 %v6875_v49  ;;  %v6878_v49 = vld [vmem:[#allocation13 + $0x1c8] ss:$28 sps:$4 sm:$0xff]  }
 0x285   :  { %5287 = vmatprep.subr.bf16.mxu1 %v6883_v55 }
 0x286   :  { %5196 = vmatprep.mubr.bf16.mxu0 %v7665_v58 }
 0x287   :  { %5197 = vmatmul.mubr.bf16.vlgmr.msra.gmra.mxu0 %v7667_v59 }
 0x288   :  { %5247 = vmatpush1.bf16.msra.mxu0 %v6788_v57  ;;  %5278 = vmatprep.mubr.bf16.mxu0 %v7637_v0  ;;  %v6881_v57 = vld [vmem:[#allocation13 + $0x510] ss:$28 sps:$4 sm:$0xff]  }
 0x289   :  { %5248 = vmatprep.subr.bf16.mxu0 %v6796_v56  ;;  %v6884_v56 = vld [vmem:[#allocation13 + $0x890] ss:$28 sps:$4 sm:$0xff]  }
 0x28c   :  { %5249 = vmatpush1.bf16.msra.mxu0 %v6794_v60 }
 0x28d   :  { %5250 = vmatprep.subr.bf16.mxu0 %v6802_v52  ;;  %v6889_v52 = vld [vmem:[#allocation13 + $0x4dc] ss:$28 sps:$4 sm:$0xff]  }
 0x290   :  { %5251 = vmatpush1.bf16.msra.mxu0 %v6800_v61  ;;  %v6892_v61 = vld [vmem:[#allocation13 + $0x85c] ss:$28 sps:$4 sm:$0xff]  }
 0x291   :  { %5252 = vmatprep.subr.bf16.mxu0 %v6808_v45  ;;  %v6887_v45 = vld [vmem:[#allocation13 + $0x4d8] ss:$28 sps:$4 sm:$0xff]  }
 0x294   :  { %5253 = vmatpush1.bf16.msra.mxu0 %v6806_v62  ;;  %v6890_v62 = vld [vmem:[#allocation13 + $0x858] ss:$28 sps:$4 sm:$0xff]  }
 0x295   :  { %5254 = vmatprep.subr.bf16.mxu0 %v6814_v63  ;;  %v6895_v63 = vld [vmem:[#allocation13 + $0x4a4] ss:$28 sps:$4 sm:$0xff]  }
 0x298   :  { %5255 = vmatpush1.bf16.msra.mxu0 %v6812_v1  ;;  %v6898_v1 = vld [vmem:[#allocation13 + $0x824] ss:$28 sps:$4 sm:$0xff]  }
 0x299   :  { %5256 = vmatprep.subr.bf16.mxu0 %v6820_v46  ;;  %v6893_v46 = vld [vmem:[#allocation13 + $0x4a0] ss:$28 sps:$4 sm:$0xff]  }
 0x29c   :  { %5257 = vmatpush1.bf16.msra.mxu0 %v6818_v3  ;;  %v6896_v3 = vld [vmem:[#allocation13 + $0x820] ss:$28 sps:$4 sm:$0xff]  }
 0x29d   :  { %5258 = vmatprep.subr.bf16.mxu0 %v6826_v4  ;;  %v6901_v4 = vld [vmem:[#allocation13 + $0x46c] ss:$28 sps:$4 sm:$0xff]  }
 0x2a0   :  { %5259 = vmatpush1.bf16.msra.mxu0 %v6824_v5  ;;  %v6904_v5 = vld [vmem:[#allocation13 + $0x7ec] ss:$28 sps:$4 sm:$0xff]  }
 0x2a1   :  { %5260 = vmatprep.subr.bf16.mxu0 %v6832_v6  ;;  %v6899_v6 = vld [vmem:[#allocation13 + $0x468] ss:$28 sps:$4 sm:$0xff]  }
 0x2a4   :  { %5261 = vmatpush1.bf16.msra.mxu0 %v6830_v7  ;;  %v6902_v7 = vld [vmem:[#allocation13 + $0x7e8] ss:$28 sps:$4 sm:$0xff]  }
 0x2a5   :  { %5262 = vmatprep.subr.bf16.mxu0 %v6838_v8  ;;  %v6907_v8 = vld [vmem:[#allocation13 + $0x434] ss:$28 sps:$4 sm:$0xff]  }
 0x2a8   :  { %5263 = vmatpush2.bf16.msra.mxu0 %v6836_v9  ;;  %v6910_v9 = vld [vmem:[#allocation13 + $0x7b4] ss:$28 sps:$4 sm:$0xff]  }
 0x2a9   :  { %5264 = vmatprep.subr.bf16.mxu0 %v6844_v10  ;;  %v6905_v10 = vld [vmem:[#allocation13 + $0x430] ss:$28 sps:$4 sm:$0xff]  }
 0x2ac   :  { %5265 = vmatpush2.bf16.msra.mxu0 %v6842_v11  ;;  %v6908_v11 = vld [vmem:[#allocation13 + $0x7b0] ss:$28 sps:$4 sm:$0xff]  }
 0x2ad   :  { %5266 = vmatprep.subr.bf16.mxu0 %v6850_v12  ;;  %v6913_v12 = vld [vmem:[#allocation13 + $0x3fc] ss:$28 sps:$4 sm:$0xff]  }
 0x2b0   :  { %5267 = vmatpush2.bf16.msra.mxu0 %v6848_v13  ;;  %v6916_v13 = vld [vmem:[#allocation13 + $0x77c] ss:$28 sps:$4 sm:$0xff]  }
 0x2b1   :  { %5268 = vmatprep.subr.bf16.mxu0 %v6856_v14  ;;  %v6911_v14 = vld [vmem:[#allocation13 + $0x3f8] ss:$28 sps:$4 sm:$0xff]  }
 0x2b4   :  { %5269 = vmatpush2.bf16.msra.mxu0 %v6854_v15  ;;  %v6914_v15 = vld [vmem:[#allocation13 + $0x778] ss:$28 sps:$4 sm:$0xff]  }
 0x2b5   :  { %5270 = vmatprep.subr.bf16.mxu0 %v6862_v16  ;;  %v6919_v16 = vld [vmem:[#allocation13 + $0x3c4] ss:$28 sps:$4 sm:$0xff]  }
 0x2b8   :  { %5271 = vmatpush2.bf16.msra.mxu0 %v6860_v18  ;;  %v6922_v18 = vld [vmem:[#allocation13 + $0x744] ss:$28 sps:$4 sm:$0xff]  }
 0x2b9   :  { %5272 = vmatprep.subr.bf16.mxu0 %v6868_v20  ;;  %v6917_v20 = vld [vmem:[#allocation13 + $0x3c0] ss:$28 sps:$4 sm:$0xff]  }
 0x2bb   :  { %v2165_v34 = vpop.f32.mrf.mxu0 }
 0x2bc   :  { %v2166_v35 = vadd.f32 %v2165_v34, %v592_v30  ;;  %v2206_v36 = vpop.f32.mrf.mxu1  ;;  %5273 = vmatpush2.bf16.msra.mxu0 %v6866_v25  ;;  %v6925_v25 = vld [vmem:[#allocation13 + $0x38c] ss:$28 sps:$4 sm:$0xff]   ;;  %v6931_v34 = vld [vmem:[#allocation13 + $0x6d4] ss:$28 sps:$4 sm:$0xff]  }
 0x2bd   :  { %v2167_v38 = vpop.f32.mrf.mxu0  ;;  %5274 = vmatprep.subr.bf16.mxu0 %v6874_v32  ;;  %v6928_v30 = vld [vmem:[#allocation13 + $0x70c] ss:$28 sps:$4 sm:$0xff]  }
 0x2be   :  { %v2207_v41 = vadd.f32 %v2206_v36, %v2166_v35  ;;  %v2168_v42 = vadd.f32 %v2167_v38, %v596_v33  ;;  %v2208_v43 = vpop.f32.mrf.mxu1  ;;  %v6923_v32 = vld [vmem:[#allocation13 + $0x388] ss:$28 sps:$4 sm:$0xff]   ;;  %v6934_v35 = vld [vmem:[#allocation13 + $0xa54] ss:$28 sps:$4 sm:$0xff]   ;;  %v6937_v38 = vld [vmem:[#allocation13 + $0x69c] ss:$28 sps:$4 sm:$0xff]  }
 0x2bf   :  { %v2169_v44 = vpop.f32.mrf.mxu0  ;;  %v6926_v33 = vld [vmem:[#allocation13 + $0x708] ss:$28 sps:$4 sm:$0xff]   ;;  %v6929_v36 = vld [vmem:[#allocation13 + $0x6d0] ss:$28 sps:$4 sm:$0xff]  }
 0x2c0   :  { %v2209_v47 = vadd.f32 %v2208_v43, %v2168_v42  ;;  %v2210_v48 = vpop.f32.mrf.mxu1  ;;  %5275 = vmatpush2.bf16.msra.mxu0 %v6872_v37  ;;  %v2219_v50 = vmax.f32 %v2207_v41, 0.0  ;;  %v6932_v37 = vld [vmem:[#allocation13 + $0xa50] ss:$28 sps:$4 sm:$0xff]   ;;  %v6935_v41 = vld [vmem:[#allocation13 + $0x698] ss:$28 sps:$4 sm:$0xff]  }
 0x2c1   :  { %v2170_v51 = vpop.f32.mrf.mxu0  ;;  %5276 = vmatprep.subr.bf16.mxu0 %v6880_v39  ;;  %v6940_v39 = vld [vmem:[#allocation13 + $0xa1c] ss:$28 sps:$4 sm:$0xff]   ;;  %v6943_v43 = vld [vmem:[#allocation13 + $0x664] ss:$28 sps:$4 sm:$0xff]  }
 0x2c2   :  { %v2220_v55 = vmax.f32 %v2209_v47, 0.0  ;;  %v2211_v53 = vpop.f32.mrf.mxu1  ;;  %v7680_v60 = vpack.c.bf16 %v2219_v50, %v2219_v50  ;;  %v6938_v42 = vld [vmem:[#allocation13 + $0xa18] ss:$28 sps:$4 sm:$0xff]   ;;  %v6946_v44 = vld [vmem:[#allocation13 + $0x9e4] ss:$28 sps:$4 sm:$0xff]  }
 0x2c3   :  { %v6941_v47 = vld [vmem:[#allocation13 + $0x660] ss:$28 sps:$4 sm:$0xff]   ;;  %v6952_v50 = vld [vmem:[#allocation13 + $0x9ac] ss:$28 sps:$4 sm:$0xff]   ;;  %v6958_v53 = vld [vmem:[#allocation13 + $0x974] ss:$28 sps:$4 sm:$0xff]  }
 0x2c4   :  { %v7678_v54 = vpack.c.bf16 %v2220_v55, %v2220_v55  ;;  %5277 = vmatpush2.bf16.msra.mxu0 %v6878_v49  ;;  %v6944_v48 = vld [vmem:[#allocation13 + $0x9e0] ss:$28 sps:$4 sm:$0xff]   ;;  %v6949_v49 = vld [vmem:[#allocation13 + $0x62c] ss:$28 sps:$4 sm:$0xff]   ;;  %v6955_v55 = vld [vmem:[#allocation13 + $0x5f4] ss:$28 sps:$4 sm:$0xff]  }
 0x2c5   :  { %5328 = vmatprep.subr.bf16.mxu0 %v6886_v40  ;;  %v6947_v51 = vld [vmem:[#allocation13 + $0x628] ss:$28 sps:$4 sm:$0xff]  }
 0x2c6   :  { %5237 = vmatprep.mubr.bf16.mxu1 %v7678_v54  ;;  %v6950_v40 = vld [vmem:[#allocation13 + $0x9a8] ss:$28 sps:$4 sm:$0xff]  }
 0x2c7   :  { %5279 = vmatmul.mubr.bf16.vlgmr.msra.gmra.mxu0 %v7646_v2  ;;  %5238 = vmatmul.mubr.bf16.vlgmr.msra.gmra.mxu1 %v7680_v60 }
 0x2c8   :  { %5288 = vmatpush1.bf16.msra.mxu1 %v6881_v57  ;;  %5329 = vmatpush1.bf16.msra.mxu0 %v6884_v56  ;;  %v6953_v57 = vld [vmem:[#allocation13 + $0x5f0] ss:$28 sps:$4 sm:$0xff]  }
 0x2c9   :  { %5360 = vmatprep.mubr.bf16.mxu0 %v7665_v58  ;;  %5319 = vmatprep.mubr.bf16.mxu1 %v7651_v23  ;;  %v6956_v56 = vld [vmem:[#allocation13 + $0x970] ss:$28 sps:$4 sm:$0xff]  }
 0x2ca   :  { %5289 = vmatprep.subr.bf16.mxu1 %v6889_v52  ;;  %5330 = vmatprep.subr.bf16.mxu0 %v6892_v61  ;;  %v6961_v52 = vld [vmem:[#allocation13 + $0x5bc] ss:$28 sps:$4 sm:$0xff]  }
 0x2cb   :  { %v6964_v61 = vld [vmem:[#allocation13 + $0x93c] ss:$28 sps:$4 sm:$0xff]  }
 0x2cc   :  { %5290 = vmatpush1.bf16.msra.mxu1 %v6887_v45  ;;  %5331 = vmatpush1.bf16.msra.mxu0 %v6890_v62  ;;  %v6959_v45 = vld [vmem:[#allocation13 + $0x5b8] ss:$28 sps:$4 sm:$0xff]  }
 0x2cd   :  { %5291 = vmatprep.subr.bf16.mxu1 %v6895_v63  ;;  %5332 = vmatprep.subr.bf16.mxu0 %v6898_v1  ;;  %v6962_v62 = vld [vmem:[#allocation13 + $0x938] ss:$28 sps:$4 sm:$0xff]   ;;  %v6967_v63 = vld [vmem:[#allocation13 + $0x584] ss:$28 sps:$4 sm:$0xff]  }
 0x2ce   :  { %v6970_v1 = vld [vmem:[#allocation13 + $0x904] ss:$28 sps:$4 sm:$0xff]  }
 0x2d0   :  { %5292 = vmatpush1.bf16.msra.mxu1 %v6893_v46  ;;  %5333 = vmatpush1.bf16.msra.mxu0 %v6896_v3  ;;  %v6965_v3 = vld [vmem:[#allocation13 + $0x580] ss:$28 sps:$4 sm:$0xff]  }
 0x2d1   :  { %5293 = vmatprep.subr.bf16.mxu1 %v6901_v4  ;;  %5334 = vmatprep.subr.bf16.mxu0 %v6904_v5  ;;  %v6968_v4 = vld [vmem:[#allocation13 + $0x900] ss:$28 sps:$4 sm:$0xff]  }
 0x2d4   :  { %5294 = vmatpush1.bf16.msra.mxu1 %v6899_v6  ;;  %5335 = vmatpush1.bf16.msra.mxu0 %v6902_v7  ;;  %v6973_v6 = vld [vmem:[#allocation13 + $0x54c] ss:$28 sps:$4 sm:$0xff]  }
 0x2d5   :  { %5295 = vmatprep.subr.bf16.mxu1 %v6907_v8  ;;  %5336 = vmatprep.subr.bf16.mxu0 %v6910_v9  ;;  %v6976_v7 = vld [vmem:[#allocation13 + $0x8cc] ss:$28 sps:$4 sm:$0xff]   ;;  %v2741_v8 = vld [vmem:[#allocation14] sm:$0xff] }
 0x2d8   :  { %5296 = vmatpush1.bf16.msra.mxu1 %v6905_v10  ;;  %5337 = vmatpush1.bf16.msra.mxu0 %v6908_v11  ;;  %v6971_v10 = vld [vmem:[#allocation13 + $0x548] ss:$28 sps:$4 sm:$0xff]  }
 0x2d9   :  { %5297 = vmatprep.subr.bf16.mxu1 %v6913_v12  ;;  %5338 = vmatprep.subr.bf16.mxu0 %v6916_v13  ;;  %v6974_v11 = vld [vmem:[#allocation13 + $0x8c8] ss:$28 sps:$4 sm:$0xff]   ;;  %v6979_v13 = vld [vmem:[#allocation13 + $0xc14] ss:$28 sps:$4 sm:$0xff]  }
 0x2dc   :  { %5298 = vmatpush1.bf16.msra.mxu1 %v6911_v14  ;;  %5339 = vmatpush1.bf16.msra.mxu0 %v6914_v15  ;;  %v6982_v14 = vld [vmem:[#allocation13 + $0x19c] ss:$28 sps:$4 sm:$0xff]   ;;  %v2746_v15 = vrot.slane %v2741_v8, %v7590_v26 }
 0x2dd   :  { %5299 = vmatprep.subr.bf16.mxu1 %v6919_v16  ;;  %5340 = vmatprep.subr.bf16.mxu0 %v6922_v18  ;;  %v2750_v16 = vrot.slane %v2741_v8, %v7596_v28  ;;  %v6977_v18 = vld [vmem:[#allocation13 + $0xc10] ss:$28 sps:$4 sm:$0xff]   ;;  %v6983_v26 = vld [vmem:[#allocation13 + $0xbd8] ss:$28 sps:$4 sm:$0xff]  }
 0x2de   :  { %v7028_v8 = vld [vmem:[#allocation13 + $0x358] ss:$28 sps:$4 sm:$0xff]  }
 0x2e0   :  { %5300 = vmatpush1.bf16.msra.mxu1 %v6917_v20  ;;  %5341 = vmatpush1.bf16.msra.mxu0 %v6920_v21  ;;  %v6980_v20 = vld [vmem:[#allocation13 + $0x198] ss:$28 sps:$4 sm:$0xff]  }
 0x2e1   :  { %5301 = vmatprep.subr.bf16.mxu1 %v6925_v25  ;;  %5342 = vmatprep.subr.bf16.mxu0 %v6928_v30  ;;  %v6985_v25 = vld [vmem:[#allocation13 + $0xbdc] ss:$28 sps:$4 sm:$0xff]   ;;  %v6988_v30 = vld [vmem:[#allocation13 + $0x164] ss:$28 sps:$4 sm:$0xff]  }
 0x2e4   :  { %5302 = vmatpush1.bf16.msra.mxu1 %v6923_v32  ;;  %5343 = vmatpush1.bf16.msra.mxu0 %v6926_v33 }
 0x2e5   :  { %5303 = vmatprep.subr.bf16.mxu1 %v6931_v34  ;;  %5344 = vmatprep.subr.bf16.mxu0 %v6934_v35  ;;  %v6986_v35 = vld [vmem:[#allocation13 + $0x160] ss:$28 sps:$4 sm:$0xff]  }
 0x2e8   :  { %5304 = vmatpush2.bf16.msra.mxu1 %v6929_v36  ;;  %5345 = vmatpush2.bf16.msra.mxu0 %v6932_v37  ;;  %v6991_v36 = vld [vmem:[#allocation13 + $0xba4] ss:$28 sps:$4 sm:$0xff]  }
 0x2e9   :  { %5305 = vmatprep.subr.bf16.mxu1 %v6937_v38  ;;  %5346 = vmatprep.subr.bf16.mxu0 %v6940_v39  ;;  %v6994_v38 = vld [vmem:[#allocation13 + $0x12c] ss:$28 sps:$4 sm:$0xff]  }
 0x2ec   :  { %5306 = vmatpush2.bf16.msra.mxu1 %v6935_v41  ;;  %5347 = vmatpush2.bf16.msra.mxu0 %v6938_v42  ;;  %v6989_v41 = vld [vmem:[#allocation13 + $0xba0] ss:$28 sps:$4 sm:$0xff]  }
 0x2ed   :  { %5307 = vmatprep.subr.bf16.mxu1 %v6943_v43  ;;  %5348 = vmatprep.subr.bf16.mxu0 %v6946_v44  ;;  %v6992_v43 = vld [vmem:[#allocation13 + $0x128] ss:$28 sps:$4 sm:$0xff]  }
 0x2ee   :  { %v6997_v44 = vld [vmem:[#allocation13 + $0xb6c] ss:$28 sps:$4 sm:$0xff]  }
 0x2f0   :  { %5308 = vmatpush2.bf16.msra.mxu1 %v6941_v47  ;;  %5349 = vmatpush2.bf16.msra.mxu0 %v6944_v48  ;;  %v7000_v47 = vld [vmem:[#allocation13 + $0xf4] ss:$28 sps:$4 sm:$0xff]   ;;  %v6995_v48 = vld [vmem:[#allocation13 + $0xb68] ss:$28 sps:$4 sm:$0xff]  }
 0x2f1   :  { %5309 = vmatprep.subr.bf16.mxu1 %v6949_v49  ;;  %5350 = vmatprep.subr.bf16.mxu0 %v6952_v50  ;;  %v6998_v49 = vld [vmem:[#allocation13 + $0xf0] ss:$28 sps:$4 sm:$0xff]  }
 0x2f2   :  { %v7003_v50 = vld [vmem:[#allocation13 + $0xb34] ss:$28 sps:$4 sm:$0xff]  }
 0x2f4   :  { %5310 = vmatpush2.bf16.msra.mxu1 %v6947_v51  ;;  %5351 = vmatpush2.bf16.msra.mxu0 %v6950_v40  ;;  %v7006_v51 = vld [vmem:[#allocation13 + $0xbc] ss:$28 sps:$4 sm:$0xff]   ;;  %v7001_v40 = vld [vmem:[#allocation13 + $0xb30] ss:$28 sps:$4 sm:$0xff]  }
 0x2f5   :  { %5311 = vmatprep.subr.bf16.mxu1 %v6955_v55  ;;  %5352 = vmatprep.subr.bf16.mxu0 %v6958_v53  ;;  %v7004_v55 = vld [vmem:[#allocation13 + $0xb8] ss:$28 sps:$4 sm:$0xff]  }
 0x2f6   :  { %v7009_v53 = vld [vmem:[#allocation13 + $0xafc] ss:$28 sps:$4 sm:$0xff]  }
 0x2f8   :  { %5312 = vmatpush2.bf16.msra.mxu1 %v6953_v57  ;;  %5353 = vmatpush2.bf16.msra.mxu0 %v6956_v56  ;;  %v7012_v57 = vld [vmem:[#allocation13 + $0x84] ss:$28 sps:$4 sm:$0xff]   ;;  %v7007_v56 = vld [vmem:[#allocation13 + $0xaf8] ss:$28 sps:$4 sm:$0xff]  }
 0x2f9   :  { %5313 = vmatprep.subr.bf16.mxu1 %v6961_v52  ;;  %5354 = vmatprep.subr.bf16.mxu0 %v6964_v61  ;;  %v7010_v52 = vld [vmem:[#allocation13 + $0x80] ss:$28 sps:$4 sm:$0xff]  }
 0x2fa   :  { %v7015_v61 = vld [vmem:[#allocation13 + $0xac4] ss:$28 sps:$4 sm:$0xff]  }
 0x2fb   :  { %v5116_v46 = vpop.f32.mrf.mxu0 }
 0x2fc   :  { %5314 = vmatpush2.bf16.msra.mxu1 %v6959_v45  ;;  %5355 = vmatpush2.bf16.msra.mxu0 %v6962_v62  ;;  %v5117_v21 = vadd.f32 %v5116_v46, %v2746_v15  ;;  %v7018_v45 = vld [vmem:[#allocation13 + $0x4c] ss:$28 sps:$4 sm:$0xff]   ;;  %v7013_v62 = vld [vmem:[#allocation13 + $0xac0] ss:$28 sps:$4 sm:$0xff]   ;;  %v7024_v46 = vld [vmem:[#allocation13 + $0x14] ss:$28 sps:$4 sm:$0xff]  }
 0x2fd   :  { %v5118_v5 = vpop.f32.mrf.mxu0  ;;  %5315 = vmatprep.subr.bf16.mxu1 %v6967_v63  ;;  %5356 = vmatprep.subr.bf16.mxu0 %v6970_v1  ;;  %v7016_v63 = vld [vmem:[#allocation13 + $0x48] ss:$28 sps:$4 sm:$0xff]   ;;  %v7037_v15 = vld [vmem:[#allocation13 + $0xd60] ss:$28 sps:$4 sm:$0xff]  }
 0x2fe   :  { %v5119_v33 = vadd.f32 %v5118_v5, %v2750_v16  ;;  %v7021_v1 = vld [vmem:[#allocation13 + $0xa8c] ss:$28 sps:$4 sm:$0xff]   ;;  %v7027_v5 = vld [vmem:[#allocation13 + $0xdd4] ss:$28 sps:$4 sm:$0xff]  }
 0x2ff   :  { %v5120_v9 = vpop.f32.mrf.mxu0  ;;  %v7040_v16 = vld [vmem:[#allocation13 + $0x2e8] ss:$28 sps:$4 sm:$0xff]  }
 0x300   :  { %5316 = vmatpush2.bf16.msra.mxu1 %v6965_v3  ;;  %5357 = vmatpush2.bf16.msra.mxu0 %v6968_v4  ;;  %v7019_v3 = vld [vmem:[#allocation13 + $0xa88] ss:$28 sps:$4 sm:$0xff]   ;;  %v7022_v4 = vld [vmem:[#allocation13 + $0x10] ss:$28 sps:$4 sm:$0xff]   ;;  %v7033_v9 = vld [vmem:[#allocation13 + $0xd9c] ss:$28 sps:$4 sm:$0xff]  }
 0x301   :  { %v5121_v12 = vpop.f32.mrf.mxu0  ;;  %5317 = vmatprep.subr.bf16.mxu1 %v6973_v6  ;;  %5358 = vmatprep.subr.bf16.mxu0 %v6976_v7  ;;  %v7030_v6 = vld [vmem:[#allocation13 + $0x35c] ss:$28 sps:$4 sm:$0xff]   ;;  %v7025_v7 = vld [vmem:[#allocation13 + $0xdd0] ss:$28 sps:$4 sm:$0xff]  }
 0x302   :  { %v7034_v12 = vld [vmem:[#allocation13 + $0x320] ss:$28 sps:$4 sm:$0xff]  }
 0x304   :  { %5318 = vmatpush2.bf16.msra.mxu1 %v6971_v10  ;;  %5359 = vmatpush2.bf16.msra.mxu0 %v6974_v11  ;;  %v7036_v10 = vld [vmem:[#allocation13 + $0x324] ss:$28 sps:$4 sm:$0xff]   ;;  %v7031_v11 = vld [vmem:[#allocation13 + $0xd98] ss:$28 sps:$4 sm:$0xff]  }
 0x305   :  { %5369 = vmatprep.subr.bf16.mxu1 %v6979_v13  ;;  %5410 = vmatprep.subr.bf16.mxu0 %v6982_v14  ;;  %v7039_v13 = vld [vmem:[#allocation13 + $0xd64] ss:$28 sps:$4 sm:$0xff]   ;;  %v7042_v14 = vld [vmem:[#allocation13 + $0x2ec] ss:$28 sps:$4 sm:$0xff]  }
 0x307   :  { %5320 = vmatmul.mubr.bf16.vlgmr.msra.gmra.mxu1 %v7653_v31  ;;  %5361 = vmatmul.mubr.bf16.vlgmr.msra.gmra.mxu0 %v7667_v59  ;;  %v5157_v32 = vpop.f32.mrf.mxu1 }
 0x308   :  { %v7691_v34 = vadd.f32 %v5157_v32, %v5117_v21  ;;  %5370 = vmatpush1.bf16.msra.mxu1 %v6977_v18  ;;  %5401 = vmatprep.mubr.bf16.mxu1 %v7678_v54  ;;  %v7045_v18 = vld [vmem:[#allocation13 + $0xd2c] ss:$28 sps:$4 sm:$0xff]   ;;  %v7054_v32 = vld [vmem:[#allocation13 + $0x27c] ss:$28 sps:$4 sm:$0xff]  }
 0x309   :  { %5411 = vmatpush1.bf16.msra.mxu0 %v6980_v20  ;;  %5442 = vmatprep.mubr.bf16.mxu0 %v7637_v0  ;;  %v5159_v28 = vpop.f32.mrf.mxu1  ;;  %v7048_v20 = vld [vmem:[#allocation13 + $0x2b4] ss:$28 sps:$4 sm:$0xff]   ;;  %v7043_v21 = vld [vmem:[#allocation13 + $0xd28] ss:$28 sps:$4 sm:$0xff]  }
 0x30a   :  { %v7695_v37 = vadd.f32 %v5159_v28, %v5119_v33  ;;  %5371 = vmatprep.subr.bf16.mxu1 %v6985_v25  ;;  %5412 = vmatprep.subr.bf16.mxu0 %v6988_v30  ;;  %v7046_v25 = vld [vmem:[#allocation13 + $0x2b0] ss:$28 sps:$4 sm:$0xff]   ;;  %v7057_v28 = vld [vmem:[#allocation13 + $0xcbc] ss:$28 sps:$4 sm:$0xff]  }
 0x30b   :  { %v5161_v39 = vpop.f32.mrf.mxu1  ;;  %v7051_v30 = vld [vmem:[#allocation13 + $0xcf4] ss:$28 sps:$4 sm:$0xff]  }
 0x30c   :  { %5372 = vmatpush1.bf16.msra.mxu1 %v6983_v26  ;;  %v7049_v33 = vld [vmem:[#allocation13 + $0xcf0] ss:$28 sps:$4 sm:$0xff]   ;;  %v7052_v26 = vld [vmem:[#allocation13 + $0x278] ss:$28 sps:$4 sm:$0xff]   ;;  %v7063_v39 = vld [vmem:[#allocation13 + $0xc84] ss:$28 sps:$4 sm:$0xff]  }
 0x30d   :  { %5413 = vmatpush1.bf16.msra.mxu0 %v6986_v35  ;;  %v5162_v42 = vpop.f32.mrf.mxu1  ;;  %5373 = vmatprep.subr.bf16.mxu1 %v6991_v36  ;;  %v7060_v35 = vld [vmem:[#allocation13 + $0x244] ss:$28 sps:$4 sm:$0xff]   ;;  %v7055_v36 = vld [vmem:[#allocation13 + $0xcb8] ss:$28 sps:$4 sm:$0xff]  }
 0x30e   :  { %5414 = vmatprep.subr.bf16.mxu0 %v6994_v38  ;;  %v7058_v38 = vld [vmem:[#allocation13 + $0x240] ss:$28 sps:$4 sm:$0xff]  }
 0x30f   :  { %v7061_v42 = vld [vmem:[#allocation13 + $0xc80] ss:$28 sps:$4 sm:$0xff]  }
 0x310   :  { %5374 = vmatpush1.bf16.msra.mxu1 %v6989_v41  ;;  %v7066_v41 = vld [vmem:[#allocation13 + $0x20c] ss:$28 sps:$4 sm:$0xff]  }
 0x311   :  { %5415 = vmatpush1.bf16.msra.mxu0 %v6992_v43  ;;  %5375 = vmatprep.subr.bf16.mxu1 %v6997_v44  ;;  %v7064_v43 = vld [vmem:[#allocation13 + $0x208] ss:$28 sps:$4 sm:$0xff]  }
 0x312   :  { %5416 = vmatprep.subr.bf16.mxu0 %v7000_v47  ;;  %v7069_v44 = vld [vmem:[#allocation13 + $0xc4c] ss:$28 sps:$4 sm:$0xff]   ;;  %v7072_v47 = vld [vmem:[#allocation13 + $0x1d4] ss:$28 sps:$4 sm:$0xff]  }
 0x314   :  { %5376 = vmatpush1.bf16.msra.mxu1 %v6995_v48  ;;  %v7067_v48 = vld [vmem:[#allocation13 + $0xc48] ss:$28 sps:$4 sm:$0xff]  }
 0x315   :  { %5417 = vmatpush1.bf16.msra.mxu0 %v6998_v49  ;;  %5377 = vmatprep.subr.bf16.mxu1 %v7003_v50  ;;  %v7070_v49 = vld [vmem:[#allocation13 + $0x1d0] ss:$28 sps:$4 sm:$0xff]   ;;  %v7075_v50 = vld [vmem:[#allocation13 + $0x51c] ss:$28 sps:$4 sm:$0xff]  }
 0x316   :  { %5418 = vmatprep.subr.bf16.mxu0 %v7006_v51  ;;  %v7078_v51 = vld [vmem:[#allocation13 + $0x89c] ss:$28 sps:$4 sm:$0xff]  }
 0x318   :  { %5378 = vmatpush1.bf16.msra.mxu1 %v7001_v40  ;;  %v7073_v40 = vld [vmem:[#allocation13 + $0x518] ss:$28 sps:$4 sm:$0xff]  }
 0x319   :  { %5419 = vmatpush1.bf16.msra.mxu0 %v7004_v55  ;;  %5379 = vmatprep.subr.bf16.mxu1 %v7009_v53  ;;  %v7076_v55 = vld [vmem:[#allocation13 + $0x898] ss:$28 sps:$4 sm:$0xff]   ;;  %v7081_v53 = vld [vmem:[#allocation13 + $0x4e4] ss:$28 sps:$4 sm:$0xff]  }
 0x31a   :  { %5420 = vmatprep.subr.bf16.mxu0 %v7012_v57 }
 0x31c   :  { %5380 = vmatpush1.bf16.msra.mxu1 %v7007_v56  ;;  %v7084_v56 = vld [vmem:[#allocation13 + $0x864] ss:$28 sps:$4 sm:$0xff]  }
 0x31d   :  { %5421 = vmatpush1.bf16.msra.mxu0 %v7010_v52  ;;  %5381 = vmatprep.subr.bf16.mxu1 %v7015_v61  ;;  %v7079_v52 = vld [vmem:[#allocation13 + $0x4e0] ss:$28 sps:$4 sm:$0xff]  }
 0x31e   :  { %5422 = vmatprep.subr.bf16.mxu0 %v7018_v45  ;;  %v7082_v45 = vld [vmem:[#allocation13 + $0x860] ss:$28 sps:$4 sm:$0xff]  }
 0x320   :  { %5382 = vmatpush1.bf16.msra.mxu1 %v7013_v62  ;;  %v7087_v62 = vld [vmem:[#allocation13 + $0x4ac] ss:$28 sps:$4 sm:$0xff]  }
 0x321   :  { %5423 = vmatpush1.bf16.msra.mxu0 %v7016_v63  ;;  %5383 = vmatprep.subr.bf16.mxu1 %v7021_v1  ;;  %v7090_v63 = vld [vmem:[#allocation13 + $0x82c] ss:$28 sps:$4 sm:$0xff]  }
 0x322   :  { %5424 = vmatprep.subr.bf16.mxu0 %v7024_v46  ;;  %v7085_v46 = vld [vmem:[#allocation13 + $0x4a8] ss:$28 sps:$4 sm:$0xff]  }
 0x324   :  { %5384 = vmatpush1.bf16.msra.mxu1 %v7019_v3 }
 0x325   :  { %5425 = vmatpush1.bf16.msra.mxu0 %v7022_v4  ;;  %5385 = vmatprep.subr.bf16.mxu1 %v7027_v5  ;;  %v7088_v4 = vld [vmem:[#allocation13 + $0x828] ss:$28 sps:$4 sm:$0xff]   ;;  %v7093_v5 = vld [vmem:[#allocation13 + $0x474] ss:$28 sps:$4 sm:$0xff]  }
 0x326   :  { %5426 = vmatprep.subr.bf16.mxu0 %v7030_v6  ;;  %v7096_v6 = vld [vmem:[#allocation13 + $0x7f4] ss:$28 sps:$4 sm:$0xff]  }
 0x328   :  { %5386 = vmatpush2.bf16.msra.mxu1 %v7025_v7  ;;  %v7091_v7 = vld [vmem:[#allocation13 + $0x470] ss:$28 sps:$4 sm:$0xff]  }
 0x329   :  { %5427 = vmatpush2.bf16.msra.mxu0 %v7028_v8  ;;  %5387 = vmatprep.subr.bf16.mxu1 %v7033_v9  ;;  %v7094_v8 = vld [vmem:[#allocation13 + $0x7f0] ss:$28 sps:$4 sm:$0xff]   ;;  %v7099_v9 = vld [vmem:[#allocation13 + $0x43c] ss:$28 sps:$4 sm:$0xff]  }
 0x32a   :  { %5428 = vmatprep.subr.bf16.mxu0 %v7036_v10  ;;  %v7102_v10 = vld [vmem:[#allocation13 + $0x7bc] ss:$28 sps:$4 sm:$0xff]  }
 0x32c   :  { %5388 = vmatpush2.bf16.msra.mxu1 %v7031_v11  ;;  %v7097_v11 = vld [vmem:[#allocation13 + $0x438] ss:$28 sps:$4 sm:$0xff]  }
 0x32d   :  { %5429 = vmatpush2.bf16.msra.mxu0 %v7034_v12  ;;  %5389 = vmatprep.subr.bf16.mxu1 %v7039_v13  ;;  %v7100_v12 = vld [vmem:[#allocation13 + $0x7b8] ss:$28 sps:$4 sm:$0xff]   ;;  %v7105_v13 = vld [vmem:[#allocation13 + $0x404] ss:$28 sps:$4 sm:$0xff]  }
 0x32e   :  { %5430 = vmatprep.subr.bf16.mxu0 %v7042_v14  ;;  %v7108_v14 = vld [vmem:[#allocation13 + $0x784] ss:$28 sps:$4 sm:$0xff]  }
 0x330   :  { %5390 = vmatpush2.bf16.msra.mxu1 %v7037_v15  ;;  %v7103_v15 = vld [vmem:[#allocation13 + $0x400] ss:$28 sps:$4 sm:$0xff]  }
 0x331   :  { %5431 = vmatpush2.bf16.msra.mxu0 %v7040_v16  ;;  %5391 = vmatprep.subr.bf16.mxu1 %v7045_v18  ;;  %v7106_v16 = vld [vmem:[#allocation13 + $0x780] ss:$28 sps:$4 sm:$0xff]   ;;  %v7111_v18 = vld [vmem:[#allocation13 + $0x3cc] ss:$28 sps:$4 sm:$0xff]  }
 0x332   :  { %5432 = vmatprep.subr.bf16.mxu0 %v7048_v20  ;;  %v7114_v20 = vld [vmem:[#allocation13 + $0x74c] ss:$28 sps:$4 sm:$0xff]  }
 0x334   :  { %5392 = vmatpush2.bf16.msra.mxu1 %v7043_v21  ;;  %v7109_v21 = vld [vmem:[#allocation13 + $0x3c8] ss:$28 sps:$4 sm:$0xff]  }
 0x335   :  { %5433 = vmatpush2.bf16.msra.mxu0 %v7046_v25  ;;  %5393 = vmatprep.subr.bf16.mxu1 %v7051_v30  ;;  %v7112_v25 = vld [vmem:[#allocation13 + $0x748] ss:$28 sps:$4 sm:$0xff]   ;;  %v7117_v30 = vld [vmem:[#allocation13 + $0x394] ss:$28 sps:$4 sm:$0xff]  }
 0x336   :  { %5434 = vmatprep.subr.bf16.mxu0 %v7054_v32  ;;  %v7120_v32 = vld [vmem:[#allocation13 + $0x714] ss:$28 sps:$4 sm:$0xff]  }
 0x338   :  { %5394 = vmatpush2.bf16.msra.mxu1 %v7049_v33  ;;  %v7115_v33 = vld [vmem:[#allocation13 + $0x390] ss:$28 sps:$4 sm:$0xff]  }
 0x339   :  { %5435 = vmatpush2.bf16.msra.mxu0 %v7052_v26  ;;  %5395 = vmatprep.subr.bf16.mxu1 %v7057_v28  ;;  %v7118_v26 = vld [vmem:[#allocation13 + $0x710] ss:$28 sps:$4 sm:$0xff]   ;;  %v7123_v28 = vld [vmem:[#allocation13 + $0x6dc] ss:$28 sps:$4 sm:$0xff]  }
 0x33a   :  { %5436 = vmatprep.subr.bf16.mxu0 %v7060_v35  ;;  %v7126_v35 = vld [vmem:[#allocation13 + $0xa5c] ss:$28 sps:$4 sm:$0xff]  }
 0x33c   :  { %5396 = vmatpush2.bf16.msra.mxu1 %v7055_v36  ;;  %v7121_v36 = vld [vmem:[#allocation13 + $0x6d8] ss:$28 sps:$4 sm:$0xff]  }
 0x33d   :  { %5437 = vmatpush2.bf16.msra.mxu0 %v7058_v38  ;;  %5397 = vmatprep.subr.bf16.mxu1 %v7063_v39  ;;  %v7124_v38 = vld [vmem:[#allocation13 + $0xa58] ss:$28 sps:$4 sm:$0xff]   ;;  %v7129_v39 = vld [vmem:[#allocation13 + $0x6a4] ss:$28 sps:$4 sm:$0xff]  }
 0x33e   :  { %5438 = vmatprep.subr.bf16.mxu0 %v7066_v41  ;;  %v7132_v41 = vld [vmem:[#allocation13 + $0xa24] ss:$28 sps:$4 sm:$0xff]  }
 0x340   :  { %5398 = vmatpush2.bf16.msra.mxu1 %v7061_v42  ;;  %v7127_v42 = vld [vmem:[#allocation13 + $0x6a0] ss:$28 sps:$4 sm:$0xff]  }
 0x341   :  { %5439 = vmatpush2.bf16.msra.mxu0 %v7064_v43  ;;  %5399 = vmatprep.subr.bf16.mxu1 %v7069_v44  ;;  %v7130_v43 = vld [vmem:[#allocation13 + $0xa20] ss:$28 sps:$4 sm:$0xff]   ;;  %v7135_v44 = vld [vmem:[#allocation13 + $0x66c] ss:$28 sps:$4 sm:$0xff]  }
 0x342   :  { %5440 = vmatprep.subr.bf16.mxu0 %v7072_v47  ;;  %v7138_v47 = vld [vmem:[#allocation13 + $0x9ec] ss:$28 sps:$4 sm:$0xff]  }
 0x344   :  { %5400 = vmatpush2.bf16.msra.mxu1 %v7067_v48  ;;  %v7133_v48 = vld [vmem:[#allocation13 + $0x668] ss:$28 sps:$4 sm:$0xff]  }
 0x345   :  { %5441 = vmatpush2.bf16.msra.mxu0 %v7070_v49  ;;  %5451 = vmatprep.subr.bf16.mxu1 %v7075_v50  ;;  %v7136_v49 = vld [vmem:[#allocation13 + $0x9e8] ss:$28 sps:$4 sm:$0xff]   ;;  %v7141_v50 = vld [vmem:[#allocation13 + $0x634] ss:$28 sps:$4 sm:$0xff]  }
 0x346   :  { %5492 = vmatprep.subr.bf16.mxu0 %v7078_v51  ;;  %v7144_v51 = vld [vmem:[#allocation13 + $0x9b4] ss:$28 sps:$4 sm:$0xff]  }
 0x347   :  { %5402 = vmatmul.mubr.bf16.vlgmr.msra.gmra.mxu1 %v7680_v60  ;;  %v7698_v57 = vpop.f32.mrf.mxu0 }
 0x348   :  { %5443 = vmatmul.mubr.bf16.vlgmr.msra.gmra.mxu0 %v7646_v2  ;;  %5452 = vmatpush1.bf16.msra.mxu1 %v7073_v40  ;;  %v7139_v40 = vld [vmem:[#allocation13 + $0x630] ss:$28 sps:$4 sm:$0xff]  }
 0x349   :  { %5483 = vmatprep.mubr.bf16.mxu1 %v7651_v23  ;;  %5493 = vmatpush1.bf16.msra.mxu0 %v7076_v55  ;;  %v7702_v61 = vpop.f32.mrf.mxu0  ;;  %v7142_v55 = vld [vmem:[#allocation13 + $0x9b0] ss:$28 sps:$4 sm:$0xff]  }
 0x34a   :  { %5524 = vmatprep.mubr.bf16.mxu0 %v7665_v58  ;;  %5453 = vmatprep.subr.bf16.mxu1 %v7081_v53  ;;  %v7147_v53 = vld [vmem:[#allocation13 + $0x5fc] ss:$28 sps:$4 sm:$0xff]  }
 0x34b   :  { %5494 = vmatprep.subr.bf16.mxu0 %v7084_v56  ;;  %v5202_v1 = vpop.f32.mrf.mxu0  ;;  %v7150_v56 = vld [vmem:[#allocation13 + $0x97c] ss:$28 sps:$4 sm:$0xff]  }
 0x34c   :  { %5454 = vmatpush1.bf16.msra.mxu1 %v7079_v52  ;;  %v7145_v52 = vld [vmem:[#allocation13 + $0x5f8] ss:$28 sps:$4 sm:$0xff]   ;;  %v7151_v1 = vld [vmem:[#allocation13 + $0x5c0] ss:$28 sps:$4 sm:$0xff]  }
 0x34d   :  { %5495 = vmatpush1.bf16.msra.mxu0 %v7082_v45  ;;  %v5203_v3 = vpop.f32.mrf.mxu0  ;;  %5455 = vmatprep.subr.bf16.mxu1 %v7087_v62  ;;  %v7148_v45 = vld [vmem:[#allocation13 + $0x978] ss:$28 sps:$4 sm:$0xff]   ;;  %v7153_v62 = vld [vmem:[#allocation13 + $0x5c4] ss:$28 sps:$4 sm:$0xff]  }
 0x34e   :  { %5496 = vmatprep.subr.bf16.mxu0 %v7090_v63  ;;  %v7156_v63 = vld [vmem:[#allocation13 + $0x944] ss:$28 sps:$4 sm:$0xff]   ;;  %v7159_v3 = vld [vmem:[#allocation13 + $0x58c] ss:$28 sps:$4 sm:$0xff]  }
 0x350   :  { %5456 = vmatpush1.bf16.msra.mxu1 %v7085_v46  ;;  %v7154_v46 = vld [vmem:[#allocation13 + $0x940] ss:$28 sps:$4 sm:$0xff]  }
 0x351   :  { %5497 = vmatpush1.bf16.msra.mxu0 %v7088_v4  ;;  %5457 = vmatprep.subr.bf16.mxu1 %v7093_v5  ;;  %v7162_v4 = vld [vmem:[#allocation13 + $0x90c] ss:$28 sps:$4 sm:$0xff]  }
 0x352   :  { %5498 = vmatprep.subr.bf16.mxu0 %v7096_v6  ;;  %v7157_v5 = vld [vmem:[#allocation13 + $0x588] ss:$28 sps:$4 sm:$0xff]  }
 0x353   :  { %v7160_v6 = vld [vmem:[#allocation13 + $0x908] ss:$28 sps:$4 sm:$0xff]  }
 0x354   :  { %5458 = vmatpush1.bf16.msra.mxu1 %v7091_v7  ;;  %v7165_v7 = vld [vmem:[#allocation13 + $0x554] ss:$28 sps:$4 sm:$0xff]  }
 0x355   :  { %5499 = vmatpush1.bf16.msra.mxu0 %v7094_v8  ;;  %5459 = vmatprep.subr.bf16.mxu1 %v7099_v9  ;;  %v7168_v8 = vld [vmem:[#allocation13 + $0x8d4] ss:$28 sps:$4 sm:$0xff]  }
 0x356   :  { %5500 = vmatprep.subr.bf16.mxu0 %v7102_v10  ;;  %v7163_v9 = vld [vmem:[#allocation13 + $0x550] ss:$28 sps:$4 sm:$0xff]  }
 0x357   :  { %v7166_v10 = vld [vmem:[#allocation13 + $0x8d0] ss:$28 sps:$4 sm:$0xff]  }
 0x358   :  { %5460 = vmatpush1.bf16.msra.mxu1 %v7097_v11  ;;  %v7171_v11 = vld [vmem:[#allocation13 + $0xc1c] ss:$28 sps:$4 sm:$0xff]  }
 0x359   :  { %5501 = vmatpush1.bf16.msra.mxu0 %v7100_v12  ;;  %5461 = vmatprep.subr.bf16.mxu1 %v7105_v13  ;;  %v7172_v12 = vld [vmem:[#allocation13 + $0x360] ss:$28 sps:$4 sm:$0xff]   ;;  %v7169_v13 = vld [vmem:[#allocation13 + $0xc18] ss:$28 sps:$4 sm:$0xff]  }
 0x35a   :  { %5502 = vmatprep.subr.bf16.mxu0 %v7108_v14  ;;  %v7173_v14 = vld [vmem:[#allocation13 + $0x1a0] ss:$28 sps:$4 sm:$0xff]  }
 0x35c   :  { %5462 = vmatpush1.bf16.msra.mxu1 %v7103_v15  ;;  %v5199_v15 = vadd.f32 %v7698_v57, %v7691_v34 }
 0x35d   :  { %5503 = vmatpush1.bf16.msra.mxu0 %v7106_v16  ;;  %5463 = vmatprep.subr.bf16.mxu1 %v7111_v18  ;;  %v7176_v16 = vld [vmem:[#allocation13 + $0xbe4] ss:$28 sps:$4 sm:$0xff]  }
 0x35e   :  { %5504 = vmatprep.subr.bf16.mxu0 %v7114_v20 }
 0x360   :  { %5464 = vmatpush1.bf16.msra.mxu1 %v7109_v21  ;;  %v7177_v21 = vld [vmem:[#allocation13 + $0x328] ss:$28 sps:$4 sm:$0xff]  }
 0x361   :  { %5505 = vmatpush1.bf16.msra.mxu0 %v7112_v25  ;;  %5465 = vmatprep.subr.bf16.mxu1 %v7117_v30  ;;  %v5201_v25 = vadd.f32 %v7702_v61, %v7695_v37 }
 0x362   :  { %5506 = vmatprep.subr.bf16.mxu0 %v7120_v32  ;;  %v7174_v32 = vld [vmem:[#allocation13 + $0xbe0] ss:$28 sps:$4 sm:$0xff]  }
 0x364   :  { %5466 = vmatpush1.bf16.msra.mxu1 %v7115_v33  ;;  %v7178_v33 = vld [vmem:[#allocation13 + $0x168] ss:$28 sps:$4 sm:$0xff]  }
 0x365   :  { %5507 = vmatpush1.bf16.msra.mxu0 %v7118_v26  ;;  %5467 = vmatprep.subr.bf16.mxu1 %v7123_v28  ;;  %v7181_v26 = vld [vmem:[#allocation13 + $0xbac] ss:$28 sps:$4 sm:$0xff]  }
 0x366   :  { %5508 = vmatprep.subr.bf16.mxu0 %v7126_v35 }
 0x368   :  { %5468 = vmatpush2.bf16.msra.mxu1 %v7121_v36  ;;  %v7182_v36 = vld [vmem:[#allocation13 + $0x2f0] ss:$28 sps:$4 sm:$0xff]  }
 0x369   :  { %5509 = vmatpush2.bf16.msra.mxu0 %v7124_v38  ;;  %5469 = vmatprep.subr.bf16.mxu1 %v7129_v39  ;;  %v7179_v39 = vld [vmem:[#allocation13 + $0xba8] ss:$28 sps:$4 sm:$0xff]  }
 0x36a   :  { %5510 = vmatprep.subr.bf16.mxu0 %v7132_v41 }
 0x36c   :  { %5470 = vmatpush2.bf16.msra.mxu1 %v7127_v42 }
 0x36d   :  { %5511 = vmatpush2.bf16.msra.mxu0 %v7130_v43  ;;  %5471 = vmatprep.subr.bf16.mxu1 %v7135_v44  ;;  %v7183_v43 = vld [vmem:[#allocation13 + $0x130] ss:$28 sps:$4 sm:$0xff]  }
 0x36e   :  { %5512 = vmatprep.subr.bf16.mxu0 %v7138_v47  ;;  %v7186_v44 = vld [vmem:[#allocation13 + $0xb74] ss:$28 sps:$4 sm:$0xff]  }
 0x36f   :  { %v7187_v47 = vld [vmem:[#allocation13 + $0x2b8] ss:$28 sps:$4 sm:$0xff]  }
 0x370   :  { %5472 = vmatpush2.bf16.msra.mxu1 %v7133_v48  ;;  %v7188_v48 = vld [vmem:[#allocation13 + $0xf8] ss:$28 sps:$4 sm:$0xff]  }
 0x371   :  { %5513 = vmatpush2.bf16.msra.mxu0 %v7136_v49  ;;  %5473 = vmatprep.subr.bf16.mxu1 %v7141_v50  ;;  %v7191_v49 = vld [vmem:[#allocation13 + $0xb3c] ss:$28 sps:$4 sm:$0xff]  }
 0x372   :  { %5514 = vmatprep.subr.bf16.mxu0 %v7144_v51  ;;  %v7192_v50 = vld [vmem:[#allocation13 + $0x280] ss:$28 sps:$4 sm:$0xff]   ;;  %v7189_v51 = vld [vmem:[#allocation13 + $0xb38] ss:$28 sps:$4 sm:$0xff]  }
 0x374   :  { %5474 = vmatpush2.bf16.msra.mxu1 %v7139_v40  ;;  %v7193_v40 = vld [vmem:[#allocation13 + $0xc0] ss:$28 sps:$4 sm:$0xff]  }
 0x375   :  { %5515 = vmatpush2.bf16.msra.mxu0 %v7142_v55  ;;  %5475 = vmatprep.subr.bf16.mxu1 %v7147_v53  ;;  %v7196_v55 = vld [vmem:[#allocation13 + $0xb04] ss:$28 sps:$4 sm:$0xff]  }
 0x376   :  { %5516 = vmatprep.subr.bf16.mxu0 %v7150_v56  ;;  %v7197_v53 = vld [vmem:[#allocation13 + $0x248] ss:$28 sps:$4 sm:$0xff]   ;;  %v7194_v56 = vld [vmem:[#allocation13 + $0xb00] ss:$28 sps:$4 sm:$0xff]  }
 0x378   :  { %5476 = vmatpush2.bf16.msra.mxu1 %v7145_v52 }
 0x379   :  { %5517 = vmatpush2.bf16.msra.mxu0 %v7148_v45  ;;  %5477 = vmatprep.subr.bf16.mxu1 %v7153_v62  ;;  %v7198_v45 = vld [vmem:[#allocation13 + $0x88] ss:$28 sps:$4 sm:$0xff]  }
 0x37a   :  { %5518 = vmatprep.subr.bf16.mxu0 %v7156_v63  ;;  %v7201_v62 = vld [vmem:[#allocation13 + $0xacc] ss:$28 sps:$4 sm:$0xff]  }
 0x37c   :  { %5478 = vmatpush2.bf16.msra.mxu1 %v7151_v1  ;;  %v7202_v1 = vld [vmem:[#allocation13 + $0x210] ss:$28 sps:$4 sm:$0xff]  }
 0x37d   :  { %5519 = vmatpush2.bf16.msra.mxu0 %v7154_v46  ;;  %5479 = vmatprep.subr.bf16.mxu1 %v7159_v3 }
 0x37e   :  { %5520 = vmatprep.subr.bf16.mxu0 %v7162_v4  ;;  %v7199_v4 = vld [vmem:[#allocation13 + $0xac8] ss:$28 sps:$4 sm:$0xff]  }
 0x380   :  { %5480 = vmatpush2.bf16.msra.mxu1 %v7157_v5  ;;  %v7203_v5 = vld [vmem:[#allocation13 + $0x50] ss:$28 sps:$4 sm:$0xff]  }
 0x381   :  { %5521 = vmatpush2.bf16.msra.mxu0 %v7160_v6  ;;  %5481 = vmatprep.subr.bf16.mxu1 %v7165_v7  ;;  %v7206_v6 = vld [vmem:[#allocation13 + $0xa94] ss:$28 sps:$4 sm:$0xff]  }
 0x382   :  { %5522 = vmatprep.subr.bf16.mxu0 %v7168_v8  ;;  %v7207_v7 = vld [vmem:[#allocation13 + $0x1d8] ss:$28 sps:$4 sm:$0xff]   ;;  %v7204_v8 = vld [vmem:[#allocation13 + $0xa90] ss:$28 sps:$4 sm:$0xff]  }
 0x384   :  { %5482 = vmatpush2.bf16.msra.mxu1 %v7163_v9  ;;  %v7208_v9 = vld [vmem:[#allocation13 + $0x18] ss:$28 sps:$4 sm:$0xff]  }
 0x385   :  { %5523 = vmatpush2.bf16.msra.mxu0 %v7166_v10  ;;  %5533 = vmatprep.subr.bf16.mxu1 %v7171_v11  ;;  %v7211_v10 = vld [vmem:[#allocation13 + $0xddc] ss:$28 sps:$4 sm:$0xff]  }
 0x386   :  { %6525 = vmatprep.subr.bf16.mxu0 %v7172_v12  ;;  %v7212_v11 = vld [vmem:[#allocation13 + $0xa60] ss:$28 sps:$4 sm:$0xff]   ;;  %v7209_v12 = vld [vmem:[#allocation13 + $0xdd8] ss:$28 sps:$4 sm:$0xff]  }
 0x387   :  { %v7707_v18 = vpop.f32.mrf.mxu0  ;;  %5484 = vmatmul.mubr.bf16.vlgmr.msra.gmra.mxu1 %v7653_v31  ;;  %v5239_v20 = vpop.f32.mrf.mxu1 }
 0x388   :  { %5525 = vmatmul.mubr.bf16.vlgmr.msra.gmra.mxu0 %v7667_v59  ;;  %v5240_v30 = vadd.f32 %v5239_v20, %v5199_v15  ;;  %5534 = vmatpush1.bf16.msra.mxu1 %v7169_v13  ;;  %v7213_v13 = vld [vmem:[#allocation13 + $0x8a0] ss:$28 sps:$4 sm:$0xff]   ;;  %v7217_v15 = vld [vmem:[#allocation13 + $0xa28] ss:$28 sps:$4 sm:$0xff]  }
 0x389   :  { %5565 = vmatprep.mubr.bf16.mxu1 %v7678_v54  ;;  %6526 = vmatpush3.bf16.msra.mxu0 %v7173_v14  ;;  %v7714_v34 = vpop.f32.mrf.mxu0  ;;  %v5241_v57 = vpop.f32.mrf.mxu1  ;;  %v7216_v14 = vld [vmem:[#allocation13 + $0xda4] ss:$28 sps:$4 sm:$0xff]  }
 0x38a   :  { %v6518_v28 = vmul.f32 -1.442695, %v5240_v30  ;;  %5606 = vmatprep.mubr.bf16.mxu0 %v7637_v0  ;;  %v5242_v35 = vadd.f32 %v5241_v57, %v5201_v25  ;;  %5535 = vmatprep.subr.bf16.mxu1 %v7176_v16  ;;  %v7184_v0 = vld [vmem:[#allocation13 + $0xb70] ss:$28 sps:$4 sm:$0xff]   ;;  %v7214_v16 = vld [vmem:[#allocation13 + $0xda0] ss:$28 sps:$4 sm:$0xff]  }
 0x38b   :  { %v5284_v37 = vpop.f32.mrf.mxu0  ;;  %6527 = vmatprep.subr.bf16.mxu0 %v7177_v21  ;;  %v5243_v61 = vpop.f32.mrf.mxu1  ;;  %v7218_v21 = vld [vmem:[#allocation13 + $0x868] ss:$28 sps:$4 sm:$0xff]   ;;  %v7222_v30 = vld [vmem:[#allocation13 + $0x9f0] ss:$28 sps:$4 sm:$0xff]  }
 0x38c   :  { %7281 = vpow2.f32 %v6518_v28  ;;  %v6519_v38 = vmul.f32 -1.442695, %v5242_v35  ;;  %5536 = vmatpush1.bf16.msra.mxu1 %v7174_v32  ;;  %v7221_v25 = vld [vmem:[#allocation13 + $0xd6c] ss:$28 sps:$4 sm:$0xff]   ;;  %v7231_v35 = vld [vmem:[#allocation13 + $0xcfc] ss:$28 sps:$4 sm:$0xff]  }
 0x38d   :  { %6528 = vmatpush3.bf16.msra.mxu0 %v7178_v33  ;;  %v5285_v41 = vpop.f32.mrf.mxu0  ;;  %v5244_v42 = vpop.f32.mrf.mxu1  ;;  %5537 = vmatprep.subr.bf16.mxu1 %v7181_v26  ;;  %v7219_v57 = vld [vmem:[#allocation13 + $0xd68] ss:$28 sps:$4 sm:$0xff]   ;;  %v7223_v33 = vld [vmem:[#allocation13 + $0x830] ss:$28 sps:$4 sm:$0xff]   ;;  %v7227_v26 = vld [vmem:[#allocation13 + $0x9b8] ss:$28 sps:$4 sm:$0xff]  }
 0x38e   :  { %7283 = vpow2.f32 %v6519_v38  ;;  %6529 = vmatprep.subr.bf16.mxu0 %v7182_v36  ;;  %v7224_v28 = vld [vmem:[#allocation13 + $0xd30] ss:$28 sps:$4 sm:$0xff]   ;;  %v7232_v36 = vld [vmem:[#allocation13 + $0x980] ss:$28 sps:$4 sm:$0xff]   ;;  %v7229_v37 = vld [vmem:[#allocation13 + $0xcf8] ss:$28 sps:$4 sm:$0xff]  }
 0x38f   :  { %v7233_v61 = vld [vmem:[#allocation13 + $0x7c0] ss:$28 sps:$4 sm:$0xff]   ;;  %v7238_v42 = vld [vmem:[#allocation13 + $0x788] ss:$28 sps:$4 sm:$0xff]  }
 0x390   :  { %5538 = vmatpush1.bf16.msra.mxu1 %v7179_v39  ;;  %v7236_v38 = vld [vmem:[#allocation13 + $0xcc4] ss:$28 sps:$4 sm:$0xff]  }
 0x391   :  { %6530 = vmatpush3.bf16.msra.mxu0 %v7183_v43  ;;  %5539 = vmatprep.subr.bf16.mxu1 %v7186_v44  ;;  %v7237_v39 = vld [vmem:[#allocation13 + $0x948] ss:$28 sps:$4 sm:$0xff]   ;;  %v7234_v41 = vld [vmem:[#allocation13 + $0xcc0] ss:$28 sps:$4 sm:$0xff]   ;;  %v7242_v44 = vld [vmem:[#allocation13 + $0x910] ss:$28 sps:$4 sm:$0xff]  }
 0x392   :  { %6531 = vmatprep.subr.bf16.mxu0 %v7187_v47  ;;  %v7241_v43 = vld [vmem:[#allocation13 + $0xc8c] ss:$28 sps:$4 sm:$0xff]  }
 0x393   :  { %v7239_v47 = vld [vmem:[#allocation13 + $0xc88] ss:$28 sps:$4 sm:$0xff]  }
 0x394   :  { %5540 = vmatpush1.bf16.msra.mxu1 %v7184_v0  ;;  %v7243_v0 = vld [vmem:[#allocation13 + $0x750] ss:$28 sps:$4 sm:$0xff]  }
 0x395   :  { %6532 = vmatpush3.bf16.msra.mxu0 %v7188_v48  ;;  %5541 = vmatprep.subr.bf16.mxu1 %v7191_v49  ;;  %v7246_v48 = vld [vmem:[#allocation13 + $0xc54] ss:$28 sps:$4 sm:$0xff]  }
 0x396   :  { %6533 = vmatprep.subr.bf16.mxu0 %v7192_v50  ;;  %v7247_v49 = vld [vmem:[#allocation13 + $0x8d8] ss:$28 sps:$4 sm:$0xff]   ;;  %v7244_v50 = vld [vmem:[#allocation13 + $0xc50] ss:$28 sps:$4 sm:$0xff]  }
 0x398   :  { %5542 = vmatpush1.bf16.msra.mxu1 %v7189_v51  ;;  %v7248_v51 = vld [vmem:[#allocation13 + $0x718] ss:$28 sps:$4 sm:$0xff]  }
 0x399   :  { %v7282_v52 = vpop.eup %7281  ;;  %6534 = vmatpush3.bf16.msra.mxu0 %v7193_v40  ;;  %5543 = vmatprep.subr.bf16.mxu1 %v7196_v55  ;;  %v7249_v40 = vld [vmem:[#allocation13 + $0x6e0] ss:$28 sps:$4 sm:$0xff]  }
 0x39a   :  { %v5755_v63 = vadd.f32 1.0, %v7282_v52  ;;  %6535 = vmatprep.subr.bf16.mxu0 %v7197_v53  ;;  %v7250_v55 = vld [vmem:[#allocation13 + $0x520] ss:$28 sps:$4 sm:$0xff]   ;;  %v7251_v53 = vld [vmem:[#allocation13 + $0x6a8] ss:$28 sps:$4 sm:$0xff]  }
 0x39b   :  { %v7284_v46 = vpop.eup %7283 }
 0x39c   :  { %7285 = vrcp.f32 %v5755_v63  ;;  %v5756_v3 = vadd.f32 1.0, %v7284_v46  ;;  %5544 = vmatpush1.bf16.msra.mxu1 %v7194_v56 }
 0x39d   :  { %6536 = vmatpush3.bf16.msra.mxu0 %v7198_v45  ;;  %5545 = vmatprep.subr.bf16.mxu1 %v7201_v62  ;;  %v7252_v45 = vld [vmem:[#allocation13 + $0x4e8] ss:$28 sps:$4 sm:$0xff]  }
 0x39e   :  { %7287 = vrcp.f32 %v5756_v3  ;;  %6537 = vmatprep.subr.bf16.mxu0 %v7202_v1  ;;  %v7253_v1 = vld [vmem:[#allocation13 + $0x670] ss:$28 sps:$4 sm:$0xff]  }
 0x3a0   :  { %5546 = vmatpush1.bf16.msra.mxu1 %v7199_v4  ;;  %v7254_v4 = vld [vmem:[#allocation13 + $0x4b0] ss:$28 sps:$4 sm:$0xff]  }
 0x3a1   :  { %6538 = vmatpush3.bf16.msra.mxu0 %v7203_v5  ;;  %5547 = vmatprep.subr.bf16.mxu1 %v7206_v6 }
 0x3a2   :  { %6539 = vmatprep.subr.bf16.mxu0 %v7207_v7  ;;  %v7255_v7 = vld [vmem:[#allocation13 + $0x638] ss:$28 sps:$4 sm:$0xff]  }
 0x3a4   :  { %5548 = vmatpush1.bf16.msra.mxu1 %v7204_v8  ;;  %v7257_v8 = vld [vmem:[#allocation13 + $0x600] ss:$28 sps:$4 sm:$0xff]  }
 0x3a5   :  { %6540 = vmatpush3.bf16.msra.mxu0 %v7208_v9  ;;  %5549 = vmatprep.subr.bf16.mxu1 %v7211_v10  ;;  %v7259_v9 = vld [vmem:[#allocation13 + $0x5c8] ss:$28 sps:$4 sm:$0xff]  }
 0x3a6   :  { %6569 = vmatprep.subr.bf16.mxu0 %v7212_v11  ;;  %v7260_v10 = vld [vmem:[#allocation13 + $0x408] ss:$28 sps:$4 sm:$0xff]   ;;  %v7261_v11 = vld [vmem:[#allocation13 + $0x590] ss:$28 sps:$4 sm:$0xff]  }
 0x3a8   :  { %5607 = vmatmul.mubr.bf16.vlgmr.msra.gmra.mxu0 %v7646_v2  ;;  %5550 = vmatpush2.bf16.msra.mxu1 %v7209_v12  ;;  %v7226_v2 = vld [vmem:[#allocation13 + $0xd34] ss:$28 sps:$4 sm:$0xff]  }
 0x3a9   :  { %v7286_v20 = vpop.eup %7285  ;;  %6570 = vmatpush3.bf16.msra.mxu0 %v7213_v13  ;;  %5686 = vmatprep.mubr.bf16.mxu0 %v7665_v58  ;;  %v7228_v58 = vld [vmem:[#allocation13 + $0x7f8] ss:$28 sps:$4 sm:$0xff]   ;;  %v7262_v12 = vld [vmem:[#allocation13 + $0x3d0] ss:$28 sps:$4 sm:$0xff]  }
 0x3aa   :  { %5776 = vst [vmem:[#allocation16] sm:$0xff] %v7286_v20  ;;  %5551 = vmatprep.subr.bf16.mxu1 %v7216_v14  ;;  %6571 = vmatprep.subr.bf16.mxu0 %v7217_v15  ;;  %v7263_v13 = vld [vmem:[#allocation13 + $0x558] ss:$28 sps:$4 sm:$0xff]   ;;  %v7265_v15 = vld [vmem:[#allocation13 + $0xde0] ss:$28 sps:$4 sm:$0xff]  }
 0x3ab   :  { %v7288_v32 = vpop.eup %7287  ;;  %v7264_v14 = vld [vmem:[#allocation13 + $0x398] ss:$28 sps:$4 sm:$0xff]   ;;  %v7267_v20 = vld [vmem:[#allocation13 + $0xda8] ss:$28 sps:$4 sm:$0xff]  }
 0x3ac   :  { %5777 = vst [vmem:[#allocation16 + $0x8] sm:$0xff] %v7288_v32  ;;  %5552 = vmatpush2.bf16.msra.mxu1 %v7214_v16  ;;  %v7266_v16 = vld [vmem:[#allocation13 + $0xc20] ss:$28 sps:$4 sm:$0xff]   ;;  %v7271_v32 = vld [vmem:[#allocation13 + $0xd38] ss:$28 sps:$4 sm:$0xff]  }
 0x3ad   :  { %6572 = vmatpush3.bf16.msra.mxu0 %v7218_v21  ;;  %5553 = vmatprep.subr.bf16.mxu1 %v7221_v25  ;;  %v7268_v21 = vld [vmem:[#allocation13 + $0xbe8] ss:$28 sps:$4 sm:$0xff]   ;;  %v7269_v25 = vld [vmem:[#allocation13 + $0xd70] ss:$28 sps:$4 sm:$0xff]  }
 0x3ae   :  { %6573 = vmatprep.subr.bf16.mxu0 %v7222_v30  ;;  %v7270_v30 = vld [vmem:[#allocation13 + $0xbb0] ss:$28 sps:$4 sm:$0xff]  }
 0x3b0   :  { %5554 = vmatpush2.bf16.msra.mxu1 %v7219_v57  ;;  %v7272_v57 = vld [vmem:[#allocation13 + $0xb78] ss:$28 sps:$4 sm:$0xff]  }
 0x3b1   :  { %6574 = vmatpush3.bf16.msra.mxu0 %v7223_v33  ;;  %5555 = vmatprep.subr.bf16.mxu1 %v7226_v2  ;;  %v7273_v33 = vld [vmem:[#allocation13 + $0xd00] ss:$28 sps:$4 sm:$0xff]  }
 0x3b2   :  { %6575 = vmatprep.subr.bf16.mxu0 %v7227_v26  ;;  %v7274_v2 = vld [vmem:[#allocation13 + $0xb40] ss:$28 sps:$4 sm:$0xff]   ;;  %v7275_v26 = vld [vmem:[#allocation13 + $0xcc8] ss:$28 sps:$4 sm:$0xff]  }
 0x3b4   :  { %5556 = vmatpush2.bf16.msra.mxu1 %v7224_v28  ;;  %v7277_v28 = vld [vmem:[#allocation13 + $0xc90] ss:$28 sps:$4 sm:$0xff]  }
 0x3b5   :  { %6576 = vmatpush3.bf16.msra.mxu0 %v7228_v58  ;;  %5557 = vmatprep.subr.bf16.mxu1 %v7231_v35  ;;  %v7278_v35 = vld [vmem:[#allocation13 + $0xad0] ss:$28 sps:$4 sm:$0xff]  }
 0x3b6   :  { %6577 = vmatprep.subr.bf16.mxu0 %v7232_v36  ;;  %v7279_v36 = vld [vmem:[#allocation13 + $0xc58] ss:$28 sps:$4 sm:$0xff]  }
 0x3b8   :  { %5558 = vmatpush2.bf16.msra.mxu1 %v7229_v37 }
 0x3b9   :  { %6578 = vmatpush3.bf16.msra.mxu0 %v7233_v61  ;;  %5559 = vmatprep.subr.bf16.mxu1 %v7236_v38  ;;  %v7280_v38 = vld [vmem:[#allocation13 + $0xa98] ss:$28 sps:$4 sm:$0xff]  }
 0x3ba   :  { %6579 = vmatprep.subr.bf16.mxu0 %v7237_v39 }
 0x3bc   :  { %5560 = vmatpush2.bf16.msra.mxu1 %v7234_v41 }
 0x3bd   :  { %6580 = vmatpush3.bf16.msra.mxu0 %v7238_v42  ;;  %5561 = vmatprep.subr.bf16.mxu1 %v7241_v43 }
 0x3be   :  { %6581 = vmatprep.subr.bf16.mxu0 %v7242_v44 }
 0x3c0   :  { %5562 = vmatpush2.bf16.msra.mxu1 %v7239_v47 }
 0x3c1   :  { %6582 = vmatpush3.bf16.msra.mxu0 %v7243_v0  ;;  %5563 = vmatprep.subr.bf16.mxu1 %v7246_v48 }
 0x3c2   :  { %6583 = vmatprep.subr.bf16.mxu0 %v7247_v49 }
 0x3c4   :  { %5564 = vmatpush2.bf16.msra.mxu1 %v7244_v50 }
 0x3c5   :  { %6584 = vmatpush3.bf16.msra.mxu0 %v7248_v51  ;;  %6547 = vmatprep.subr.bf16.mxu1 %v7249_v40 }
 0x3c7   :  { %v7719_v56 = vpop.f32.mrf.mxu1  ;;  %v7721_v52 = vpop.f32.mrf.mxu0  ;;  %5566 = vmatmul.mubr.bf16.vlgmr.msra.gmra.mxu1 %v7680_v60 }
 0x3c8   :  { %5687 = vmatmul.mubr.bf16.vlgmr.msra.gmra.mxu0 %v7667_v59  ;;  %6548 = vmatpush3.bf16.msra.mxu1 %v7250_v55  ;;  %v7256_v59 = vld [vmem:[#allocation13 + $0x478] ss:$28 sps:$4 sm:$0xff]  }
 0x3c9   :  { %5646 = vmatprep.mubr.bf16.mxu1 %v7651_v23  ;;  %v7726_v62 = vpop.f32.mrf.mxu1  ;;  %v7728_v63 = vpop.f32.mrf.mxu0  ;;  %6549 = vmatprep.subr.bf16.mxu1 %v7251_v53  ;;  %v7258_v23 = vld [vmem:[#allocation13 + $0x440] ss:$28 sps:$4 sm:$0xff]  }
 0x3cb   :  { %v5325_v46 = vpop.f32.mrf.mxu1  ;;  %v5366_v3 = vpop.f32.mrf.mxu0 }
 0x3cc   :  { %6550 = vmatpush3.bf16.msra.mxu1 %v7252_v45 }
 0x3cd   :  { %v5326_v5 = vpop.f32.mrf.mxu1  ;;  %v5367_v6 = vpop.f32.mrf.mxu0  ;;  %6551 = vmatprep.subr.bf16.mxu1 %v7253_v1 }
 0x3d0   :  { %6552 = vmatpush3.bf16.msra.mxu1 %v7254_v4 }
 0x3d1   :  { %6553 = vmatprep.subr.bf16.mxu1 %v7255_v7 }
 0x3d4   :  { %6554 = vmatpush3.bf16.msra.mxu1 %v7256_v59 }
 0x3d5   :  { %6555 = vmatprep.subr.bf16.mxu1 %v7257_v8 }
 0x3d8   :  { %6556 = vmatpush3.bf16.msra.mxu1 %v7258_v23 }
 0x3d9   :  { %6557 = vmatprep.subr.bf16.mxu1 %v7259_v9 }
 0x3dc   :  { %6558 = vmatpush3.bf16.msra.mxu1 %v7260_v10 }
 0x3dd   :  { %6559 = vmatprep.subr.bf16.mxu1 %v7261_v11 }
 0x3e0   :  { %6560 = vmatpush3.bf16.msra.mxu1 %v7262_v12 }
 0x3e1   :  { %6561 = vmatprep.subr.bf16.mxu1 %v7263_v13 }
 0x3e4   :  { %6562 = vmatpush3.bf16.msra.mxu1 %v7264_v14 }
 0x3e5   :  { %6591 = vmatprep.subr.bf16.mxu1 %v7265_v15 }
 0x3e7   :  { %5647 = vmatmul.mubr.bf16.vlgmr.msra.gmra.mxu1 %v7653_v31  ;;  %v7276_v31 = vld [vmem:[#allocation13 + $0xb08] ss:$28 sps:$4 sm:$0xff]  }
 0x3e8   :  { %6592 = vmatpush3.bf16.msra.mxu1 %v7266_v16  ;;  %5726 = vmatprep.mubr.bf16.mxu1 %v7678_v54  ;;  %v7732_v54 = vld [vmem:[#allocation14] sm:$0xff] }
 0x3e9   :  { %6593 = vmatprep.subr.bf16.mxu1 %v7267_v20  ;;  %v2754_v58 = vrot.slane %v7732_v54, %v7593_v27  ;;  %v2758_v37 = vrot.slane %v7732_v54, %v7599_v29  ;;  %v2762_v11 = vrot.slane %v7732_v54, %v583_v17  ;;  %v2766_v12 = vrot.slane %v7732_v54, %v587_v22 }
 0x3eb   :  { %v5281_v61 = vadd.f32 %v7707_v18, %v2754_v58  ;;  %v5283_v39 = vadd.f32 %v7714_v34, %v2758_v37 }
 0x3ec   :  { %6594 = vmatpush3.bf16.msra.mxu1 %v7268_v21 }
 0x3ed   :  { %6595 = vmatprep.subr.bf16.mxu1 %v7269_v25  ;;  %v5322_v41 = vadd.f32 %v7719_v56, %v5281_v61  ;;  %v5324_v42 = vadd.f32 %v7726_v62, %v5283_v39 }
 0x3ef   :  { %v5363_v27 = vadd.f32 %v7721_v52, %v5322_v41  ;;  %v5365_v44 = vadd.f32 %v7728_v63, %v5324_v42 }
 0x3f0   :  { %6596 = vmatpush3.bf16.msra.mxu1 %v7270_v30 }
 0x3f1   :  { %6597 = vmatprep.subr.bf16.mxu1 %v7271_v32 }
 0x3f4   :  { %6598 = vmatpush3.bf16.msra.mxu1 %v7272_v57 }
 0x3f5   :  { %6599 = vmatprep.subr.bf16.mxu1 %v7273_v33 }
 0x3f8   :  { %6600 = vmatpush3.bf16.msra.mxu1 %v7274_v2 }
 0x3f9   :  { %6601 = vmatprep.subr.bf16.mxu1 %v7275_v26 }
 0x3fc   :  { %6602 = vmatpush3.bf16.msra.mxu1 %v7276_v31 }
 0x3fd   :  { %6603 = vmatprep.subr.bf16.mxu1 %v7277_v28 }
 0x400   :  { %6604 = vmatpush3.bf16.msra.mxu1 %v7278_v35 }
 0x401   :  { %6605 = vmatprep.subr.bf16.mxu1 %v7279_v36 }
 0x404   :  { %6606 = vmatpush3.bf16.msra.mxu1 %v7280_v38 }
 0x407   :  { %v5403_v43 = vpop.f32.mrf.mxu1  ;;  %5727 = vmatmul.mubr.bf16.vlgmr.msra.gmra.mxu1 %v7680_v60 }
 0x408   :  { %v5404_v29 = vadd.f32 %v5403_v43, %v5363_v27  ;;  %v5444_v47 = vpop.f32.mrf.mxu0 }
 0x409   :  { %v5405_v18 = vpop.f32.mrf.mxu1  ;;  %v5445_v13 = vadd.f32 %v5444_v47, %v2762_v11 }
 0x40a   :  { %v6520_v0 = vmul.f32 -1.442695, %v5404_v29  ;;  %v5406_v48 = vadd.f32 %v5405_v18, %v5365_v44  ;;  %v5446_v49 = vpop.f32.mrf.mxu0  ;;  %v2770_v44 = vrot.slane %v7732_v54, %v591_v19 }
 0x40b   :  { %v5407_v50 = vpop.f32.mrf.mxu1  ;;  %v5447_v14 = vadd.f32 %v5446_v49, %v2766_v12 }
 0x40c   :  { %7289 = vpow2.f32 %v6520_v0  ;;  %v6521_v34 = vmul.f32 -1.442695, %v5406_v48  ;;  %v5448_v51 = vpop.f32.mrf.mxu0 }
 0x40d   :  { %v5408_v40 = vpop.f32.mrf.mxu1 }
 0x40e   :  { %7291 = vpow2.f32 %v6521_v34  ;;  %v5449_v55 = vpop.f32.mrf.mxu0 }
 0x419   :  { %v7290_v53 = vpop.eup %7289 }
 0x41a   :  { %v5757_v56 = vadd.f32 1.0, %v7290_v53 }
 0x41b   :  { %v7292_v52 = vpop.eup %7291 }
 0x41c   :  { %7293 = vrcp.f32 %v5757_v56  ;;  %v5758_v60 = vadd.f32 1.0, %v7292_v52 }
 0x41e   :  { %7295 = vrcp.f32 %v5758_v60 }
 0x429   :  { %v7294_v45 = vpop.eup %7293 }
 0x42a   :  { %5778 = vst [vmem:[#allocation16 + $0x10] sm:$0xff] %v7294_v45 }
 0x42b   :  { %v7296_v62 = vpop.eup %7295 }
 0x42c   :  { %5779 = vst [vmem:[#allocation16 + $0x18] sm:$0xff] %v7296_v62 }
 0x447   :  { %v5485_v63 = vpop.f32.mrf.mxu1 }
 0x448   :  { %v5526_v1 = vpop.f32.mrf.mxu0  ;;  %v5486_v15 = vadd.f32 %v5485_v63, %v5445_v13 }
 0x449   :  { %v5487_v46 = vpop.f32.mrf.mxu1 }
 0x44a   :  { %v5528_v3 = vpop.f32.mrf.mxu0  ;;  %v5488_v16 = vadd.f32 %v5487_v46, %v5447_v14  ;;  %v5527_v20 = vadd.f32 %v5526_v1, %v5486_v15 }
 0x44b   :  { %v5489_v4 = vpop.f32.mrf.mxu1 }
 0x44c   :  { %v5530_v5 = vpop.f32.mrf.mxu0  ;;  %v5529_v25 = vadd.f32 %v5528_v3, %v5488_v16 }
 0x44d   :  { %v5490_v6 = vpop.f32.mrf.mxu1 }
 0x44e   :  { %v5531_v7 = vpop.f32.mrf.mxu0 }
 0x468   :  { %v6541_v59 = vpop.f32.mrf.mxu0 }
 0x46a   :  { %v6542_v8 = vpop.f32.mrf.mxu0 }
 0x46b   :  { %v6543_v23 = vadd.f32 %v6542_v8, %v6541_v59 }
 0x46c   :  { %v6544_v9 = vpop.f32.mrf.mxu0 }
 0x46d   :  { %v5609_v47 = vadd.f32 %v6543_v23, %v2770_v44 }
 0x46e   :  { %v6545_v10 = vpop.f32.mrf.mxu0 }
 0x487   :  { %v5567_v21 = vpop.f32.mrf.mxu1 }
 0x488   :  { %v5568_v30 = vadd.f32 %v5567_v21, %v5527_v20  ;;  %v6585_v32 = vpop.f32.mrf.mxu0 }
 0x489   :  { %v5569_v57 = vpop.f32.mrf.mxu1 }
 0x48a   :  { %v6522_v33 = vmul.f32 -1.442695, %v5568_v30  ;;  %v5570_v2 = vadd.f32 %v5569_v57, %v5529_v25  ;;  %v6586_v26 = vpop.f32.mrf.mxu0 }
 0x48b   :  { %v5571_v31 = vpop.f32.mrf.mxu1  ;;  %v6587_v48 = vadd.f32 %v6586_v26, %v6585_v32 }
 0x48c   :  { %7297 = vpow2.f32 %v6522_v33  ;;  %v6523_v17 = vmul.f32 -1.442695, %v5570_v2  ;;  %v6588_v28 = vpop.f32.mrf.mxu0 }
 0x48d   :  { %v5572_v58 = vpop.f32.mrf.mxu1 }
 0x48e   :  { %7299 = vpow2.f32 %v6523_v17  ;;  %v6589_v22 = vpop.f32.mrf.mxu0 }
 0x499   :  { %v7298_v35 = vpop.eup %7297 }
 0x49a   :  { %v5759_v36 = vadd.f32 1.0, %v7298_v35 }
 0x49b   :  { %v7300_v37 = vpop.eup %7299 }
 0x49c   :  { %7301 = vrcp.f32 %v5759_v36  ;;  %v5760_v61 = vadd.f32 1.0, %v7300_v37 }
 0x49e   :  { %7303 = vrcp.f32 %v5760_v61 }
 0x4a7   :  { %v6563_v38 = vpop.f32.mrf.mxu1 }
 0x4a9   :  { %v7302_v39 = vpop.eup %7301  ;;  %v6564_v41 = vpop.f32.mrf.mxu1 }
 0x4aa   :  { %5780 = vst [vmem:[#allocation16 + $0x20] sm:$0xff] %v7302_v39  ;;  %v6565_v29 = vadd.f32 %v6564_v41, %v6563_v38 }
 0x4ab   :  { %v7304_v42 = vpop.eup %7303  ;;  %v6566_v27 = vpop.f32.mrf.mxu1 }
 0x4ac   :  { %5781 = vst [vmem:[#allocation16 + $0x28] sm:$0xff] %v7304_v42  ;;  %v5649_v18 = vadd.f32 %v6565_v29, %v5609_v47 }
 0x4ad   :  { %v6567_v43 = vpop.f32.mrf.mxu1 }
 0x4ae   :  { %v5689_v50 = vadd.f32 %v6587_v48, %v5649_v18 }
 0x4c7   :  { %v6607_v0 = vpop.f32.mrf.mxu1 }
 0x4c9   :  { %v6608_v49 = vpop.f32.mrf.mxu1 }
 0x4ca   :  { %v6609_v34 = vadd.f32 %v6608_v49, %v6607_v0 }
 0x4cb   :  { %v6610_v51 = vpop.f32.mrf.mxu1 }
 0x4cc   :  { %v5729_v40 = vadd.f32 %v6609_v34, %v5689_v50 }
 0x4cd   :  { %v6611_v55 = vpop.f32.mrf.mxu1 }
 0x4ce   :  { %v6524_v53 = vmul.f32 -1.442695, %v5729_v40 }
 0x4d0   :  { %7305 = vpow2.f32 %v6524_v53 }
 0x4dd   :  { %v7306_v56 = vpop.eup %7305 }
 0x4de   :  { %v5761_v52 = vadd.f32 1.0, %v7306_v56 }
 0x4e0   :  { %7307 = vrcp.f32 %v5761_v52 }
 0x4ed   :  { %v7308_v24 = vpop.eup %7307 }
 0x4ee   :  { %5782 = vst [vmem:[#allocation16 + $0x30] sm:$0xff] %v7308_v24 }
 0x4ef   :  { %7481 = shalt.err (!%p7478_p2)
}
 0x4f0   :  { %5792 = dma.vmem_to_hbm [thread:$0]  %s5790_s7, 896, %s7765_s8, [#allocation4]  }
 0x4f1   :  { %7500 = dma.done.wait [#allocation4], 896  }
 0x4f2   :  { %7501 = vsyncadd [#allocation4], 4294966400 }
 0x4f3   :  { %5796 = vsyncpa [#allocation3], 1 }
 0x4f4   :  { %5797 = vsyncpa [#allocation6], 1 }
 0x4f5   :  { %5798 = vsyncpa [#allocation9], 1 }
 0x4f6   :  { %5799 = vsyncpa [#allocation12], 1 }
 0x4f7   :  { %5800 = vsyncpa [#allocation15], 1 }
 0x4f8   :  { %5801 = vsyncpa [#allocation4], 1 }

</bundles_post_ra>
